<compile_context>
chip_gen: v6e
topology: v6e:2x2x1
jax: 0.10.0
libtpu: 0.0.40
codegen_flags: <defaults>
</compile_context>

<pallas_src>
import functools

import jax
import jax.numpy as jnp
from jax import lax
from jax.experimental import pallas as pl
from jax.experimental.pallas import tpu as pltpu

NEG_SLOPE = 0.01  # PyTorch nn.LeakyReLU default negative_slope


# ---------------------------------------------------------------- schedules
def ddpm_schedules(beta1: float, beta2: float, T: int):
    assert beta1 < beta2 < 1.0, "beta1 and beta2 must be in (0, 1)"
    beta_t = (beta2 - beta1) * jnp.arange(0, T + 1, dtype=jnp.float32) / T + beta1
    alpha_t = 1.0 - beta_t
    log_alpha_t = jnp.log(alpha_t)
    alphabar_t = jnp.exp(jnp.cumsum(log_alpha_t))
    return {
        "alpha_t": alpha_t,
        "oneover_sqrta": 1.0 / jnp.sqrt(alpha_t),
        "sqrt_beta_t": jnp.sqrt(beta_t),
        "alphabar_t": alphabar_t,
        "sqrtab": jnp.sqrt(alphabar_t),
        "sqrtmab": jnp.sqrt(1.0 - alphabar_t),
        "mab_over_sqrtmab": (1.0 - alpha_t) / jnp.sqrt(1.0 - alphabar_t),
    }


# -------------------------------------------------------------- tap metadata
def _tap_offsets(W: int):
    """Flat-pixel offset for each of the 9 taps, tap = (dy+1)*3 + (dx+1)."""
    return [dy * W + dx for dy in (-1, 0, 1) for dx in (-1, 0, 1)]


def make_tap_masks(H: int, W: int, B: int) -> jnp.ndarray:
    """(9, B*H*W) f32 0/1 masks. mask[t, p] == 1 iff the neighbour of flat
    pixel p at (dy, dx) = (t//3 - 1, t%3 - 1) lies inside the image.
    Implements SAME zero padding and kills roll wrap-around across rows,
    image boundaries and batch boundaries."""
    yy = jnp.arange(H).reshape(H, 1)
    xx = jnp.arange(W).reshape(1, W)
    rows = []
    for dy in (-1, 0, 1):
        for dx in (-1, 0, 1):
            valid = ((yy + dy >= 0) & (yy + dy < H)
                     & (xx + dx >= 0) & (xx + dx < W))
            rows.append(valid.reshape(-1))
    m = jnp.stack(rows).astype(jnp.float32)        # (9, H*W)
    return jnp.tile(m, (1, B))                     # (9, B*H*W)


def _leaky(v):
    return jnp.where(v > 0, v, NEG_SLOPE * v)


# --------------------------------------------------------------- Pallas kernel
def _ddpm_loss_kernel(img_w, x_ref, eps_ref, sa_ref, sm_ref, mask_ref,
                      w1_ref, b1_ref, w2_ref, b2_ref, w3_ref, b3_ref,
                      out_ref):
    """Single invocation over the whole (small) batch.

    Layout: channels-first, batch+spatial flattened on the lane axis.
      x_ref / eps_ref : (C, N) f32,  N = B*H*W   (lane-dense)
      sa_ref / sm_ref : (1, N) f32   per-pixel sqrtab / sqrtmab
      mask_ref        : (9, N) f32   tap validity masks (SAME zero padding)
      wX_ref          : (9, Cout, Cin) bf16,  bX_ref : (Cout, 1) f32
      out_ref         : (1,) f32 SMEM — sum of squared error
    Each 3x3 conv = 9 x { lane roll (XLU) + border mask (VPU) +
    (Cout,Cin)@(Cin,N) bf16 matmul with f32 accumulation (MXU) }.
    """
    x = x_ref[...]
    eps = eps_ref[...]
    n = x.shape[-1]
    offs = _tap_offsets(img_w)

    # forward diffusion: x_t = sqrtab[t_b] * x + sqrtmab[t_b] * eps
    x_t = sa_ref[...] * x + sm_ref[...] * eps            # (C, N) f32

    def conv3x3(act, w_ref, b_ref):
        # act: (Cin, N) f32; w_ref: (9, Cout, Cin) bf16; b_ref: (Cout, 1) f32
        acc_even = None
        acc_odd = None
        for tap in range(9):
            off = offs[tap]
            if off == 0:
                shifted = act                              # centre tap
            else:
                # shifted[:, p] = act[:, p + off]; wrap-around is zeroed by mask
                shifted = pltpu.roll(act, shift=(-off) % n, axis=1)
                shifted = shifted * mask_ref[tap:tap + 1, :]
            t = jnp.dot(w_ref[tap], shifted.astype(jnp.bfloat16),
                        preferred_element_type=jnp.float32)
            if tap % 2 == 0:
                acc_even = t if acc_even is None else acc_even + t
            else:
                acc_odd = t if acc_odd is None else acc_odd + t
        return acc_even + (acc_odd + b_ref[...])

    # eps_model (timestep / condition intentionally unused, see header)
    h = _leaky(conv3x3(x_t, w1_ref, b1_ref))
    h = _leaky(conv3x3(h, w2_ref, b2_ref))
    pred = conv3x3(h, w3_ref, b3_ref)

    diff = eps - pred
    out_ref[0] = jnp.sum(diff * diff)


# ------------------------------------------------------------------- wrapper
def ddpm_forward(x_nchw, eps_nchw, ts, params, sqrtab, sqrtmab):
    B, C, H, W = x_nchw.shape
    HW = H * W
    N = B * HW

    # channels-first, batch+spatial flattened onto lanes: p = b*HW + y*W + x
    x_cf = jnp.transpose(x_nchw, (1, 0, 2, 3)).reshape(C, N)
    eps_cf = jnp.transpose(eps_nchw, (1, 0, 2, 3)).reshape(C, N)

    # per-pixel forward-diffusion scales, (B,) -> (1, N)
    sa = jnp.repeat(sqrtab[ts].astype(jnp.float32), HW).reshape(1, N)
    sm = jnp.repeat(sqrtmab[ts].astype(jnp.float32), HW).reshape(1, N)

    masks = make_tap_masks(H, W, B)                        # (9, N) f32

    w1, b1, w2, b2, w3, b3 = params                        # w: (9, Cin, Cout)
    tw = lambda w: jnp.transpose(w, (0, 2, 1)).astype(jnp.bfloat16)  # (9,Cout,Cin)
    tb = lambda b: b.reshape(-1, 1).astype(jnp.float32)              # (Cout, 1)

    sse = pl.pallas_call(
        functools.partial(_ddpm_loss_kernel, W),
        out_shape=jax.ShapeDtypeStruct((1,), jnp.float32),
        out_specs=pl.BlockSpec(memory_space=pltpu.MemorySpace.SMEM),
    )(x_cf, eps_cf, sa, sm, masks,
      tw(w1), tb(b1), tw(w2), tb(b2), tw(w3), tb(b3))

    # MSELoss with mean reduction
    return sse[0] / (B * C * H * W)


# -------------------------------------------------------- pure-JAX reference
def _eps_model_ref(x_nhwc, params):
    w1, b1, w2, b2, w3, b3 = params

    def conv(a, w, bias):
        w_hwio = w.reshape(3, 3, w.shape[1], w.shape[2])
        y = lax.conv_general_dilated(a, w_hwio, (1, 1), "SAME",
                                     dimension_numbers=("NHWC", "HWIO", "NHWC"))
        return y + bias.reshape(1, 1, 1, -1)

    h = _leaky(conv(x_nhwc, w1, b1))
    h = _leaky(conv(h, w2, b2))
    return conv(h, w3, b3)


def ddpm_forward_ref(x_nchw, eps_nchw, ts, params, sqrtab, sqrtmab):
    x = jnp.transpose(x_nchw, (0, 2, 3, 1))
    e = jnp.transpose(eps_nchw, (0, 2, 3, 1))
    x_t = (sqrtab[ts][:, None, None, None] * x
           + sqrtmab[ts][:, None, None, None] * e)
    pred = _eps_model_ref(x_t, params)
    return jnp.mean((e - pred) ** 2)


# ----------------------------------------------------------------------- main
if __name__ == "__main__":
    B, C, H, W = 2, 4, 16, 16
    C1 = 32
    n_T = 1000
    betas = (1e-4, 0.02)

    key = jax.random.PRNGKey(0)
    kx, keps, kt, k1, k2, k3 = jax.random.split(key, 6)

    # module-facing input: NCHW, same as PyTorch
    x = jax.random.normal(kx, (B, C, H, W), jnp.float32)
    eps = jax.random.normal(keps, (B, C, H, W), jnp.float32)     # randn_like(x)
    ts = jax.random.randint(kt, (B,), 1, n_T)                    # randint(1, n_T)
    _ = ts.astype(jnp.float32) / n_T  # timestep fed to eps_model (unused there)

    def init_conv(k, cin, cout):
        kw, kb = jax.random.split(k)
        w = jax.random.normal(kw, (9, cin, cout), jnp.float32) / jnp.sqrt(9.0 * cin)
        b = 0.01 * jax.random.normal(kb, (1, cout), jnp.float32)
        return w, b

    w1, b1 = init_conv(k1, C, C1)
    w2, b2 = init_conv(k2, C1, C1)
    w3, b3 = init_conv(k3, C1, C)
    params = (w1, b1, w2, b2, w3, b3)

    sched = ddpm_schedules(*betas, n_T)
    sqrtab, sqrtmab = sched["sqrtab"], sched["sqrtmab"]

    loss = jax.block_until_ready(
        ddpm_forward(x, eps, ts, params, sqrtab, sqrtmab))
    ref = jax.block_until_ready(
        ddpm_forward_ref(x, eps, ts, params, sqrtab, sqrtmab))
    assert abs(float(loss) - float(ref)) <= 5e-2 * abs(float(ref)) + 1e-4, (
        float(loss), float(ref))

    print("KERNEL_OK")
</pallas_src>

<mosaic_0001>
module attributes {stable_mosaic.version = 11 : i64} {
  func.func @_ddpm_loss_kernel(%arg0: memref<4x512xf32, #tpu.memory_space<vmem>>, %arg1: memref<4x512xf32, #tpu.memory_space<vmem>>, %arg2: memref<1x512xf32, #tpu.memory_space<vmem>>, %arg3: memref<1x512xf32, #tpu.memory_space<vmem>>, %arg4: memref<9x512xf32, #tpu.memory_space<vmem>>, %arg5: memref<9x32x4xbf16, #tpu.memory_space<vmem>>, %arg6: memref<32x1xf32, #tpu.memory_space<vmem>>, %arg7: memref<9x32x32xbf16, #tpu.memory_space<vmem>>, %arg8: memref<32x1xf32, #tpu.memory_space<vmem>>, %arg9: memref<9x4x32xbf16, #tpu.memory_space<vmem>>, %arg10: memref<4x1xf32, #tpu.memory_space<vmem>>, %arg11: memref<1xf32, #tpu.memory_space<smem>>) attributes {dimension_semantics = [], scalar_prefetch = 0 : i64, scratch_operands = 0 : i64, tpu.core_type = #tpu.core_type<tc>} {
    %c0 = arith.constant 0 : index
    %c0_0 = arith.constant 0 : index
    %0 = vector.load %arg0[%c0, %c0_0] : memref<4x512xf32, #tpu.memory_space<vmem>>, vector<4x512xf32>
    %c0_1 = arith.constant 0 : index
    %c0_2 = arith.constant 0 : index
    %1 = vector.load %arg1[%c0_1, %c0_2] : memref<4x512xf32, #tpu.memory_space<vmem>>, vector<4x512xf32>
    %c0_3 = arith.constant 0 : index
    %c0_4 = arith.constant 0 : index
    %2 = vector.load %arg2[%c0_3, %c0_4] : memref<1x512xf32, #tpu.memory_space<vmem>>, vector<1x512xf32>
    %3 = vector.broadcast %2 : vector<1x512xf32> to vector<4x512xf32>
    %4 = arith.mulf %3, %0 : vector<4x512xf32>
    %c0_5 = arith.constant 0 : index
    %c0_6 = arith.constant 0 : index
    %5 = vector.load %arg3[%c0_5, %c0_6] : memref<1x512xf32, #tpu.memory_space<vmem>>, vector<1x512xf32>
    %6 = vector.broadcast %5 : vector<1x512xf32> to vector<4x512xf32>
    %7 = arith.mulf %6, %1 : vector<4x512xf32>
    %8 = arith.addf %4, %7 : vector<4x512xf32>
    %c17_i32 = arith.constant 17 : i32
    %9 = tpu.dynamic_rotate %8 by %c17_i32 dim 1 : vector<4x512xf32>, i32 -> vector<4x512xf32>
    %c0_7 = arith.constant 0 : index
    %c0_8 = arith.constant 0 : index
    %10 = vector.load %arg4[%c0_7, %c0_8] : memref<9x512xf32, #tpu.memory_space<vmem>>, vector<1x512xf32>
    %11 = vector.broadcast %10 : vector<1x512xf32> to vector<4x512xf32>
    %12 = arith.mulf %9, %11 : vector<4x512xf32>
    %c0_9 = arith.constant 0 : index
    %c0_10 = arith.constant 0 : index
    %c0_11 = arith.constant 0 : index
    %13 = vector.load %arg5[%c0_9, %c0_10, %c0_11] : memref<9x32x4xbf16, #tpu.memory_space<vmem>>, vector<1x32x4xbf16>
    %14 = vector.shape_cast %13 : vector<1x32x4xbf16> to vector<32x4xbf16>
    %15 = arith.truncf %12 : vector<4x512xf32> to vector<4x512xbf16>
    %cst = arith.constant dense<0.000000e+00> : vector<32x512xf32>
    %16 = tpu.matmul %14, %15, %cst {dimension_numbers = #tpu.dot_dimension_numbers<[1], [0], [0], [1], [0, 0, 1, 1], [], []>} : vector<32x4xbf16>, vector<4x512xbf16>, vector<32x512xf32> -> vector<32x512xf32>
    %c16_i32 = arith.constant 16 : i32
    %17 = tpu.dynamic_rotate %8 by %c16_i32 dim 1 : vector<4x512xf32>, i32 -> vector<4x512xf32>
    %c1 = arith.constant 1 : index
    %c0_12 = arith.constant 0 : index
    %18 = vector.load %arg4[%c1, %c0_12] : memref<9x512xf32, #tpu.memory_space<vmem>>, vector<1x512xf32>
    %19 = vector.broadcast %18 : vector<1x512xf32> to vector<4x512xf32>
    %20 = arith.mulf %17, %19 : vector<4x512xf32>
    %c1_13 = arith.constant 1 : index
    %c0_14 = arith.constant 0 : index
    %c0_15 = arith.constant 0 : index
    %21 = vector.load %arg5[%c1_13, %c0_14, %c0_15] : memref<9x32x4xbf16, #tpu.memory_space<vmem>>, vector<1x32x4xbf16>
    %22 = vector.shape_cast %21 : vector<1x32x4xbf16> to vector<32x4xbf16>
    %23 = arith.truncf %20 : vector<4x512xf32> to vector<4x512xbf16>
    %cst_16 = arith.constant dense<0.000000e+00> : vector<32x512xf32>
    %24 = tpu.matmul %22, %23, %cst_16 {dimension_numbers = #tpu.dot_dimension_numbers<[1], [0], [0], [1], [0, 0, 1, 1], [], []>} : vector<32x4xbf16>, vector<4x512xbf16>, vector<32x512xf32> -> vector<32x512xf32>
    %c15_i32 = arith.constant 15 : i32
    %25 = tpu.dynamic_rotate %8 by %c15_i32 dim 1 : vector<4x512xf32>, i32 -> vector<4x512xf32>
    %c2 = arith.constant 2 : index
    %c0_17 = arith.constant 0 : index
    %26 = vector.load %arg4[%c2, %c0_17] : memref<9x512xf32, #tpu.memory_space<vmem>>, vector<1x512xf32>
    %27 = vector.broadcast %26 : vector<1x512xf32> to vector<4x512xf32>
    %28 = arith.mulf %25, %27 : vector<4x512xf32>
    %c2_18 = arith.constant 2 : index
    %c0_19 = arith.constant 0 : index
    %c0_20 = arith.constant 0 : index
    %29 = vector.load %arg5[%c2_18, %c0_19, %c0_20] : memref<9x32x4xbf16, #tpu.memory_space<vmem>>, vector<1x32x4xbf16>
    %30 = vector.shape_cast %29 : vector<1x32x4xbf16> to vector<32x4xbf16>
    %31 = arith.truncf %28 : vector<4x512xf32> to vector<4x512xbf16>
    %cst_21 = arith.constant dense<0.000000e+00> : vector<32x512xf32>
    %32 = tpu.matmul %30, %31, %cst_21 {dimension_numbers = #tpu.dot_dimension_numbers<[1], [0], [0], [1], [0, 0, 1, 1], [], []>} : vector<32x4xbf16>, vector<4x512xbf16>, vector<32x512xf32> -> vector<32x512xf32>
    %33 = arith.addf %16, %32 : vector<32x512xf32>
    %c1_i32 = arith.constant 1 : i32
    %34 = tpu.dynamic_rotate %8 by %c1_i32 dim 1 : vector<4x512xf32>, i32 -> vector<4x512xf32>
    %c3 = arith.constant 3 : index
    %c0_22 = arith.constant 0 : index
    %35 = vector.load %arg4[%c3, %c0_22] : memref<9x512xf32, #tpu.memory_space<vmem>>, vector<1x512xf32>
    %36 = vector.broadcast %35 : vector<1x512xf32> to vector<4x512xf32>
    %37 = arith.mulf %34, %36 : vector<4x512xf32>
    %c3_23 = arith.constant 3 : index
    %c0_24 = arith.constant 0 : index
    %c0_25 = arith.constant 0 : index
    %38 = vector.load %arg5[%c3_23, %c0_24, %c0_25] : memref<9x32x4xbf16, #tpu.memory_space<vmem>>, vector<1x32x4xbf16>
    %39 = vector.shape_cast %38 : vector<1x32x4xbf16> to vector<32x4xbf16>
    %40 = arith.truncf %37 : vector<4x512xf32> to vector<4x512xbf16>
    %cst_26 = arith.constant dense<0.000000e+00> : vector<32x512xf32>
    %41 = tpu.matmul %39, %40, %cst_26 {dimension_numbers = #tpu.dot_dimension_numbers<[1], [0], [0], [1], [0, 0, 1, 1], [], []>} : vector<32x4xbf16>, vector<4x512xbf16>, vector<32x512xf32> -> vector<32x512xf32>
    %42 = arith.addf %24, %41 : vector<32x512xf32>
    %c4 = arith.constant 4 : index
    %c0_27 = arith.constant 0 : index
    %c0_28 = arith.constant 0 : index
    %43 = vector.load %arg5[%c4, %c0_27, %c0_28] : memref<9x32x4xbf16, #tpu.memory_space<vmem>>, vector<1x32x4xbf16>
    %44 = vector.shape_cast %43 : vector<1x32x4xbf16> to vector<32x4xbf16>
    %45 = arith.truncf %8 : vector<4x512xf32> to vector<4x512xbf16>
    %cst_29 = arith.constant dense<0.000000e+00> : vector<32x512xf32>
    %46 = tpu.matmul %44, %45, %cst_29 {dimension_numbers = #tpu.dot_dimension_numbers<[1], [0], [0], [1], [0, 0, 1, 1], [], []>} : vector<32x4xbf16>, vector<4x512xbf16>, vector<32x512xf32> -> vector<32x512xf32>
    %47 = arith.addf %33, %46 : vector<32x512xf32>
    %c511_i32 = arith.constant 511 : i32
    %48 = tpu.dynamic_rotate %8 by %c511_i32 dim 1 : vector<4x512xf32>, i32 -> vector<4x512xf32>
    %c5 = arith.constant 5 : index
    %c0_30 = arith.constant 0 : index
    %49 = vector.load %arg4[%c5, %c0_30] : memref<9x512xf32, #tpu.memory_space<vmem>>, vector<1x512xf32>
    %50 = vector.broadcast %49 : vector<1x512xf32> to vector<4x512xf32>
    %51 = arith.mulf %48, %50 : vector<4x512xf32>
    %c5_31 = arith.constant 5 : index
    %c0_32 = arith.constant 0 : index
    %c0_33 = arith.constant 0 : index
    %52 = vector.load %arg5[%c5_31, %c0_32, %c0_33] : memref<9x32x4xbf16, #tpu.memory_space<vmem>>, vector<1x32x4xbf16>
    %53 = vector.shape_cast %52 : vector<1x32x4xbf16> to vector<32x4xbf16>
    %54 = arith.truncf %51 : vector<4x512xf32> to vector<4x512xbf16>
    %cst_34 = arith.constant dense<0.000000e+00> : vector<32x512xf32>
    %55 = tpu.matmul %53, %54, %cst_34 {dimension_numbers = #tpu.dot_dimension_numbers<[1], [0], [0], [1], [0, 0, 1, 1], [], []>} : vector<32x4xbf16>, vector<4x512xbf16>, vector<32x512xf32> -> vector<32x512xf32>
    %56 = arith.addf %42, %55 : vector<32x512xf32>
    %c497_i32 = arith.constant 497 : i32
    %57 = tpu.dynamic_rotate %8 by %c497_i32 dim 1 : vector<4x512xf32>, i32 -> vector<4x512xf32>
    %c6 = arith.constant 6 : index
    %c0_35 = arith.constant 0 : index
    %58 = vector.load %arg4[%c6, %c0_35] : memref<9x512xf32, #tpu.memory_space<vmem>>, vector<1x512xf32>
    %59 = vector.broadcast %58 : vector<1x512xf32> to vector<4x512xf32>
    %60 = arith.mulf %57, %59 : vector<4x512xf32>
    %c6_36 = arith.constant 6 : index
    %c0_37 = arith.constant 0 : index
    %c0_38 = arith.constant 0 : index
    %61 = vector.load %arg5[%c6_36, %c0_37, %c0_38] : memref<9x32x4xbf16, #tpu.memory_space<vmem>>, vector<1x32x4xbf16>
    %62 = vector.shape_cast %61 : vector<1x32x4xbf16> to vector<32x4xbf16>
    %63 = arith.truncf %60 : vector<4x512xf32> to vector<4x512xbf16>
    %cst_39 = arith.constant dense<0.000000e+00> : vector<32x512xf32>
    %64 = tpu.matmul %62, %63, %cst_39 {dimension_numbers = #tpu.dot_dimension_numbers<[1], [0], [0], [1], [0, 0, 1, 1], [], []>} : vector<32x4xbf16>, vector<4x512xbf16>, vector<32x512xf32> -> vector<32x512xf32>
    %65 = arith.addf %47, %64 : vector<32x512xf32>
    %c496_i32 = arith.constant 496 : i32
    %66 = tpu.dynamic_rotate %8 by %c496_i32 dim 1 : vector<4x512xf32>, i32 -> vector<4x512xf32>
    %c7 = arith.constant 7 : index
    %c0_40 = arith.constant 0 : index
    %67 = vector.load %arg4[%c7, %c0_40] : memref<9x512xf32, #tpu.memory_space<vmem>>, vector<1x512xf32>
    %68 = vector.broadcast %67 : vector<1x512xf32> to vector<4x512xf32>
    %69 = arith.mulf %66, %68 : vector<4x512xf32>
    %c7_41 = arith.constant 7 : index
    %c0_42 = arith.constant 0 : index
    %c0_43 = arith.constant 0 : index
    %70 = vector.load %arg5[%c7_41, %c0_42, %c0_43] : memref<9x32x4xbf16, #tpu.memory_space<vmem>>, vector<1x32x4xbf16>
    %71 = vector.shape_cast %70 : vector<1x32x4xbf16> to vector<32x4xbf16>
    %72 = arith.truncf %69 : vector<4x512xf32> to vector<4x512xbf16>
    %cst_44 = arith.constant dense<0.000000e+00> : vector<32x512xf32>
    %73 = tpu.matmul %71, %72, %cst_44 {dimension_numbers = #tpu.dot_dimension_numbers<[1], [0], [0], [1], [0, 0, 1, 1], [], []>} : vector<32x4xbf16>, vector<4x512xbf16>, vector<32x512xf32> -> vector<32x512xf32>
    %74 = arith.addf %56, %73 : vector<32x512xf32>
    %c495_i32 = arith.constant 495 : i32
    %75 = tpu.dynamic_rotate %8 by %c495_i32 dim 1 : vector<4x512xf32>, i32 -> vector<4x512xf32>
    %c8 = arith.constant 8 : index
    %c0_45 = arith.constant 0 : index
    %76 = vector.load %arg4[%c8, %c0_45] : memref<9x512xf32, #tpu.memory_space<vmem>>, vector<1x512xf32>
    %77 = vector.broadcast %76 : vector<1x512xf32> to vector<4x512xf32>
    %78 = arith.mulf %75, %77 : vector<4x512xf32>
    %c8_46 = arith.constant 8 : index
    %c0_47 = arith.constant 0 : index
    %c0_48 = arith.constant 0 : index
    %79 = vector.load %arg5[%c8_46, %c0_47, %c0_48] : memref<9x32x4xbf16, #tpu.memory_space<vmem>>, vector<1x32x4xbf16>
    %80 = vector.shape_cast %79 : vector<1x32x4xbf16> to vector<32x4xbf16>
    %81 = arith.truncf %78 : vector<4x512xf32> to vector<4x512xbf16>
    %cst_49 = arith.constant dense<0.000000e+00> : vector<32x512xf32>
    %82 = tpu.matmul %80, %81, %cst_49 {dimension_numbers = #tpu.dot_dimension_numbers<[1], [0], [0], [1], [0, 0, 1, 1], [], []>} : vector<32x4xbf16>, vector<4x512xbf16>, vector<32x512xf32> -> vector<32x512xf32>
    %83 = arith.addf %65, %82 : vector<32x512xf32>
    %c0_50 = arith.constant 0 : index
    %c0_51 = arith.constant 0 : index
    %84 = vector.load %arg6[%c0_50, %c0_51] : memref<32x1xf32, #tpu.memory_space<vmem>>, vector<32x1xf32>
    %85 = vector.broadcast %84 : vector<32x1xf32> to vector<32x512xf32>
    %86 = arith.addf %74, %85 : vector<32x512xf32>
    %87 = arith.addf %83, %86 : vector<32x512xf32>
    %cst_52 = arith.constant 0.000000e+00 : f32
    %88 = vector.broadcast %cst_52 : f32 to vector<32x512xf32>
    %89 = arith.cmpf ogt, %87, %88 : vector<32x512xf32>
    %cst_53 = arith.constant 0.00999999977 : f32
    %90 = vector.broadcast %cst_53 : f32 to vector<32x512xf32>
    %91 = arith.mulf %90, %87 : vector<32x512xf32>
    %92 = arith.select %89, %87, %91 : vector<32x512xi1>, vector<32x512xf32>
    %c17_i32_54 = arith.constant 17 : i32
    %93 = tpu.dynamic_rotate %92 by %c17_i32_54 dim 1 : vector<32x512xf32>, i32 -> vector<32x512xf32>
    %c0_55 = arith.constant 0 : index
    %c0_56 = arith.constant 0 : index
    %94 = vector.load %arg4[%c0_55, %c0_56] : memref<9x512xf32, #tpu.memory_space<vmem>>, vector<1x512xf32>
    %95 = vector.broadcast %94 : vector<1x512xf32> to vector<32x512xf32>
    %96 = arith.mulf %93, %95 : vector<32x512xf32>
    %c0_57 = arith.constant 0 : index
    %c0_58 = arith.constant 0 : index
    %c0_59 = arith.constant 0 : index
    %97 = vector.load %arg7[%c0_57, %c0_58, %c0_59] : memref<9x32x32xbf16, #tpu.memory_space<vmem>>, vector<1x32x32xbf16>
    %98 = vector.shape_cast %97 : vector<1x32x32xbf16> to vector<32x32xbf16>
    %99 = arith.truncf %96 : vector<32x512xf32> to vector<32x512xbf16>
    %cst_60 = arith.constant dense<0.000000e+00> : vector<32x512xf32>
    %100 = tpu.matmul %98, %99, %cst_60 {dimension_numbers = #tpu.dot_dimension_numbers<[1], [0], [0], [1], [0, 0, 1, 1], [], []>} : vector<32x32xbf16>, vector<32x512xbf16>, vector<32x512xf32> -> vector<32x512xf32>
    %c16_i32_61 = arith.constant 16 : i32
    %101 = tpu.dynamic_rotate %92 by %c16_i32_61 dim 1 : vector<32x512xf32>, i32 -> vector<32x512xf32>
    %c1_62 = arith.constant 1 : index
    %c0_63 = arith.constant 0 : index
    %102 = vector.load %arg4[%c1_62, %c0_63] : memref<9x512xf32, #tpu.memory_space<vmem>>, vector<1x512xf32>
    %103 = vector.broadcast %102 : vector<1x512xf32> to vector<32x512xf32>
    %104 = arith.mulf %101, %103 : vector<32x512xf32>
    %c1_64 = arith.constant 1 : index
    %c0_65 = arith.constant 0 : index
    %c0_66 = arith.constant 0 : index
    %105 = vector.load %arg7[%c1_64, %c0_65, %c0_66] : memref<9x32x32xbf16, #tpu.memory_space<vmem>>, vector<1x32x32xbf16>
    %106 = vector.shape_cast %105 : vector<1x32x32xbf16> to vector<32x32xbf16>
    %107 = arith.truncf %104 : vector<32x512xf32> to vector<32x512xbf16>
    %cst_67 = arith.constant dense<0.000000e+00> : vector<32x512xf32>
    %108 = tpu.matmul %106, %107, %cst_67 {dimension_numbers = #tpu.dot_dimension_numbers<[1], [0], [0], [1], [0, 0, 1, 1], [], []>} : vector<32x32xbf16>, vector<32x512xbf16>, vector<32x512xf32> -> vector<32x512xf32>
    %c15_i32_68 = arith.constant 15 : i32
    %109 = tpu.dynamic_rotate %92 by %c15_i32_68 dim 1 : vector<32x512xf32>, i32 -> vector<32x512xf32>
    %c2_69 = arith.constant 2 : index
    %c0_70 = arith.constant 0 : index
    %110 = vector.load %arg4[%c2_69, %c0_70] : memref<9x512xf32, #tpu.memory_space<vmem>>, vector<1x512xf32>
    %111 = vector.broadcast %110 : vector<1x512xf32> to vector<32x512xf32>
    %112 = arith.mulf %109, %111 : vector<32x512xf32>
    %c2_71 = arith.constant 2 : index
    %c0_72 = arith.constant 0 : index
    %c0_73 = arith.constant 0 : index
    %113 = vector.load %arg7[%c2_71, %c0_72, %c0_73] : memref<9x32x32xbf16, #tpu.memory_space<vmem>>, vector<1x32x32xbf16>
    %114 = vector.shape_cast %113 : vector<1x32x32xbf16> to vector<32x32xbf16>
    %115 = arith.truncf %112 : vector<32x512xf32> to vector<32x512xbf16>
    %cst_74 = arith.constant dense<0.000000e+00> : vector<32x512xf32>
    %116 = tpu.matmul %114, %115, %cst_74 {dimension_numbers = #tpu.dot_dimension_numbers<[1], [0], [0], [1], [0, 0, 1, 1], [], []>} : vector<32x32xbf16>, vector<32x512xbf16>, vector<32x512xf32> -> vector<32x512xf32>
    %117 = arith.addf %100, %116 : vector<32x512xf32>
    %c1_i32_75 = arith.constant 1 : i32
    %118 = tpu.dynamic_rotate %92 by %c1_i32_75 dim 1 : vector<32x512xf32>, i32 -> vector<32x512xf32>
    %c3_76 = arith.constant 3 : index
    %c0_77 = arith.constant 0 : index
    %119 = vector.load %arg4[%c3_76, %c0_77] : memref<9x512xf32, #tpu.memory_space<vmem>>, vector<1x512xf32>
    %120 = vector.broadcast %119 : vector<1x512xf32> to vector<32x512xf32>
    %121 = arith.mulf %118, %120 : vector<32x512xf32>
    %c3_78 = arith.constant 3 : index
    %c0_79 = arith.constant 0 : index
    %c0_80 = arith.constant 0 : index
    %122 = vector.load %arg7[%c3_78, %c0_79, %c0_80] : memref<9x32x32xbf16, #tpu.memory_space<vmem>>, vector<1x32x32xbf16>
    %123 = vector.shape_cast %122 : vector<1x32x32xbf16> to vector<32x32xbf16>
    %124 = arith.truncf %121 : vector<32x512xf32> to vector<32x512xbf16>
    %cst_81 = arith.constant dense<0.000000e+00> : vector<32x512xf32>
    %125 = tpu.matmul %123, %124, %cst_81 {dimension_numbers = #tpu.dot_dimension_numbers<[1], [0], [0], [1], [0, 0, 1, 1], [], []>} : vector<32x32xbf16>, vector<32x512xbf16>, vector<32x512xf32> -> vector<32x512xf32>
    %126 = arith.addf %108, %125 : vector<32x512xf32>
    %c4_82 = arith.constant 4 : index
    %c0_83 = arith.constant 0 : index
    %c0_84 = arith.constant 0 : index
    %127 = vector.load %arg7[%c4_82, %c0_83, %c0_84] : memref<9x32x32xbf16, #tpu.memory_space<vmem>>, vector<1x32x32xbf16>
    %128 = vector.shape_cast %127 : vector<1x32x32xbf16> to vector<32x32xbf16>
    %129 = arith.truncf %92 : vector<32x512xf32> to vector<32x512xbf16>
    %cst_85 = arith.constant dense<0.000000e+00> : vector<32x512xf32>
    %130 = tpu.matmul %128, %129, %cst_85 {dimension_numbers = #tpu.dot_dimension_numbers<[1], [0], [0], [1], [0, 0, 1, 1], [], []>} : vector<32x32xbf16>, vector<32x512xbf16>, vector<32x512xf32> -> vector<32x512xf32>
    %131 = arith.addf %117, %130 : vector<32x512xf32>
    %c511_i32_86 = arith.constant 511 : i32
    %132 = tpu.dynamic_rotate %92 by %c511_i32_86 dim 1 : vector<32x512xf32>, i32 -> vector<32x512xf32>
    %c5_87 = arith.constant 5 : index
    %c0_88 = arith.constant 0 : index
    %133 = vector.load %arg4[%c5_87, %c0_88] : memref<9x512xf32, #tpu.memory_space<vmem>>, vector<1x512xf32>
    %134 = vector.broadcast %133 : vector<1x512xf32> to vector<32x512xf32>
    %135 = arith.mulf %132, %134 : vector<32x512xf32>
    %c5_89 = arith.constant 5 : index
    %c0_90 = arith.constant 0 : index
    %c0_91 = arith.constant 0 : index
    %136 = vector.load %arg7[%c5_89, %c0_90, %c0_91] : memref<9x32x32xbf16, #tpu.memory_space<vmem>>, vector<1x32x32xbf16>
    %137 = vector.shape_cast %136 : vector<1x32x32xbf16> to vector<32x32xbf16>
    %138 = arith.truncf %135 : vector<32x512xf32> to vector<32x512xbf16>
    %cst_92 = arith.constant dense<0.000000e+00> : vector<32x512xf32>
    %139 = tpu.matmul %137, %138, %cst_92 {dimension_numbers = #tpu.dot_dimension_numbers<[1], [0], [0], [1], [0, 0, 1, 1], [], []>} : vector<32x32xbf16>, vector<32x512xbf16>, vector<32x512xf32> -> vector<32x512xf32>
    %140 = arith.addf %126, %139 : vector<32x512xf32>
    %c497_i32_93 = arith.constant 497 : i32
    %141 = tpu.dynamic_rotate %92 by %c497_i32_93 dim 1 : vector<32x512xf32>, i32 -> vector<32x512xf32>
    %c6_94 = arith.constant 6 : index
    %c0_95 = arith.constant 0 : index
    %142 = vector.load %arg4[%c6_94, %c0_95] : memref<9x512xf32, #tpu.memory_space<vmem>>, vector<1x512xf32>
    %143 = vector.broadcast %142 : vector<1x512xf32> to vector<32x512xf32>
    %144 = arith.mulf %141, %143 : vector<32x512xf32>
    %c6_96 = arith.constant 6 : index
    %c0_97 = arith.constant 0 : index
    %c0_98 = arith.constant 0 : index
    %145 = vector.load %arg7[%c6_96, %c0_97, %c0_98] : memref<9x32x32xbf16, #tpu.memory_space<vmem>>, vector<1x32x32xbf16>
    %146 = vector.shape_cast %145 : vector<1x32x32xbf16> to vector<32x32xbf16>
    %147 = arith.truncf %144 : vector<32x512xf32> to vector<32x512xbf16>
    %cst_99 = arith.constant dense<0.000000e+00> : vector<32x512xf32>
    %148 = tpu.matmul %146, %147, %cst_99 {dimension_numbers = #tpu.dot_dimension_numbers<[1], [0], [0], [1], [0, 0, 1, 1], [], []>} : vector<32x32xbf16>, vector<32x512xbf16>, vector<32x512xf32> -> vector<32x512xf32>
    %149 = arith.addf %131, %148 : vector<32x512xf32>
    %c496_i32_100 = arith.constant 496 : i32
    %150 = tpu.dynamic_rotate %92 by %c496_i32_100 dim 1 : vector<32x512xf32>, i32 -> vector<32x512xf32>
    %c7_101 = arith.constant 7 : index
    %c0_102 = arith.constant 0 : index
    %151 = vector.load %arg4[%c7_101, %c0_102] : memref<9x512xf32, #tpu.memory_space<vmem>>, vector<1x512xf32>
    %152 = vector.broadcast %151 : vector<1x512xf32> to vector<32x512xf32>
    %153 = arith.mulf %150, %152 : vector<32x512xf32>
    %c7_103 = arith.constant 7 : index
    %c0_104 = arith.constant 0 : index
    %c0_105 = arith.constant 0 : index
    %154 = vector.load %arg7[%c7_103, %c0_104, %c0_105] : memref<9x32x32xbf16, #tpu.memory_space<vmem>>, vector<1x32x32xbf16>
    %155 = vector.shape_cast %154 : vector<1x32x32xbf16> to vector<32x32xbf16>
    %156 = arith.truncf %153 : vector<32x512xf32> to vector<32x512xbf16>
    %cst_106 = arith.constant dense<0.000000e+00> : vector<32x512xf32>
    %157 = tpu.matmul %155, %156, %cst_106 {dimension_numbers = #tpu.dot_dimension_numbers<[1], [0], [0], [1], [0, 0, 1, 1], [], []>} : vector<32x32xbf16>, vector<32x512xbf16>, vector<32x512xf32> -> vector<32x512xf32>
    %158 = arith.addf %140, %157 : vector<32x512xf32>
    %c495_i32_107 = arith.constant 495 : i32
    %159 = tpu.dynamic_rotate %92 by %c495_i32_107 dim 1 : vector<32x512xf32>, i32 -> vector<32x512xf32>
    %c8_108 = arith.constant 8 : index
    %c0_109 = arith.constant 0 : index
    %160 = vector.load %arg4[%c8_108, %c0_109] : memref<9x512xf32, #tpu.memory_space<vmem>>, vector<1x512xf32>
    %161 = vector.broadcast %160 : vector<1x512xf32> to vector<32x512xf32>
    %162 = arith.mulf %159, %161 : vector<32x512xf32>
    %c8_110 = arith.constant 8 : index
    %c0_111 = arith.constant 0 : index
    %c0_112 = arith.constant 0 : index
    %163 = vector.load %arg7[%c8_110, %c0_111, %c0_112] : memref<9x32x32xbf16, #tpu.memory_space<vmem>>, vector<1x32x32xbf16>
    %164 = vector.shape_cast %163 : vector<1x32x32xbf16> to vector<32x32xbf16>
    %165 = arith.truncf %162 : vector<32x512xf32> to vector<32x512xbf16>
    %cst_113 = arith.constant dense<0.000000e+00> : vector<32x512xf32>
    %166 = tpu.matmul %164, %165, %cst_113 {dimension_numbers = #tpu.dot_dimension_numbers<[1], [0], [0], [1], [0, 0, 1, 1], [], []>} : vector<32x32xbf16>, vector<32x512xbf16>, vector<32x512xf32> -> vector<32x512xf32>
    %167 = arith.addf %149, %166 : vector<32x512xf32>
    %c0_114 = arith.constant 0 : index
    %c0_115 = arith.constant 0 : index
    %168 = vector.load %arg8[%c0_114, %c0_115] : memref<32x1xf32, #tpu.memory_space<vmem>>, vector<32x1xf32>
    %169 = vector.broadcast %168 : vector<32x1xf32> to vector<32x512xf32>
    %170 = arith.addf %158, %169 : vector<32x512xf32>
    %171 = arith.addf %167, %170 : vector<32x512xf32>
    %cst_116 = arith.constant 0.000000e+00 : f32
    %172 = vector.broadcast %cst_116 : f32 to vector<32x512xf32>
    %173 = arith.cmpf ogt, %171, %172 : vector<32x512xf32>
    %cst_117 = arith.constant 0.00999999977 : f32
    %174 = vector.broadcast %cst_117 : f32 to vector<32x512xf32>
    %175 = arith.mulf %174, %171 : vector<32x512xf32>
    %176 = arith.select %173, %171, %175 : vector<32x512xi1>, vector<32x512xf32>
    %c17_i32_118 = arith.constant 17 : i32
    %177 = tpu.dynamic_rotate %176 by %c17_i32_118 dim 1 : vector<32x512xf32>, i32 -> vector<32x512xf32>
    %c0_119 = arith.constant 0 : index
    %c0_120 = arith.constant 0 : index
    %178 = vector.load %arg4[%c0_119, %c0_120] : memref<9x512xf32, #tpu.memory_space<vmem>>, vector<1x512xf32>
    %179 = vector.broadcast %178 : vector<1x512xf32> to vector<32x512xf32>
    %180 = arith.mulf %177, %179 : vector<32x512xf32>
    %c0_121 = arith.constant 0 : index
    %c0_122 = arith.constant 0 : index
    %c0_123 = arith.constant 0 : index
    %181 = vector.load %arg9[%c0_121, %c0_122, %c0_123] : memref<9x4x32xbf16, #tpu.memory_space<vmem>>, vector<1x4x32xbf16>
    %182 = vector.shape_cast %181 : vector<1x4x32xbf16> to vector<4x32xbf16>
    %183 = arith.truncf %180 : vector<32x512xf32> to vector<32x512xbf16>
    %cst_124 = arith.constant dense<0.000000e+00> : vector<4x512xf32>
    %184 = tpu.matmul %182, %183, %cst_124 {dimension_numbers = #tpu.dot_dimension_numbers<[1], [0], [0], [1], [0, 0, 1, 1], [], []>} : vector<4x32xbf16>, vector<32x512xbf16>, vector<4x512xf32> -> vector<4x512xf32>
    %c16_i32_125 = arith.constant 16 : i32
    %185 = tpu.dynamic_rotate %176 by %c16_i32_125 dim 1 : vector<32x512xf32>, i32 -> vector<32x512xf32>
    %c1_126 = arith.constant 1 : index
    %c0_127 = arith.constant 0 : index
    %186 = vector.load %arg4[%c1_126, %c0_127] : memref<9x512xf32, #tpu.memory_space<vmem>>, vector<1x512xf32>
    %187 = vector.broadcast %186 : vector<1x512xf32> to vector<32x512xf32>
    %188 = arith.mulf %185, %187 : vector<32x512xf32>
    %c1_128 = arith.constant 1 : index
    %c0_129 = arith.constant 0 : index
    %c0_130 = arith.constant 0 : index
    %189 = vector.load %arg9[%c1_128, %c0_129, %c0_130] : memref<9x4x32xbf16, #tpu.memory_space<vmem>>, vector<1x4x32xbf16>
    %190 = vector.shape_cast %189 : vector<1x4x32xbf16> to vector<4x32xbf16>
    %191 = arith.truncf %188 : vector<32x512xf32> to vector<32x512xbf16>
    %cst_131 = arith.constant dense<0.000000e+00> : vector<4x512xf32>
    %192 = tpu.matmul %190, %191, %cst_131 {dimension_numbers = #tpu.dot_dimension_numbers<[1], [0], [0], [1], [0, 0, 1, 1], [], []>} : vector<4x32xbf16>, vector<32x512xbf16>, vector<4x512xf32> -> vector<4x512xf32>
    %c15_i32_132 = arith.constant 15 : i32
    %193 = tpu.dynamic_rotate %176 by %c15_i32_132 dim 1 : vector<32x512xf32>, i32 -> vector<32x512xf32>
    %c2_133 = arith.constant 2 : index
    %c0_134 = arith.constant 0 : index
    %194 = vector.load %arg4[%c2_133, %c0_134] : memref<9x512xf32, #tpu.memory_space<vmem>>, vector<1x512xf32>
    %195 = vector.broadcast %194 : vector<1x512xf32> to vector<32x512xf32>
    %196 = arith.mulf %193, %195 : vector<32x512xf32>
    %c2_135 = arith.constant 2 : index
    %c0_136 = arith.constant 0 : index
    %c0_137 = arith.constant 0 : index
    %197 = vector.load %arg9[%c2_135, %c0_136, %c0_137] : memref<9x4x32xbf16, #tpu.memory_space<vmem>>, vector<1x4x32xbf16>
    %198 = vector.shape_cast %197 : vector<1x4x32xbf16> to vector<4x32xbf16>
    %199 = arith.truncf %196 : vector<32x512xf32> to vector<32x512xbf16>
    %cst_138 = arith.constant dense<0.000000e+00> : vector<4x512xf32>
    %200 = tpu.matmul %198, %199, %cst_138 {dimension_numbers = #tpu.dot_dimension_numbers<[1], [0], [0], [1], [0, 0, 1, 1], [], []>} : vector<4x32xbf16>, vector<32x512xbf16>, vector<4x512xf32> -> vector<4x512xf32>
    %201 = arith.addf %184, %200 : vector<4x512xf32>
    %c1_i32_139 = arith.constant 1 : i32
    %202 = tpu.dynamic_rotate %176 by %c1_i32_139 dim 1 : vector<32x512xf32>, i32 -> vector<32x512xf32>
    %c3_140 = arith.constant 3 : index
    %c0_141 = arith.constant 0 : index
    %203 = vector.load %arg4[%c3_140, %c0_141] : memref<9x512xf32, #tpu.memory_space<vmem>>, vector<1x512xf32>
    %204 = vector.broadcast %203 : vector<1x512xf32> to vector<32x512xf32>
    %205 = arith.mulf %202, %204 : vector<32x512xf32>
    %c3_142 = arith.constant 3 : index
    %c0_143 = arith.constant 0 : index
    %c0_144 = arith.constant 0 : index
    %206 = vector.load %arg9[%c3_142, %c0_143, %c0_144] : memref<9x4x32xbf16, #tpu.memory_space<vmem>>, vector<1x4x32xbf16>
    %207 = vector.shape_cast %206 : vector<1x4x32xbf16> to vector<4x32xbf16>
    %208 = arith.truncf %205 : vector<32x512xf32> to vector<32x512xbf16>
    %cst_145 = arith.constant dense<0.000000e+00> : vector<4x512xf32>
    %209 = tpu.matmul %207, %208, %cst_145 {dimension_numbers = #tpu.dot_dimension_numbers<[1], [0], [0], [1], [0, 0, 1, 1], [], []>} : vector<4x32xbf16>, vector<32x512xbf16>, vector<4x512xf32> -> vector<4x512xf32>
    %210 = arith.addf %192, %209 : vector<4x512xf32>
    %c4_146 = arith.constant 4 : index
    %c0_147 = arith.constant 0 : index
    %c0_148 = arith.constant 0 : index
    %211 = vector.load %arg9[%c4_146, %c0_147, %c0_148] : memref<9x4x32xbf16, #tpu.memory_space<vmem>>, vector<1x4x32xbf16>
    %212 = vector.shape_cast %211 : vector<1x4x32xbf16> to vector<4x32xbf16>
    %213 = arith.truncf %176 : vector<32x512xf32> to vector<32x512xbf16>
    %cst_149 = arith.constant dense<0.000000e+00> : vector<4x512xf32>
    %214 = tpu.matmul %212, %213, %cst_149 {dimension_numbers = #tpu.dot_dimension_numbers<[1], [0], [0], [1], [0, 0, 1, 1], [], []>} : vector<4x32xbf16>, vector<32x512xbf16>, vector<4x512xf32> -> vector<4x512xf32>
    %215 = arith.addf %201, %214 : vector<4x512xf32>
    %c511_i32_150 = arith.constant 511 : i32
    %216 = tpu.dynamic_rotate %176 by %c511_i32_150 dim 1 : vector<32x512xf32>, i32 -> vector<32x512xf32>
    %c5_151 = arith.constant 5 : index
    %c0_152 = arith.constant 0 : index
    %217 = vector.load %arg4[%c5_151, %c0_152] : memref<9x512xf32, #tpu.memory_space<vmem>>, vector<1x512xf32>
    %218 = vector.broadcast %217 : vector<1x512xf32> to vector<32x512xf32>
    %219 = arith.mulf %216, %218 : vector<32x512xf32>
    %c5_153 = arith.constant 5 : index
    %c0_154 = arith.constant 0 : index
    %c0_155 = arith.constant 0 : index
    %220 = vector.load %arg9[%c5_153, %c0_154, %c0_155] : memref<9x4x32xbf16, #tpu.memory_space<vmem>>, vector<1x4x32xbf16>
    %221 = vector.shape_cast %220 : vector<1x4x32xbf16> to vector<4x32xbf16>
    %222 = arith.truncf %219 : vector<32x512xf32> to vector<32x512xbf16>
    %cst_156 = arith.constant dense<0.000000e+00> : vector<4x512xf32>
    %223 = tpu.matmul %221, %222, %cst_156 {dimension_numbers = #tpu.dot_dimension_numbers<[1], [0], [0], [1], [0, 0, 1, 1], [], []>} : vector<4x32xbf16>, vector<32x512xbf16>, vector<4x512xf32> -> vector<4x512xf32>
    %224 = arith.addf %210, %223 : vector<4x512xf32>
    %c497_i32_157 = arith.constant 497 : i32
    %225 = tpu.dynamic_rotate %176 by %c497_i32_157 dim 1 : vector<32x512xf32>, i32 -> vector<32x512xf32>
    %c6_158 = arith.constant 6 : index
    %c0_159 = arith.constant 0 : index
    %226 = vector.load %arg4[%c6_158, %c0_159] : memref<9x512xf32, #tpu.memory_space<vmem>>, vector<1x512xf32>
    %227 = vector.broadcast %226 : vector<1x512xf32> to vector<32x512xf32>
    %228 = arith.mulf %225, %227 : vector<32x512xf32>
    %c6_160 = arith.constant 6 : index
    %c0_161 = arith.constant 0 : index
    %c0_162 = arith.constant 0 : index
    %229 = vector.load %arg9[%c6_160, %c0_161, %c0_162] : memref<9x4x32xbf16, #tpu.memory_space<vmem>>, vector<1x4x32xbf16>
    %230 = vector.shape_cast %229 : vector<1x4x32xbf16> to vector<4x32xbf16>
    %231 = arith.truncf %228 : vector<32x512xf32> to vector<32x512xbf16>
    %cst_163 = arith.constant dense<0.000000e+00> : vector<4x512xf32>
    %232 = tpu.matmul %230, %231, %cst_163 {dimension_numbers = #tpu.dot_dimension_numbers<[1], [0], [0], [1], [0, 0, 1, 1], [], []>} : vector<4x32xbf16>, vector<32x512xbf16>, vector<4x512xf32> -> vector<4x512xf32>
    %233 = arith.addf %215, %232 : vector<4x512xf32>
    %c496_i32_164 = arith.constant 496 : i32
    %234 = tpu.dynamic_rotate %176 by %c496_i32_164 dim 1 : vector<32x512xf32>, i32 -> vector<32x512xf32>
    %c7_165 = arith.constant 7 : index
    %c0_166 = arith.constant 0 : index
    %235 = vector.load %arg4[%c7_165, %c0_166] : memref<9x512xf32, #tpu.memory_space<vmem>>, vector<1x512xf32>
    %236 = vector.broadcast %235 : vector<1x512xf32> to vector<32x512xf32>
    %237 = arith.mulf %234, %236 : vector<32x512xf32>
    %c7_167 = arith.constant 7 : index
    %c0_168 = arith.constant 0 : index
    %c0_169 = arith.constant 0 : index
    %238 = vector.load %arg9[%c7_167, %c0_168, %c0_169] : memref<9x4x32xbf16, #tpu.memory_space<vmem>>, vector<1x4x32xbf16>
    %239 = vector.shape_cast %238 : vector<1x4x32xbf16> to vector<4x32xbf16>
    %240 = arith.truncf %237 : vector<32x512xf32> to vector<32x512xbf16>
    %cst_170 = arith.constant dense<0.000000e+00> : vector<4x512xf32>
    %241 = tpu.matmul %239, %240, %cst_170 {dimension_numbers = #tpu.dot_dimension_numbers<[1], [0], [0], [1], [0, 0, 1, 1], [], []>} : vector<4x32xbf16>, vector<32x512xbf16>, vector<4x512xf32> -> vector<4x512xf32>
    %242 = arith.addf %224, %241 : vector<4x512xf32>
    %c495_i32_171 = arith.constant 495 : i32
    %243 = tpu.dynamic_rotate %176 by %c495_i32_171 dim 1 : vector<32x512xf32>, i32 -> vector<32x512xf32>
    %c8_172 = arith.constant 8 : index
    %c0_173 = arith.constant 0 : index
    %244 = vector.load %arg4[%c8_172, %c0_173] : memref<9x512xf32, #tpu.memory_space<vmem>>, vector<1x512xf32>
    %245 = vector.broadcast %244 : vector<1x512xf32> to vector<32x512xf32>
    %246 = arith.mulf %243, %245 : vector<32x512xf32>
    %c8_174 = arith.constant 8 : index
    %c0_175 = arith.constant 0 : index
    %c0_176 = arith.constant 0 : index
    %247 = vector.load %arg9[%c8_174, %c0_175, %c0_176] : memref<9x4x32xbf16, #tpu.memory_space<vmem>>, vector<1x4x32xbf16>
    %248 = vector.shape_cast %247 : vector<1x4x32xbf16> to vector<4x32xbf16>
    %249 = arith.truncf %246 : vector<32x512xf32> to vector<32x512xbf16>
    %cst_177 = arith.constant dense<0.000000e+00> : vector<4x512xf32>
    %250 = tpu.matmul %248, %249, %cst_177 {dimension_numbers = #tpu.dot_dimension_numbers<[1], [0], [0], [1], [0, 0, 1, 1], [], []>} : vector<4x32xbf16>, vector<32x512xbf16>, vector<4x512xf32> -> vector<4x512xf32>
    %251 = arith.addf %233, %250 : vector<4x512xf32>
    %c0_178 = arith.constant 0 : index
    %c0_179 = arith.constant 0 : index
    %252 = vector.load %arg10[%c0_178, %c0_179] : memref<4x1xf32, #tpu.memory_space<vmem>>, vector<4x1xf32>
    %253 = vector.broadcast %252 : vector<4x1xf32> to vector<4x512xf32>
    %254 = arith.addf %242, %253 : vector<4x512xf32>
    %255 = arith.addf %251, %254 : vector<4x512xf32>
    %256 = arith.subf %1, %255 : vector<4x512xf32>
    %257 = arith.mulf %256, %256 : vector<4x512xf32>
    %258 = vector.shape_cast %257 : vector<4x512xf32> to vector<1x4x512xf32>
    %cst_180 = arith.constant dense<0.000000e+00> : vector<1xf32>
    %259 = vector.multi_reduction <add>, %258, %cst_180 [1, 2] : vector<1x4x512xf32> to vector<1xf32>
    %260 = vector.shape_cast %259 : vector<1xf32> to vector<1x1x1xf32>
    %261 = vector.extract %260[0, 0, 0] : f32 from vector<1x1x1xf32>
    %c0_181 = arith.constant 0 : index
    %262 = memref.load %arg11[%c0_181] : memref<1xf32, #tpu.memory_space<smem>>
    memref.store %261, %arg11[%c0_181] : memref<1xf32, #tpu.memory_space<smem>>
    return
  }
}

</mosaic_0001>

<bundles_post_ra>
// kernel: tpu_custom_call.1
= control target key start
LH: loop header
LB: loop body
LE: loop exit
PB: predicated region body
PF: predicated region fallthrough
CT: control target
= control target key end

     0   :  { %16 = vsyncpa [#allocation3], 0  ;;  %s9249_s0 = inlined_call_operand.vmem [shape: f32[4,512], index: 0, kind: input, shape index: {}]   ;;  %s9250_s1 = inlined_call_operand.hbm [shape: f32[4,512], index: 1, kind: input, shape index: {}]   ;;  %s9251_s2 = inlined_call_operand.hbm [shape: f32[1,512], index: 2, kind: input, shape index: {}]   ;;  %s9252_s3 = inlined_call_operand.hbm [shape: f32[1,512], index: 3, kind: input, shape index: {}]   ;;  %s9253_s4 = inlined_call_operand.vmem [shape: f32[9,512], index: 4, kind: input, shape index: {}]   ;;  %s9254_s5 = inlined_call_operand.vmem [shape: bf16[9,32,4], index: 5, kind: input, shape index: {}]   ;;  %s9255_s6 = inlined_call_operand.vmem [shape: f32[32,1], index: 6, kind: input, shape index: {}]   ;;  %s9256_s7 = inlined_call_operand.vmem [shape: bf16[9,32,32], index: 7, kind: input, shape index: {}]   ;;  %s9257_s8 = inlined_call_operand.vmem [shape: f32[32,1], index: 8, kind: input, shape index: {}]   ;;  %s9258_s9 = inlined_call_operand.vmem [shape: bf16[9,4,32], index: 9, kind: input, shape index: {}]   ;;  %s9259_s10 = inlined_call_operand.vmem [shape: f32[4,1], index: 10, kind: input, shape index: {}]   ;;  %s9260_s11 = inlined_call_operand.hbm [shape: f32[1], index: 11, kind: output, shape index: {}]  }
   0x1   :  { %17 = vsyncpa [#allocation6], 0 }
   0x2   :  { %18 = vsyncpa [#allocation4], 0  ;;  %s5659_s17 = smov [#allocation5]   ;;  %s5660_s19 = smov [#allocation2]  }
   0x3   :  { %s37_s18 = sshll.u32 %s5659_s17, 4  ;;  %s27_s20 = sshll.u32 %s5660_s19, 4  ;;  %s38_s18 = int_to_ptr.vmem [resolvable:$true] %s37_s18  ;;  %s28_s20 = int_to_ptr.vmem [resolvable:$true] %s27_s20 }
   0x4   :  { %s5593_s21 = scalar_lea.vmem %s38_s18, 64  ;;  %p5598_p1 = scmp.lt.s32.totalorder %s38_s18, %s38_s18 }
   0x5   :  { %p5594_p0 = scmp.ne.s32.totalorder %s38_s18, %s5593_s21  ;;  %p5599_p2 = scmp.lt.s32.totalorder %s5593_s21, %s5593_s21 }
   0x7   :  { %p5600_p3 = por %p5599_p2, %p5598_p1 }
   0x9   :  { %p5601_p4 = pnand %p5600_p3, %p5594_p0 }
   0xb   :  { %5604 = shalt.err (!%p5601_p4)
}
   0xc   :  { %40 = dma.hbm_to_vmem [thread:$0]  %s9251_s2, 64, %s38_s18, [#allocation6]  }
   0xd   :  { %s5613_s24 = scalar_lea.vmem %s28_s20, 256  ;;  %p5618_p6 = scmp.lt.s32.totalorder %s28_s20, %s28_s20 }
   0xe   :  { %p5614_p5 = scmp.ne.s32.totalorder %s28_s20, %s5613_s24  ;;  %p5619_p7 = scmp.lt.s32.totalorder %s5613_s24, %s5613_s24 }
  0x10   :  { %p5620_p8 = por %p5619_p7, %p5618_p6 }
  0x12   :  { %p5621_p9 = pnand %p5620_p8, %p5614_p5 }
  0x14   :  { %5624 = shalt.err (!%p5621_p9)
}
  0x15   :  { %30 = dma.hbm_to_vmem [thread:$0]  %s9250_s1, 256, %s28_s20, [#allocation3]  }
  0x16   :  { %s5661_s27 = smov [#allocation7]  }
  0x17   :  { %s47_s28 = sshll.u32 %s5661_s27, 4  ;;  %s48_s28 = int_to_ptr.vmem [resolvable:$true] %s47_s28 }
  0x18   :  { %s5633_s29 = scalar_lea.vmem %s48_s28, 64  ;;  %p5638_p11 = scmp.lt.s32.totalorder %s48_s28, %s48_s28 }
  0x19   :  { %p5634_p10 = scmp.ne.s32.totalorder %s48_s28, %s5633_s29  ;;  %p5639_p12 = scmp.lt.s32.totalorder %s5633_s29, %s5633_s29 }
  0x1b   :  { %p5640_p13 = por %p5639_p12, %p5638_p11 }
  0x1d   :  { %p5641_p0 = pnand %p5640_p13, %p5634_p10 }
  0x1f   :  { %5644 = shalt.err (!%p5641_p0)
}
  0x20   :  { %50 = dma.hbm_to_vmem [thread:$0]  %s9252_s3, 64, %s48_s28, [#allocation6]  }
  0x21   :  { %5653 = dma.done.wait [#allocation3], 256  }
  0x22   :  { %5654 = vsyncadd [#allocation3], 4294967040 }
  0x23   :  { %5655 = dma.done.wait [#allocation6], 128  }
  0x24   :  { %5656 = vsyncadd [#allocation6], 4294967168  ;;  %v81_v0 = vlaneseq  ;;  %v76_v6 = vld [vmem:[%s9249_s0 + $0x8] sm:$0xff]  ;;  %v79_v8 = vld [vmem:[#allocation5] sm:$0xf]  ;;  %v9261_v36 = vmov 0  }
  0x25   :  { %v78_v7 = vld [vmem:[#allocation2 + $0x8] sm:$0xff]  ;;  %v104_v10 = vcombine.high %v76_v6, %v76_v6  ;;  %v111_v11 = vld [vmem:[#allocation7] sm:$0xf]  ;;  %v75_v13 = vld [vmem:[%s9249_s0] sm:$0xff]  ;;  %s5662_s0 = smov 15   ;;  %356 = vmatprep.mubr.bf16.mxu0 %v9261_v36  ;;  %409 = vmatprep.mubr.bf16.mxu1 %v9261_v36  ;;  %s5664_s14 = smov 17  }
  0x26   :  { %v82_v1 = vshrl.u32 %v81_v0, 7  ;;  %v136_v12 = vcombine.high %v78_v7, %v78_v7  ;;  %v77_v14 = vld [vmem:[#allocation2] sm:$0xff]  ;;  %v103_v23 = vcombine.high %v75_v13, %v75_v13  ;;  %5542 = vset.pattern.permute.xlu1 %v9261_v36  ;;  %5541 = vset.pattern.permute.xlu0 %v9261_v36  ;;  %s5665_s15 = smov 1   ;;  %s5666_s16 = smov 16   ;;  %v5841_v37 = vand.u32 127, %v81_v0 }
  0x27   :  { %v135_v30 = vcombine.high %v77_v14, %v77_v14  ;;  %s5667_s17 = smov 127   ;;  %s5668_s18 = smov 113   ;;  %v5308_v38 = vld [vmem:[%s9253_s4 + $0x2] ss:$8 sm:$0xf]  ;;  %vm311_vm2 = vcmask 1041408  }
  0x28   :  { %v5742_v2 = vsub.s32 3, %v82_v1  ;;  %v5744_v3 = vsub.s32 0, %v82_v1  ;;  %v5746_v4 = vsub.s32 2, %v82_v1  ;;  %v5748_v5 = vsub.s32 1, %v82_v1  ;;  %s5669_s19 = smov 112   ;;  %s5670_s20 = smov 111  }
  0x29   :  { %9479 = vst [vmem:[#allocation12_spill] sm:$0xff] %v5841_v37  ;;  %vm253_vm0 = vcmp.lt.s32.totalorder %v5841_v37, 15  ;;  %v162_v47 = vld [vmem:[%s9253_s4] ss:$8 sm:$0xf]  ;;  %vm157_vm1 = vcmp.lt.s32.totalorder %v5841_v37, 17 }
  0x2a   :  { %v96_v9 = vrot.slane %v79_v8, %v5742_v2  ;;  %v84_v15 = vrot.slane %v79_v8, %v5744_v3  ;;  %v128_v16 = vrot.slane %v111_v11, %v5742_v2  ;;  %v116_v17 = vrot.slane %v111_v11, %v5744_v3  ;;  %s5671_s29 = smov [#allocation8]  }
  0x2b   :  { %v92_v18 = vrot.slane %v79_v8, %v5746_v4  ;;  %v124_v19 = vrot.slane %v111_v11, %v5746_v4  ;;  %v88_v22 = vrot.slane %v79_v8, %v5748_v5  ;;  %v120_v29 = vrot.slane %v111_v11, %v5748_v5  ;;  %v5329_v11 = vld [vmem:[%s9253_s4 + $0x3] ss:$8 sm:$0xf] }
  0x2c   :  { %v110_v20 = vmul.f32 %v104_v10, %v96_v9  ;;  %v107_v21 = vmul.f32 %v84_v15, %v75_v13  ;;  %v142_v24 = vmul.f32 %v136_v12, %v128_v16  ;;  %v139_v25 = vmul.f32 %v116_v17, %v77_v14  ;;  %v5547_v9 = vld [vmem:[%s9254_s5 + $0x20] sm:$0xff]  }
  0x2d   :  { %v109_v26 = vmul.f32 %v92_v18, %v76_v6  ;;  %v141_v27 = vmul.f32 %v124_v19, %v78_v7  ;;  %v108_v28 = vmul.f32 %v103_v23, %v88_v22  ;;  %v140_v33 = vmul.f32 %v135_v30, %v120_v29 }
  0x2e   :  { %v5764_v31 = vadd.f32 %v142_v24, %v110_v20  ;;  %v5766_v32 = vadd.f32 %v139_v25, %v107_v21  ;;  %v5848_v39 = vrot.slane %v5308_v38, %v5744_v3  ;;  %v5853_v43 = vrot.slane %v5308_v38, %v5742_v2 }
  0x2f   :  { %v5772_v34 = vadd.f32 %v141_v27, %v109_v26  ;;  %v5774_v35 = vadd.f32 %v140_v33, %v108_v28  ;;  %v5856_v44 = vrot.slane %v5308_v38, %v5748_v5  ;;  %v5860_v46 = vrot.slane %v5308_v38, %v5746_v4  ;;  %v5548_v33 = vld [vmem:[%s9254_s5 + $0x28] sm:$0xff]  }
  0x30   :  { %251 = vrot.lane.b32.xlu1 %v5764_v31, %s5662_s0  ;;  %245 = vrot.lane.b32.xlu0 %v5766_v32, %s5662_s0  ;;  %9480 = vst [vmem:[#allocation13_spill] sm:$0xff] %v5848_v39  ;;  %9481 = vst [vmem:[#allocation14_spill] sm:$0xff] %v5853_v43  ;;  %v5873_v53 = vrot.slane %v162_v47, %v5748_v5  ;;  %v5881_v0 = vrot.slane %v162_v47, %v5744_v3  ;;  %vm304_vm3 = vcmask 31744   ;;  %vm572_vm4 = vcmp.lt.s32.totalorder %v5841_v37, 1 }
  0x31   :  { %9482 = vst [vmem:[#allocation15_spill] sm:$0xff] %v5856_v44  ;;  %9483 = vst [vmem:[#allocation16_spill] sm:$0xff] %v5860_v46  ;;  %v5884_v1 = vrot.slane %v162_v47, %v5746_v4  ;;  %v5895_v10 = vrot.slane %v162_v47, %v5742_v2  ;;  %v5907_v18 = vrot.slane %v5329_v11, %v5748_v5  ;;  %vm204_vm5 = vcmp.lt.s32.totalorder %v5841_v37, 16 }
  0x32   :  { %9484 = vst [vmem:[#allocation17_spill] sm:$0xff] %v5873_v53  ;;  %9485 = vst [vmem:[#allocation18_spill] sm:$0xff] %v5881_v0  ;;  %v5921_v28 = vrot.slane %v5329_v11, %v5744_v3  ;;  %v5924_v29 = vrot.slane %v5329_v11, %v5746_v4  ;;  %vm1048_vm6 = vcmp.lt.s32.totalorder %v5841_v37, 127  ;;  %vm1247_vm7 = vcmp.lt.s32.totalorder %v5841_v37, 113 }
  0x33   :  { %9486 = vst [vmem:[#allocation19_spill] sm:$0xff] %v5884_v1  ;;  %9487 = vst [vmem:[#allocation20_spill] sm:$0xff] %v5895_v10  ;;  %vm1446_vm8 = vcmp.lt.s32.totalorder %v5841_v37, 112  ;;  %vm1645_vm9 = vcmp.lt.s32.totalorder %v5841_v37, 111 }
  0x34   :  { %249 = vrot.lane.b32.xlu1 %v5772_v34, %s5662_s0  ;;  %247 = vrot.lane.b32.xlu0 %v5774_v35, %s5662_s0  ;;  %9488 = vst [vmem:[#allocation21_spill] sm:$0xff] %v5907_v18  ;;  %9489 = vst [vmem:[#allocation22_spill] sm:$0xff] %v5921_v28 }
  0x35   :  { %9490 = vst [vmem:[#allocation23_spill] sm:$0xff] %v5924_v29 }
  0x38   :  { %147 = vrot.lane.b32.xlu0 %v5766_v32, %s5664_s14  ;;  %149 = vrot.lane.b32.xlu1 %v5774_v35, %s5664_s14 }
  0x3c   :  { %153 = vrot.lane.b32.xlu0 %v5764_v31, %s5664_s14  ;;  %151 = vrot.lane.b32.xlu1 %v5772_v34, %s5664_s14 }
  0x40   :  { %564 = vrot.lane.b32.xlu0 %v5766_v32, %s5665_s15  ;;  %566 = vrot.lane.b32.xlu1 %v5774_v35, %s5665_s15 }
  0x44   :  { %570 = vrot.lane.b32.xlu0 %v5764_v31, %s5665_s15  ;;  %568 = vrot.lane.b32.xlu1 %v5772_v34, %s5665_s15 }
  0x48   :  { %196 = vrot.lane.b32.xlu0 %v5766_v32, %s5666_s16  ;;  %198 = vrot.lane.b32.xlu1 %v5774_v35, %s5666_s16 }
  0x4c   :  { %202 = vrot.lane.b32.xlu0 %v5764_v31, %s5666_s16  ;;  %200 = vrot.lane.b32.xlu1 %v5772_v34, %s5666_s16 }
  0x50   :  { %1042 = vrot.lane.b32.xlu1 %v5774_v35, %s5667_s17  ;;  %1040 = vrot.lane.b32.xlu0 %v5766_v32, %s5667_s17 }
  0x54   :  { %1046 = vrot.lane.b32.xlu1 %v5764_v31, %s5667_s17  ;;  %1044 = vrot.lane.b32.xlu0 %v5772_v34, %s5667_s17 }
  0x58   :  { %1241 = vrot.lane.b32.xlu1 %v5774_v35, %s5668_s18  ;;  %1239 = vrot.lane.b32.xlu0 %v5766_v32, %s5668_s18 }
  0x5c   :  { %1245 = vrot.lane.b32.xlu1 %v5764_v31, %s5668_s18  ;;  %1243 = vrot.lane.b32.xlu0 %v5772_v34, %s5668_s18 }
  0x60   :  { %1440 = vrot.lane.b32.xlu1 %v5774_v35, %s5669_s19  ;;  %1438 = vrot.lane.b32.xlu0 %v5766_v32, %s5669_s19 }
  0x64   :  { %1444 = vrot.lane.b32.xlu1 %v5764_v31, %s5669_s19  ;;  %1442 = vrot.lane.b32.xlu0 %v5772_v34, %s5669_s19 }
  0x68   :  { %1639 = vrot.lane.b32.xlu1 %v5774_v35, %s5670_s20  ;;  %1637 = vrot.lane.b32.xlu0 %v5766_v32, %s5670_s20 }
  0x6c   :  { %1643 = vrot.lane.b32.xlu1 %v5764_v31, %s5670_s20  ;;  %1641 = vrot.lane.b32.xlu0 %v5772_v34, %s5670_s20 }
  0xa2   :  { %v252_v40 = vpop.permute.xlu1 %251  ;;  %v246_v41 = vpop.permute.xlu0 %245 }
  0xa3   :  { %v257_v42 = vsel %vm253_vm0, %v252_v40, %v246_v41 }
  0xa4   :  { %v281_v45 = vmul.f32 %v5848_v39, %v257_v42  ;;  %v5303_v42 = vld [vmem:[%s9253_s4 + $0x1] ss:$8 sm:$0xf] }
  0xa6   :  { %v250_v48 = vpop.permute.xlu1 %249  ;;  %v248_v49 = vpop.permute.xlu0 %247  ;;  %v290_v56 = vpack.c.bf16 %v281_v45, %v281_v45 }
  0xa7   :  { %v255_v50 = vsel %vm253_vm0, %v248_v49, %v250_v48  ;;  %v254_v51 = vsel %vm253_vm0, %v250_v48, %v252_v40  ;;  %v256_v52 = vsel %vm253_vm0, %v246_v41, %v248_v49  ;;  %v5934_v41 = vrot.slane %v5329_v11, %v5742_v2 }
  0xa8   :  { %v284_v54 = vmul.f32 %v5853_v43, %v254_v51  ;;  %v282_v55 = vmul.f32 %v5856_v44, %v256_v52  ;;  %v283_v57 = vmul.f32 %v5860_v46, %v255_v50  ;;  %v313_v6 = vsel %vm311_vm2, %v290_v56, 0 }
  0xa9   :  { %9491 = vst [vmem:[#allocation24_spill] sm:$0xff] %v5934_v41  ;;  %v5946_v52 = vrot.slane %v5303_v42, %v5748_v5  ;;  %v5974_v11 = vrot.slane %v5303_v42, %v5742_v2 }
  0xaa   :  { %v148_v58 = vpop.permute.xlu0 %147  ;;  %v293_v59 = vpack.c.bf16 %v284_v54, %v284_v54  ;;  %v291_v60 = vpack.c.bf16 %v282_v55, %v282_v55  ;;  %v292_v61 = vpack.c.bf16 %v283_v57, %v283_v57  ;;  %v150_v62 = vpop.permute.xlu1 %149  ;;  %v1839_v57 = vld [vmem:[%s9255_s6 + $0x18] sm:$0xff] }
  0xab   :  { %v160_v63 = vsel %vm157_vm1, %v148_v58, %v150_v62  ;;  %9492 = vst [vmem:[#allocation25_spill] sm:$0xff] %v5946_v52  ;;  %1857 = vperm.xlu1 %5542, %v1839_v57   ;;  %9493 = vst [vmem:[#allocation26_spill] sm:$0xff] %v5974_v11 }
  0xac   :  { %5318 = vmatprep.subr.msk.bf16.mxu1 %vm311_vm2, %v293_v59  ;;  %5315 = vmatprep.subr.msk.bf16.mxu0 %vm311_vm2, %v291_v60  ;;  %v319_v7 = vsel %vm311_vm2, %v292_v61, 0  ;;  %v185_v8 = vmul.f32 %v5873_v53, %v160_v63 }
  0xad   :  { %339 = vmatpush1.bf16.msra.mxu0 %v313_v6  ;;  %392 = vmatpush1.bf16.msra.mxu1 %v319_v7  ;;  %v1836_v7 = vld [vmem:[%s9255_s6] sm:$0xff] }
  0xae   :  { %v193_v12 = vpack.c.bf16 %v185_v8, %v185_v8  ;;  %v154_v13 = vpop.permute.xlu0 %153  ;;  %v152_v14 = vpop.permute.xlu1 %151  ;;  %v5549_v8 = vld [vmem:[%s9254_s5] sm:$0xff]  }
  0xaf   :  { %v161_v15 = vsel %vm157_vm1, %v154_v13, %v148_v58  ;;  %v158_v16 = vsel %vm157_vm1, %v152_v14, %v154_v13  ;;  %v159_v17 = vsel %vm157_vm1, %v150_v62, %v152_v14  ;;  %v1838_v58 = vld [vmem:[%s9255_s6 + $0x10] sm:$0xff]  ;;  %1842 = vperm.xlu1 %5542, %v1836_v7  }
  0xb0   :  { %v184_v19 = vmul.f32 %v5881_v0, %v161_v15  ;;  %5316 = vmatmul.mubr.msk.bf16.vlgmr.msra.gmra.mxu0 %vm304_vm3, %v5547_v9  ;;  %5319 = vmatmul.mubr.msk.bf16.vlgmr.msra.gmra.mxu1 %vm304_vm3, %v5547_v9  ;;  %v186_v20 = vmul.f32 %v5884_v1, %v159_v17  ;;  %v187_v21 = vmul.f32 %v5895_v10, %v158_v16 }
  0xb1   :  { %5323 = vmatprep.subr.msk.bf16.mxu0 %vm311_vm2, %v193_v12  ;;  %366 = vmatprep.mubr.bf16.mxu0 %v9261_v36  ;;  %v1837_v12 = vld [vmem:[%s9255_s6 + $0x8] sm:$0xff] }
  0xb2   :  { %v192_v22 = vpack.c.bf16 %v184_v19, %v184_v19  ;;  %v194_v23 = vpack.c.bf16 %v186_v20, %v186_v20  ;;  %v195_v24 = vpack.c.bf16 %v187_v21, %v187_v21  ;;  %419 = vmatprep.mubr.bf16.mxu1 %v9261_v36  ;;  %v565_v25 = vpop.permute.xlu0 %564  ;;  %v567_v26 = vpop.permute.xlu1 %566  ;;  %1852 = vperm.xlu0 %5541, %v1838_v58  }
  0xb3   :  { %v575_v27 = vsel %vm572_vm4, %v565_v25, %v567_v26  ;;  %v5989_v21 = vrot.slane %v5303_v42, %v5744_v3 }
  0xb4   :  { %v447_v30 = vsel %vm311_vm2, %v192_v22, 0  ;;  %5326 = vmatprep.subr.msk.bf16.mxu1 %vm311_vm2, %v195_v24  ;;  %v453_v38 = vsel %vm311_vm2, %v194_v23, 0  ;;  %v601_v40 = vmul.f32 %v5907_v18, %v575_v27  ;;  %v5994_v24 = vrot.slane %v5303_v42, %v5746_v4 }
  0xb5   :  { %473 = vmatpush1.bf16.msra.mxu0 %v447_v30  ;;  %526 = vmatpush1.bf16.msra.mxu1 %v453_v38  ;;  %9494 = vst [vmem:[#allocation27_spill] sm:$0xff] %v5989_v21 }
  0xb6   :  { %v610_v45 = vpack.c.bf16 %v601_v40, %v601_v40  ;;  %v571_v47 = vpop.permute.xlu0 %570  ;;  %v569_v48 = vpop.permute.xlu1 %568  ;;  %1847 = vperm.xlu0 %5541, %v1837_v12   ;;  %9495 = vst [vmem:[#allocation28_spill] sm:$0xff] %v5994_v24  ;;  %v5551_v40 = vld [vmem:[%s9254_s5 + $0x30] sm:$0xff]  }
  0xb7   :  { %v576_v49 = vsel %vm572_vm4, %v571_v47, %v565_v25  ;;  %v573_v50 = vsel %vm572_vm4, %v569_v48, %v571_v47  ;;  %v574_v51 = vsel %vm572_vm4, %v567_v26, %v569_v48  ;;  %v5550_v25 = vld [vmem:[%s9254_s5 + $0x8] sm:$0xff]   ;;  %v887_v47 = vpack.c.bf16 %v5774_v35, %v5774_v35  ;;  %v5552_v35 = vld [vmem:[%s9254_s5 + $0x38] sm:$0xff]  }
  0xb8   :  { %5317 = vmatmul.mubr.msk.bf16.gmra.mxu0 %vm304_vm3, %v5548_v33  ;;  %5320 = vmatmul.mubr.msk.bf16.gmra.mxu1 %vm304_vm3, %v5548_v33  ;;  %v600_v54 = vmul.f32 %v5921_v28, %v576_v49  ;;  %v602_v55 = vmul.f32 %v5924_v29, %v574_v51  ;;  %v603_v56 = vmul.f32 %v5934_v41, %v573_v50 }
  0xb9   :  { %490 = vmatprep.mubr.bf16.mxu0 %v9261_v36  ;;  %543 = vmatprep.mubr.bf16.mxu1 %v9261_v36  ;;  %v889_v50 = vpack.c.bf16 %v5764_v31, %v5764_v31  ;;  %v5362_v31 = vld [vmem:[%s9253_s4 + $0x5] ss:$8 sm:$0xf] }
  0xba   :  { %v609_v59 = vpack.c.bf16 %v600_v54, %v600_v54  ;;  %v612_v60 = vpack.c.bf16 %v603_v56, %v603_v56  ;;  %5336 = vmatprep.subr.msk.bf16.mxu0 %vm311_vm2, %v610_v45  ;;  %v197_v61 = vpop.permute.xlu0 %196  ;;  %v199_v62 = vpop.permute.xlu1 %198  ;;  %v611_v63 = vpack.c.bf16 %v602_v55, %v602_v55  ;;  %v6032_v55 = vrot.slane %v5362_v31, %v5742_v2 }
  0xbb   :  { %v207_v6 = vsel %vm204_vm5, %v197_v61, %v199_v62  ;;  %v6035_v56 = vrot.slane %v5362_v31, %v5748_v5 }
  0xbc   :  { %5339 = vmatprep.subr.msk.bf16.mxu1 %vm311_vm2, %v612_v60  ;;  %v233_v9 = vmul.f32 %v5946_v52, %v207_v6  ;;  %v630_v13 = vsel %vm311_vm2, %v609_v59, 0  ;;  %v636_v16 = vsel %vm311_vm2, %v611_v63, 0  ;;  %9496 = vst [vmem:[#allocation29_spill] sm:$0xff] %v6032_v55  ;;  %v886_v59 = vpack.c.bf16 %v5766_v32, %v5766_v32  ;;  %v5553_v63 = vld [vmem:[%s9254_s5 + $0x10] sm:$0xff]  }
  0xbd   :  { %9497 = vst [vmem:[#allocation30_spill] sm:$0xff] %v6035_v56  ;;  %v888_v60 = vpack.c.bf16 %v5772_v34, %v5772_v34  ;;  %v6061_v32 = vrot.slane %v5362_v31, %v5744_v3 }
  0xbe   :  { %v203_v14 = vpop.permute.xlu0 %202  ;;  %v201_v15 = vpop.permute.xlu1 %200  ;;  %v242_v17 = vpack.c.bf16 %v233_v9, %v233_v9  ;;  %v907_v6 = vsel %vm311_vm2, %v886_v59, 0 }
  0xbf   :  { %v205_v19 = vsel %vm204_vm5, %v201_v15, %v203_v14  ;;  %v208_v23 = vsel %vm204_vm5, %v203_v14, %v197_v61  ;;  %v206_v26 = vsel %vm204_vm5, %v199_v62, %v201_v15  ;;  %v913_v7 = vsel %vm311_vm2, %v888_v60, 0  ;;  %9498 = vst [vmem:[#allocation31_spill] sm:$0xff] %v6061_v32  ;;  %v5554_v15 = vld [vmem:[%s9254_s5 + $0x18] sm:$0xff]  }
  0xc0   :  { %5324 = vmatmul.mubr.msk.bf16.vlgmr.msra.gmra.mxu0 %vm304_vm3, %v5549_v8  ;;  %5327 = vmatmul.mubr.msk.bf16.vlgmr.msra.gmra.mxu1 %vm304_vm3, %v5549_v8  ;;  %v235_v20 = vmul.f32 %v5974_v11, %v205_v19  ;;  %v232_v27 = vmul.f32 %v5989_v21, %v208_v23  ;;  %v234_v30 = vmul.f32 %v5994_v24, %v206_v26  ;;  %v5388_v60 = vld [vmem:[%s9253_s4 + $0x7] ss:$8 sm:$0xf] }
  0xc1   :  { %656 = vmatpush1.bf16.msra.mxu0 %v630_v13  ;;  %500 = vmatprep.mubr.bf16.mxu0 %v9261_v36  ;;  %v6066_v14 = vrot.slane %v5362_v31, %v5746_v4 }
  0xc2   :  { %553 = vmatprep.mubr.bf16.mxu1 %v9261_v36  ;;  %709 = vmatpush1.bf16.msra.mxu1 %v636_v16  ;;  %v244_v22 = vpack.c.bf16 %v235_v20, %v235_v20  ;;  %v241_v33 = vpack.c.bf16 %v232_v27, %v232_v27  ;;  %v243_v38 = vpack.c.bf16 %v234_v30, %v234_v30  ;;  %v1043_v48 = vpop.permute.xlu1 %1042  ;;  %v1041_v49 = vpop.permute.xlu0 %1040 }
  0xc3   :  { %5344 = vmatprep.subr.msk.bf16.mxu0 %vm311_vm2, %v242_v17  ;;  %v1051_v34 = vsel %vm1048_vm6, %v1041_v49, %v1043_v48  ;;  %9499 = vst [vmem:[#allocation32_spill] sm:$0xff] %v6066_v14  ;;  %v5375_v17 = vld [vmem:[%s9253_s4 + $0x6] ss:$8 sm:$0xf] }
  0xc4   :  { %5347 = vmatprep.subr.msk.bf16.mxu1 %vm311_vm2, %v244_v22  ;;  %v764_v42 = vsel %vm311_vm2, %v241_v33, 0  ;;  %v770_v45 = vsel %vm311_vm2, %v243_v38, 0  ;;  %v1076_v22 = vmul.f32 %v6061_v32, %v1051_v34  ;;  %v6085_v26 = vrot.slane %v5375_v17, %v5748_v5 }
  0xc6   :  { %v1047_v51 = vpop.permute.xlu1 %1046  ;;  %v1045_v54 = vpop.permute.xlu0 %1044  ;;  %9501 = vst [vmem:[#allocation34_spill] sm:$0xff] %v6085_v26  ;;  %v1085_v33 = vpack.c.bf16 %v1076_v22, %v1076_v22 }
  0xc7   :  { %v1052_v57 = vsel %vm1048_vm6, %v1047_v51, %v1041_v49  ;;  %v1050_v58 = vsel %vm1048_vm6, %v1043_v48, %v1045_v54  ;;  %v1049_v16 = vsel %vm1048_vm6, %v1045_v54, %v1047_v51  ;;  %v6107_v51 = vrot.slane %v5375_v17, %v5744_v3 }
  0xc8   :  { %5325 = vmatmul.mubr.msk.bf16.gmra.mxu0 %vm304_vm3, %v5550_v25  ;;  %5328 = vmatmul.mubr.msk.bf16.gmra.mxu1 %vm304_vm3, %v5550_v25  ;;  %v1079_v61 = vmul.f32 %v6032_v55, %v1052_v57  ;;  %v1077_v62 = vmul.f32 %v6035_v56, %v1050_v58  ;;  %v1078_v23 = vmul.f32 %v6066_v14, %v1049_v16  ;;  %v5556_v58 = vld [vmem:[%s9254_s5 + $0x48] sm:$0xff]  }
  0xc9   :  { %673 = vmatprep.mubr.bf16.mxu0 %v9261_v36  ;;  %726 = vmatprep.mubr.bf16.mxu1 %v9261_v36  ;;  %v6082_v25 = vrot.slane %v5375_v17, %v5742_v2  ;;  %9502 = vst [vmem:[#allocation35_spill] sm:$0xff] %v6107_v51  ;;  %v6112_v57 = vrot.slane %v5375_v17, %v5746_v4  ;;  %v5557_v17 = vld [vmem:[%s9254_s5 + $0x50] sm:$0xff]  }
  0xca   :  { %v1088_v8 = vpack.c.bf16 %v1079_v61, %v1079_v61  ;;  %v1086_v9 = vpack.c.bf16 %v1077_v62, %v1077_v62  ;;  %v1242_v12 = vpop.permute.xlu1 %1241  ;;  %v1240_v13 = vpop.permute.xlu0 %1239  ;;  %v1087_v38 = vpack.c.bf16 %v1078_v23, %v1078_v23 }
  0xcb   :  { %9500 = vst [vmem:[#allocation33_spill] sm:$0xff] %v6082_v25  ;;  %v1250_v54 = vsel %vm1247_vm7, %v1240_v13, %v1242_v12  ;;  %9503 = vst [vmem:[#allocation36_spill] sm:$0xff] %v6112_v57 }
  0xcc   :  { %v1112_v48 = vsel %vm311_vm2, %v1087_v38, 0 }
  0xce   :  { %v1246_v19 = vpop.permute.xlu1 %1245  ;;  %v1244_v20 = vpop.permute.xlu0 %1243 }
  0xcf   :  { %v1251_v27 = vsel %vm1247_vm7, %v1246_v19, %v1240_v13  ;;  %v1249_v30 = vsel %vm1247_vm7, %v1242_v12, %v1244_v20  ;;  %v1248_v59 = vsel %vm1247_vm7, %v1244_v20, %v1246_v19 }
  0xd0   :  { %5337 = vmatmul.mubr.msk.bf16.vlgmr.msra.gmra.mxu0 %vm304_vm3, %v5551_v40  ;;  %5340 = vmatmul.mubr.msk.bf16.vlgmr.msra.gmra.mxu1 %vm304_vm3, %v5551_v40  ;;  %v1278_v40 = vmul.f32 %v6082_v25, %v1251_v27 }
  0xd1   :  { %790 = vmatpush1.bf16.msra.mxu0 %v764_v42  ;;  %683 = vmatprep.mubr.bf16.mxu0 %v9261_v36  ;;  %v1276_v42 = vmul.f32 %v6085_v26, %v1249_v30 }
  0xd2   :  { %736 = vmatprep.mubr.bf16.mxu1 %v9261_v36  ;;  %843 = vmatpush1.bf16.msra.mxu1 %v770_v45  ;;  %v5555_v45 = vld [vmem:[%s9254_s5 + $0x40] sm:$0xff]   ;;  %v1287_v49 = vpack.c.bf16 %v1278_v40, %v1278_v40  ;;  %v1439_v31 = vpop.permute.xlu0 %1438  ;;  %v6158_v40 = vrot.slane %v5388_v60, %v5746_v4 }
  0xd3   :  { %5356 = vmatprep.subr.msk.bf16.mxu0 %vm311_vm2, %v887_v47  ;;  %5359 = vmatprep.subr.msk.bf16.mxu1 %vm311_vm2, %v889_v50  ;;  %v1106_v47 = vsel %vm311_vm2, %v1085_v33, 0  ;;  %v1285_v50 = vpack.c.bf16 %v1276_v42, %v1276_v42  ;;  %v6153_v33 = vrot.slane %v5388_v60, %v5744_v3  ;;  %v5558_v42 = vld [vmem:[%s9254_s5 + $0x58] sm:$0xff]  }
  0xd4   :  { %9507 = vst [vmem:[#allocation40_spill] sm:$0xff] %v6158_v40 }
  0xd5   :  { %9506 = vst [vmem:[#allocation39_spill] sm:$0xff] %v6153_v33 }
  0xd6   :  { %v1443_v62 = vpop.permute.xlu0 %1442 }
  0xd8   :  { %5338 = vmatmul.mubr.msk.bf16.gmra.mxu0 %vm304_vm3, %v5552_v35  ;;  %5341 = vmatmul.mubr.msk.bf16.gmra.mxu1 %vm304_vm3, %v5552_v35  ;;  %v1441_v35 = vpop.permute.xlu1 %1440 }
  0xd9   :  { %807 = vmatprep.mubr.bf16.mxu0 %v9261_v36  ;;  %860 = vmatprep.mubr.bf16.mxu1 %v9261_v36  ;;  %v1448_v12 = vsel %vm1446_vm8, %v1441_v35, %v1443_v62  ;;  %v1449_v38 = vsel %vm1446_vm8, %v1439_v31, %v1441_v35 }
  0xda   :  { %v1638_v30 = vpop.permute.xlu0 %1637 }
  0xdc   :  { %v1445_v61 = vpop.permute.xlu1 %1444 }
  0xe0   :  { %5345 = vmatmul.mubr.msk.bf16.vlgmr.msra.gmra.mxu0 %vm304_vm3, %v5553_v63  ;;  %5348 = vmatmul.mubr.msk.bf16.vlgmr.msra.gmra.mxu1 %vm304_vm3, %v5553_v63  ;;  %v1275_v63 = vmul.f32 %v6107_v51, %v1250_v54  ;;  %v1640_v27 = vpop.permute.xlu1 %1639 }
  0xe1   :  { %817 = vmatprep.mubr.bf16.mxu0 %v9261_v36  ;;  %870 = vmatprep.mubr.bf16.mxu1 %v9261_v36 }
  0xe2   :  { %933 = vmatpush1.bf16.msra.mxu0 %v907_v6  ;;  %986 = vmatpush1.bf16.msra.mxu1 %v913_v7  ;;  %v1277_v6 = vmul.f32 %v6112_v57, %v1248_v59  ;;  %v6128_v7 = vrot.slane %v5388_v60, %v5742_v2  ;;  %v1284_v13 = vpack.c.bf16 %v1275_v63, %v1275_v63 }
  0xe3   :  { %5369 = vmatprep.subr.msk.bf16.mxu0 %vm311_vm2, %v1086_v9  ;;  %5372 = vmatprep.subr.msk.bf16.mxu1 %vm311_vm2, %v1088_v8  ;;  %v6131_v8 = vrot.slane %v5388_v60, %v5748_v5  ;;  %v1450_v9 = vsel %vm1446_vm8, %v1445_v61, %v1439_v31 }
  0xe4   :  { %9504 = vst [vmem:[#allocation37_spill] sm:$0xff] %v6128_v7  ;;  %v1286_v34 = vpack.c.bf16 %v1277_v6, %v1277_v6  ;;  %v1305_v19 = vsel %vm311_vm2, %v1284_v13, 0 }
  0xe5   :  { %9505 = vst [vmem:[#allocation38_spill] sm:$0xff] %v6131_v8  ;;  %v1475_v16 = vmul.f32 %v6131_v8, %v1448_v12 }
  0xe6   :  { %v1311_v20 = vsel %vm311_vm2, %v1286_v34, 0  ;;  %v1648_v34 = vsel %vm1645_vm9, %v1638_v30, %v1640_v27 }
  0xe7   :  { %v1484_v23 = vpack.c.bf16 %v1475_v16, %v1475_v16  ;;  %v5560_v16 = vld [vmem:[%s9254_s5 + $0x68] sm:$0xff]  }
  0xe8   :  { %5346 = vmatmul.mubr.msk.bf16.gmra.mxu0 %vm304_vm3, %v5554_v15  ;;  %5349 = vmatmul.mubr.msk.bf16.gmra.mxu1 %vm304_vm3, %v5554_v15  ;;  %v1477_v15 = vmul.f32 %v6128_v7, %v1450_v9 }
  0xe9   :  { %950 = vmatprep.mubr.bf16.mxu0 %v9261_v36  ;;  %1003 = vmatprep.mubr.bf16.mxu1 %v9261_v36 }
  0xea   :  { %v1486_v22 = vpack.c.bf16 %v1477_v15, %v1477_v15 }
  0xf0   :  { %5357 = vmatmul.mubr.msk.bf16.vlgmr.msra.gmra.mxu0 %vm304_vm3, %v5555_v45  ;;  %5360 = vmatmul.mubr.msk.bf16.vlgmr.msra.gmra.mxu1 %vm304_vm3, %v5555_v45  ;;  %v1447_v45 = vsel %vm1446_vm8, %v1443_v62, %v1445_v61  ;;  %v5559_v62 = vld [vmem:[%s9254_s5 + $0x60] sm:$0xff]  }
  0xf1   :  { %1132 = vmatpush1.bf16.msra.mxu0 %v1106_v47  ;;  %960 = vmatprep.mubr.bf16.mxu0 %v9261_v36  ;;  %v5401_v47 = vld [vmem:[%s9253_s4 + $0x20] ss:$8 sm:$0xf]  ;;  %v1476_v35 = vmul.f32 %v6158_v40, %v1447_v45 }
  0xf2   :  { %1013 = vmatprep.mubr.bf16.mxu1 %v9261_v36  ;;  %1185 = vmatpush1.bf16.msra.mxu1 %v1112_v48  ;;  %v1644_v48 = vpop.permute.xlu1 %1643  ;;  %v6174_v31 = vrot.slane %v5401_v47, %v5742_v2  ;;  %v6177_v54 = vrot.slane %v5401_v47, %v5748_v5  ;;  %v6199_v13 = vrot.slane %v5401_v47, %v5744_v3 }
  0xf3   :  { %5382 = vmatprep.subr.msk.bf16.mxu0 %vm311_vm2, %v1285_v50  ;;  %5385 = vmatprep.subr.msk.bf16.mxu1 %vm311_vm2, %v1287_v49  ;;  %v1642_v49 = vpop.permute.xlu0 %1641  ;;  %v1474_v50 = vmul.f32 %v6153_v33, %v1449_v38  ;;  %v1485_v2 = vpack.c.bf16 %v1476_v35, %v1476_v35  ;;  %v6204_v15 = vrot.slane %v5401_v47, %v5746_v4  ;;  %v5563_v38 = vld [vmem:[%s9254_s5 + $0x80] sm:$0xff]  }
  0xf4   :  { %9508 = vst [vmem:[#allocation41_spill] sm:$0xff] %v6174_v31  ;;  %9509 = vst [vmem:[#allocation42_spill] sm:$0xff] %v6177_v54  ;;  %v1647_v59 = vsel %vm1645_vm9, %v1640_v27, %v1642_v49  ;;  %v1673_v3 = vmul.f32 %v6199_v13, %v1648_v34 }
  0xf5   :  { %v1483_v60 = vpack.c.bf16 %v1474_v50, %v1474_v50  ;;  %v1674_v5 = vmul.f32 %v6177_v54, %v1647_v59  ;;  %v1510_v6 = vsel %vm311_vm2, %v1485_v2, 0  ;;  %9510 = vst [vmem:[#allocation43_spill] sm:$0xff] %v6199_v13  ;;  %9511 = vst [vmem:[#allocation44_spill] sm:$0xff] %v6204_v15 }
  0xf6   :  { %v1682_v4 = vpack.c.bf16 %v1673_v3, %v1673_v3 }
  0xf7   :  { %v1504_v63 = vsel %vm311_vm2, %v1483_v60, 0  ;;  %v1683_v12 = vpack.c.bf16 %v1674_v5, %v1674_v5 }
  0xf8   :  { %5358 = vmatmul.mubr.msk.bf16.gmra.mxu0 %vm304_vm3, %v5556_v58  ;;  %5361 = vmatmul.mubr.msk.bf16.gmra.mxu1 %vm304_vm3, %v5556_v58  ;;  %v1649_v58 = vsel %vm1645_vm9, %v1644_v48, %v1638_v30  ;;  %v5562_v30 = vld [vmem:[%s9254_s5 + $0x78] sm:$0xff]  }
  0xf9   :  { %1149 = vmatprep.mubr.bf16.mxu0 %v9261_v36  ;;  %1202 = vmatprep.mubr.bf16.mxu1 %v9261_v36  ;;  %v1676_v61 = vmul.f32 %v6174_v31, %v1649_v58 }
  0xfb   :  { %v1685_v9 = vpack.c.bf16 %v1676_v61, %v1676_v61 }
 0x100   :  { %5370 = vmatmul.mubr.msk.bf16.vlgmr.msra.gmra.mxu0 %vm304_vm3, %v5557_v17  ;;  %5373 = vmatmul.mubr.msk.bf16.vlgmr.msra.gmra.mxu1 %vm304_vm3, %v5557_v17  ;;  %v1646_v17 = vsel %vm1645_vm9, %v1642_v49, %v1644_v48 }
 0x101   :  { %1331 = vmatpush1.bf16.msra.mxu0 %v1305_v19  ;;  %1159 = vmatprep.mubr.bf16.mxu0 %v9261_v36  ;;  %v1675_v19 = vmul.f32 %v6204_v15, %v1646_v17 }
 0x102   :  { %1212 = vmatprep.mubr.bf16.mxu1 %v9261_v36  ;;  %1384 = vmatpush1.bf16.msra.mxu1 %v1311_v20 }
 0x103   :  { %5395 = vmatprep.subr.msk.bf16.mxu0 %vm311_vm2, %v1484_v23  ;;  %5398 = vmatprep.subr.msk.bf16.mxu1 %vm311_vm2, %v1486_v22  ;;  %v1684_v20 = vpack.c.bf16 %v1675_v19, %v1675_v19  ;;  %v5561_v22 = vld [vmem:[%s9254_s5 + $0x70] sm:$0xff]   ;;  %v1703_v23 = vsel %vm311_vm2, %v1682_v4, 0 }
 0x105   :  { %v1709_v27 = vsel %vm311_vm2, %v1684_v20, 0 }
 0x108   :  { %5371 = vmatmul.mubr.msk.bf16.gmra.mxu0 %vm304_vm3, %v5558_v42  ;;  %5374 = vmatmul.mubr.msk.bf16.gmra.mxu1 %vm304_vm3, %v5558_v42  ;;  %v5564_v42 = vld [vmem:[%s9254_s5 + $0x88] sm:$0xff]  }
 0x109   :  { %1348 = vmatprep.mubr.bf16.mxu0 %v9261_v36  ;;  %1401 = vmatprep.mubr.bf16.mxu1 %v9261_v36 }
 0x110   :  { %5383 = vmatmul.mubr.msk.bf16.vlgmr.msra.gmra.mxu0 %vm304_vm3, %v5559_v62  ;;  %5386 = vmatmul.mubr.msk.bf16.vlgmr.msra.gmra.mxu1 %vm304_vm3, %v5559_v62 }
 0x111   :  { %1530 = vmatpush1.bf16.msra.mxu0 %v1504_v63  ;;  %1358 = vmatprep.mubr.bf16.mxu0 %v9261_v36 }
 0x112   :  { %1411 = vmatprep.mubr.bf16.mxu1 %v9261_v36  ;;  %1583 = vmatpush1.bf16.msra.mxu1 %v1510_v6 }
 0x113   :  { %5408 = vmatprep.subr.msk.bf16.mxu0 %vm311_vm2, %v1683_v12  ;;  %5411 = vmatprep.subr.msk.bf16.mxu1 %vm311_vm2, %v1685_v9 }
 0x118   :  { %5384 = vmatmul.mubr.msk.bf16.gmra.mxu0 %vm304_vm3, %v5560_v16  ;;  %5387 = vmatmul.mubr.msk.bf16.gmra.mxu1 %vm304_vm3, %v5560_v16 }
 0x119   :  { %1547 = vmatprep.mubr.bf16.mxu0 %v9261_v36  ;;  %1600 = vmatprep.mubr.bf16.mxu1 %v9261_v36 }
 0x120   :  { %5396 = vmatmul.mubr.msk.bf16.vlgmr.msra.gmra.mxu0 %vm304_vm3, %v5561_v22  ;;  %5399 = vmatmul.mubr.msk.bf16.vlgmr.msra.gmra.mxu1 %vm304_vm3, %v5561_v22 }
 0x121   :  { %1729 = vmatpush1.bf16.msra.mxu0 %v1703_v23  ;;  %1557 = vmatprep.mubr.bf16.mxu0 %v9261_v36 }
 0x122   :  { %1610 = vmatprep.mubr.bf16.mxu1 %v9261_v36  ;;  %1782 = vmatpush1.bf16.msra.mxu1 %v1709_v27 }
 0x128   :  { %5397 = vmatmul.mubr.msk.bf16.gmra.mxu0 %vm304_vm3, %v5562_v30  ;;  %5400 = vmatmul.mubr.msk.bf16.gmra.mxu1 %vm304_vm3, %v5562_v30 }
 0x129   :  { %1746 = vmatprep.mubr.bf16.mxu0 %v9261_v36  ;;  %1799 = vmatprep.mubr.bf16.mxu1 %v9261_v36 }
 0x130   :  { %5409 = vmatmul.mubr.msk.bf16.vlgmr.msra.gmra.mxu0 %vm304_vm3, %v5563_v38  ;;  %5412 = vmatmul.mubr.msk.bf16.vlgmr.msra.gmra.mxu1 %vm304_vm3, %v5563_v38 }
 0x131   :  { %1756 = vmatprep.mubr.bf16.mxu0 %v9261_v36  ;;  %1809 = vmatprep.mubr.bf16.mxu1 %v9261_v36 }
 0x138   :  { %5410 = vmatmul.mubr.msk.bf16.gmra.mxu0 %vm304_vm3, %v5564_v42  ;;  %5413 = vmatmul.mubr.msk.bf16.gmra.mxu1 %vm304_vm3, %v5564_v42 }
 0x139   :  { %2219 = vmatprep.mubr.bf16.mxu0 %v9261_v36  ;;  %2272 = vmatprep.mubr.bf16.mxu1 %v9261_v36 }
 0x170   :  { %v358_v45 = vpop.f32.mrf.mxu0  ;;  %v411_v47 = vpop.f32.mrf.mxu1 }
 0x172   :  { %v360_v48 = vpop.f32.mrf.mxu0  ;;  %v413_v49 = vpop.f32.mrf.mxu1 }
 0x174   :  { %v362_v50 = vpop.f32.mrf.mxu0  ;;  %v415_v35 = vpop.f32.mrf.mxu1 }
 0x176   :  { %v6249_v58 = vpop.f32.mrf.mxu0  ;;  %v6251_v59 = vpop.f32.mrf.mxu1 }
 0x178   :  { %v368_v60 = vpop.f32.mrf.mxu0  ;;  %v421_v2 = vpop.f32.mrf.mxu1 }
 0x17a   :  { %v370_v61 = vpop.f32.mrf.mxu0  ;;  %v423_v5 = vpop.f32.mrf.mxu1 }
 0x17c   :  { %v372_v62 = vpop.f32.mrf.mxu0  ;;  %v425_v63 = vpop.f32.mrf.mxu1 }
 0x17e   :  { %v6253_v6 = vpop.f32.mrf.mxu0  ;;  %v6255_v9 = vpop.f32.mrf.mxu1 }
 0x17f   :  { %9512 = vst [vmem:[#allocation45_spill] sm:$0xff] %v6253_v6  ;;  %9513 = vst [vmem:[#allocation46_spill] sm:$0xff] %v6255_v9 }
 0x180   :  { %v492_v12 = vpop.f32.mrf.mxu0  ;;  %v545_v34 = vpop.f32.mrf.mxu1 }
 0x181   :  { %v6257_v16 = vadd.f32 %v492_v12, %v358_v45  ;;  %v6259_v17 = vadd.f32 %v545_v34, %v411_v47 }
 0x182   :  { %v494_v3 = vpop.f32.mrf.mxu0  ;;  %v547_v19 = vpop.f32.mrf.mxu1 }
 0x183   :  { %v6261_v4 = vadd.f32 %v494_v3, %v360_v48  ;;  %v6263_v20 = vadd.f32 %v547_v19, %v413_v49 }
 0x184   :  { %v496_v22 = vpop.f32.mrf.mxu0  ;;  %v549_v23 = vpop.f32.mrf.mxu1 }
 0x185   :  { %v6265_v27 = vadd.f32 %v496_v22, %v362_v50  ;;  %v6267_v30 = vadd.f32 %v549_v23, %v415_v35 }
 0x186   :  { %v6269_v38 = vpop.f32.mrf.mxu0  ;;  %v6271_v42 = vpop.f32.mrf.mxu1 }
 0x187   :  { %9514 = vst [vmem:[#allocation47_spill] sm:$0xff] %v6271_v42  ;;  %v6407_v42 = vpop.permute.xlu0 %1852 }
 0x188   :  { %v502_v45 = vpop.f32.mrf.mxu0  ;;  %v555_v12 = vpop.f32.mrf.mxu1 }
 0x189   :  { %v6273_v47 = vadd.f32 %v502_v45, %v368_v60  ;;  %v6275_v34 = vadd.f32 %v555_v12, %v421_v2 }
 0x18a   :  { %v504_v48 = vpop.f32.mrf.mxu0  ;;  %v557_v3 = vpop.f32.mrf.mxu1 }
 0x18b   :  { %v6277_v49 = vadd.f32 %v504_v48, %v370_v61  ;;  %v6279_v19 = vadd.f32 %v557_v3, %v423_v5 }
 0x18c   :  { %v506_v50 = vpop.f32.mrf.mxu0  ;;  %v559_v22 = vpop.f32.mrf.mxu1 }
 0x18d   :  { %v6281_v35 = vadd.f32 %v506_v50, %v372_v62  ;;  %v6283_v23 = vadd.f32 %v559_v22, %v425_v63 }
 0x18e   :  { %v6285_v36 = vpop.f32.mrf.mxu0  ;;  %v6287_v31 = vpop.f32.mrf.mxu1 }
 0x18f   :  { %9515 = vst [vmem:[#allocation48_spill] sm:$0xff] %v6285_v36  ;;  %9516 = vst [vmem:[#allocation49_spill] sm:$0xff] %v6287_v31 }
 0x190   :  { %v675_v60 = vpop.f32.mrf.mxu0  ;;  %v728_v45 = vpop.f32.mrf.mxu1 }
 0x192   :  { %v677_v2 = vpop.f32.mrf.mxu0  ;;  %v730_v12 = vpop.f32.mrf.mxu1 }
 0x194   :  { %v679_v15 = vpop.f32.mrf.mxu0  ;;  %v732_v13 = vpop.f32.mrf.mxu1 }
 0x196   :  { %v6289_v61 = vpop.f32.mrf.mxu0  ;;  %v6291_v5 = vpop.f32.mrf.mxu1 }
 0x197   :  { %9517 = vst [vmem:[#allocation50_spill] sm:$0xff] %v6291_v5 }
 0x198   :  { %v685_v48 = vpop.f32.mrf.mxu0  ;;  %v738_v3 = vpop.f32.mrf.mxu1 }
 0x19a   :  { %v687_v62 = vpop.f32.mrf.mxu0  ;;  %v740_v50 = vpop.f32.mrf.mxu1 }
 0x19c   :  { %v689_v63 = vpop.f32.mrf.mxu0  ;;  %v742_v22 = vpop.f32.mrf.mxu1 }
 0x19e   :  { %v6293_v54 = vpop.f32.mrf.mxu0  ;;  %v6295_v7 = vpop.f32.mrf.mxu1 }
 0x19f   :  { %9518 = vst [vmem:[#allocation51_spill] sm:$0xff] %v6293_v54  ;;  %9519 = vst [vmem:[#allocation52_spill] sm:$0xff] %v6295_v7 }
 0x1a0   :  { %v809_v40 = vpop.f32.mrf.mxu0  ;;  %v862_v33 = vpop.f32.mrf.mxu1 }
 0x1a1   :  { %v6297_v8 = vadd.f32 %v809_v40, %v675_v60  ;;  %v6299_v25 = vadd.f32 %v862_v33, %v728_v45 }
 0x1a2   :  { %v811_v57 = vpop.f32.mrf.mxu0  ;;  %v864_v51 = vpop.f32.mrf.mxu1 }
 0x1a3   :  { %v812_v26 = vadd.f32 %v811_v57, %v677_v2  ;;  %v865_v55 = vadd.f32 %v864_v51, %v730_v12 }
 0x1a4   :  { %v813_v14 = vpop.f32.mrf.mxu0  ;;  %v866_v32 = vpop.f32.mrf.mxu1 }
 0x1a5   :  { %v6301_v56 = vadd.f32 %v813_v14, %v679_v15  ;;  %v6303_v24 = vadd.f32 %v866_v32, %v732_v13 }
 0x1a6   :  { %v6305_v11 = vpop.f32.mrf.mxu0  ;;  %v6307_v21 = vpop.f32.mrf.mxu1 }
 0x1a7   :  { %9520 = vst [vmem:[#allocation53_spill] sm:$0xff] %v6307_v21 }
 0x1a8   :  { %v819_v52 = vpop.f32.mrf.mxu0  ;;  %v872_v29 = vpop.f32.mrf.mxu1 }
 0x1a9   :  { %v820_v40 = vadd.f32 %v819_v52, %v685_v48  ;;  %v873_v60 = vadd.f32 %v872_v29, %v738_v3 }
 0x1aa   :  { %v821_v33 = vpop.f32.mrf.mxu0  ;;  %v874_v45 = vpop.f32.mrf.mxu1 }
 0x1ab   :  { %v822_v41 = vadd.f32 %v821_v33, %v687_v62  ;;  %v875_v28 = vadd.f32 %v874_v45, %v740_v50 }
 0x1ac   :  { %v823_v57 = vpop.f32.mrf.mxu0  ;;  %v876_v51 = vpop.f32.mrf.mxu1 }
 0x1ad   :  { %v824_v2 = vadd.f32 %v823_v57, %v689_v63  ;;  %v877_v12 = vadd.f32 %v876_v51, %v742_v22 }
 0x1ae   :  { %v6309_v14 = vpop.f32.mrf.mxu0  ;;  %v6311_v32 = vpop.f32.mrf.mxu1 }
 0x1af   :  { %9521 = vst [vmem:[#allocation54_spill] sm:$0xff] %v6309_v14  ;;  %9522 = vst [vmem:[#allocation55_spill] sm:$0xff] %v6311_v32 }
 0x1b0   :  { %v6313_v13 = vpop.f32.mrf.mxu0  ;;  %v6315_v15 = vpop.f32.mrf.mxu1 }
 0x1b2   :  { %v954_v18 = vpop.f32.mrf.mxu0  ;;  %v1007_v1 = vpop.f32.mrf.mxu1 }
 0x1b3   :  { %v1025_v29 = vadd.f32 %v954_v18, %v6261_v4  ;;  %v1027_v52 = vadd.f32 %v1007_v1, %v6263_v20 }
 0x1b4   :  { %v6319_v48 = vpop.f32.mrf.mxu0  ;;  %v6321_v3 = vpop.f32.mrf.mxu1 }
 0x1b6   :  { %v6323_v62 = vpop.f32.mrf.mxu0  ;;  %v6325_v50 = vpop.f32.mrf.mxu1 }
 0x1b7   :  { %9523 = vst [vmem:[#allocation56_spill] sm:$0xff] %v6325_v50 }
 0x1b8   :  { %v962_v63 = vpop.f32.mrf.mxu0  ;;  %v1015_v22 = vpop.f32.mrf.mxu1 }
 0x1b9   :  { %v1032_v33 = vadd.f32 %v962_v63, %v6273_v47  ;;  %v1034_v45 = vadd.f32 %v1015_v22, %v6275_v34 }
 0x1ba   :  { %v964_v57 = vpop.f32.mrf.mxu0  ;;  %v1017_v51 = vpop.f32.mrf.mxu1 }
 0x1bb   :  { %v1033_v18 = vadd.f32 %v964_v57, %v6277_v49  ;;  %v1035_v1 = vadd.f32 %v1017_v51, %v6279_v19 }
 0x1bc   :  { %v966_v4 = vpop.f32.mrf.mxu0  ;;  %v1019_v20 = vpop.f32.mrf.mxu1 }
 0x1bd   :  { %v1036_v10 = vadd.f32 %v966_v4, %v6281_v35  ;;  %v1038_v0 = vadd.f32 %v1019_v20, %v6283_v23 }
 0x1be   :  { %v6333_v53 = vpop.f32.mrf.mxu0  ;;  %v6335_v46 = vpop.f32.mrf.mxu1 }
 0x1bf   :  { %9524 = vst [vmem:[#allocation57_spill] sm:$0xff] %v6333_v53  ;;  %9525 = vst [vmem:[#allocation58_spill] sm:$0xff] %v6335_v46 }
 0x1c0   :  { %v6337_v43 = vpop.f32.mrf.mxu0  ;;  %v6339_v47 = vpop.f32.mrf.mxu1 }
 0x1c1   :  { %v1225_v50 = vadd.f32 %v6339_v47, %v6299_v25 }
 0x1c2   :  { %v1153_v34 = vpop.f32.mrf.mxu0  ;;  %v1206_v63 = vpop.f32.mrf.mxu1 }
 0x1c3   :  { %v6341_v22 = vadd.f32 %v1153_v34, %v812_v26  ;;  %v6343_v49 = vadd.f32 %v1206_v63, %v865_v55 }
 0x1c4   :  { %v6345_v19 = vpop.f32.mrf.mxu0  ;;  %v6347_v57 = vpop.f32.mrf.mxu1 }
 0x1c6   :  { %v6349_v35 = vpop.f32.mrf.mxu0  ;;  %v6351_v23 = vpop.f32.mrf.mxu1 }
 0x1c7   :  { %9526 = vst [vmem:[#allocation59_spill] sm:$0xff] %v6351_v23 }
 0x1c8   :  { %v1161_v51 = vpop.f32.mrf.mxu0  ;;  %v1214_v4 = vpop.f32.mrf.mxu1 }
 0x1c9   :  { %v1231_v20 = vadd.f32 %v1161_v51, %v820_v40  ;;  %v1233_v39 = vadd.f32 %v1214_v4, %v873_v60 }
 0x1ca   :  { %v1163_v44 = vpop.f32.mrf.mxu0  ;;  %v1216_v37 = vpop.f32.mrf.mxu1 }
 0x1cb   :  { %v1232_v46 = vadd.f32 %v1163_v44, %v822_v41  ;;  %v1234_v32 = vadd.f32 %v1216_v37, %v875_v28 }
 0x1cc   :  { %v1165_v26 = vpop.f32.mrf.mxu0  ;;  %v1218_v34 = vpop.f32.mrf.mxu1 }
 0x1cd   :  { %v1235_v55 = vadd.f32 %v1165_v26, %v824_v2  ;;  %v1237_v63 = vadd.f32 %v1218_v34, %v877_v12 }
 0x1ce   :  { %v6353_v7 = vpop.f32.mrf.mxu0  ;;  %v6355_v31 = vpop.f32.mrf.mxu1 }
 0x1cf   :  { %9527 = vst [vmem:[#allocation60_spill] sm:$0xff] %v6353_v7  ;;  %9528 = vst [vmem:[#allocation61_spill] sm:$0xff] %v6355_v31 }
 0x1d0   :  { %v1350_v9 = vpop.f32.mrf.mxu0  ;;  %v1403_v53 = vpop.f32.mrf.mxu1 }
 0x1d2   :  { %v1352_v14 = vpop.f32.mrf.mxu0  ;;  %v1405_v54 = vpop.f32.mrf.mxu1 }
 0x1d3   :  { %v6357_v36 = vadd.f32 %v1352_v14, %v1025_v29  ;;  %v6359_v40 = vadd.f32 %v1405_v54, %v1027_v52 }
 0x1d4   :  { %v6361_v60 = vpop.f32.mrf.mxu0  ;;  %v6363_v44 = vpop.f32.mrf.mxu1 }
 0x1d6   :  { %v6365_v37 = vpop.f32.mrf.mxu0  ;;  %v6367_v28 = vpop.f32.mrf.mxu1 }
 0x1d7   :  { %9529 = vst [vmem:[#allocation62_spill] sm:$0xff] %v6365_v37  ;;  %9530 = vst [vmem:[#allocation63_spill] sm:$0xff] %v6367_v28 }
 0x1d8   :  { %v1360_v41 = vpop.f32.mrf.mxu0  ;;  %v1413_v2 = vpop.f32.mrf.mxu1 }
 0x1d9   :  { %v6369_v12 = vadd.f32 %v1360_v41, %v1032_v33  ;;  %v6371_v51 = vadd.f32 %v1413_v2, %v1034_v45 }
 0x1da   :  { %v1362_v4 = vpop.f32.mrf.mxu0  ;;  %v1415_v26 = vpop.f32.mrf.mxu1 }
 0x1db   :  { %v6373_v14 = vadd.f32 %v1362_v4, %v1033_v18  ;;  %v6375_v54 = vadd.f32 %v1415_v26, %v1035_v1  ;;  %v6389_v4 = vpop.permute.xlu1 %1857 }
 0x1dc   :  { %v1364_v29 = vpop.f32.mrf.mxu0  ;;  %v1417_v52 = vpop.f32.mrf.mxu1 }
 0x1dd   :  { %v6377_v34 = vadd.f32 %v1364_v29, %v1036_v10  ;;  %v6379_v31 = vadd.f32 %v1417_v52, %v1038_v0 }
 0x1de   :  { %v6381_v7 = vpop.f32.mrf.mxu0  ;;  %v6383_v6 = vpop.f32.mrf.mxu1 }
 0x1df   :  { %9531 = vst [vmem:[#allocation64_spill] sm:$0xff] %v6381_v7  ;;  %9532 = vst [vmem:[#allocation65_spill] sm:$0xff] %v6383_v6  ;;  %v1223_v7 = vadd.f32 %v6337_v43, %v6297_v8  ;;  %v1843_v5 = vpop.permute.xlu1 %1842 }
 0x1e0   :  { %v1549_v33 = vpop.f32.mrf.mxu0  ;;  %v1602_v41 = vpop.f32.mrf.mxu1 }
 0x1e1   :  { %v1623_v21 = vadd.f32 %v1602_v41, %v1225_v50 }
 0x1e2   :  { %v1604_v45 = vpop.f32.mrf.mxu1  ;;  %v1551_v2 = vpop.f32.mrf.mxu0 }
 0x1e4   :  { %v1553_v28 = vpop.f32.mrf.mxu0  ;;  %v1606_v23 = vpop.f32.mrf.mxu1 }
 0x1e6   :  { %v6385_v18 = vpop.f32.mrf.mxu1  ;;  %v6387_v1 = vpop.f32.mrf.mxu0 }
 0x1e7   :  { %9533 = vst [vmem:[#allocation66_spill] sm:$0xff] %v6385_v18  ;;  %9534 = vst [vmem:[#allocation67_spill] sm:$0xff] %v6387_v1  ;;  %v1024_v1 = vadd.f32 %v6313_v13, %v6257_v16  ;;  %v1622_v13 = vadd.f32 %v1551_v2, %v6341_v22 }
 0x1e8   :  { %v1559_v10 = vpop.f32.mrf.mxu0  ;;  %v1612_v26 = vpop.f32.mrf.mxu1 }
 0x1e9   :  { %v6391_v0 = vadd.f32 %v1559_v10, %v1231_v20  ;;  %v6393_v29 = vadd.f32 %v1612_v26, %v1233_v39  ;;  %v1026_v20 = vadd.f32 %v6315_v15, %v6259_v17  ;;  %v1621_v26 = vadd.f32 %v1549_v33, %v1223_v7 }
 0x1ea   :  { %v1561_v52 = vpop.f32.mrf.mxu0  ;;  %v1614_v6 = vpop.f32.mrf.mxu1  ;;  %v1227_v17 = vadd.f32 %v6345_v19, %v6301_v56  ;;  %v1229_v7 = vadd.f32 %v6347_v57, %v6303_v24  ;;  %v1862_v33 = vadd.f32 %v1843_v5, %v1623_v21 }
 0x1eb   :  { %v6399_v37 = vadd.f32 %v1561_v52, %v1232_v46  ;;  %v6401_v18 = vadd.f32 %v1614_v6, %v1234_v32  ;;  %v1422_v6 = vadd.f32 %v1350_v9, %v1024_v1  ;;  %v1424_v16 = vadd.f32 %v1403_v53, %v1026_v20  ;;  %v6427_v57 = vpop.permute.xlu0 %1847 }
 0x1ec   :  { %v1563_v39 = vpop.f32.mrf.mxu0  ;;  %v1616_v10 = vpop.f32.mrf.mxu1  ;;  %v1624_v32 = vadd.f32 %v1604_v45, %v6343_v49  ;;  %v1028_v9 = vadd.f32 %v6319_v48, %v6265_v27  ;;  %v1030_v53 = vadd.f32 %v6321_v3, %v6267_v30  ;;  %v1625_v56 = vadd.f32 %v1553_v28, %v1227_v17 }
 0x1ed   :  { %v6409_v43 = vadd.f32 %v1563_v39, %v1235_v55  ;;  %v6411_v25 = vadd.f32 %v1616_v10, %v1237_v63  ;;  %v1860_v55 = vadd.f32 %v1843_v5, %v1621_v26  ;;  %v1627_v19 = vadd.f32 %v1606_v23, %v1229_v7 }
 0x1ee   :  { %v6413_v46 = vpop.f32.mrf.mxu0  ;;  %v6415_v8 = vpop.f32.mrf.mxu1  ;;  %v1426_v21 = vadd.f32 %v6361_v60, %v1028_v9  ;;  %v1428_v1 = vadd.f32 %v6363_v44, %v1030_v53  ;;  %v1863_v27 = vadd.f32 %v1843_v5, %v1624_v32  ;;  %v1861_v48 = vadd.f32 %v1843_v5, %v1622_v13 }
 0x1ef   :  { %v1864_v44 = vadd.f32 %v6427_v57, %v1625_v56  ;;  %v1866_v5 = vadd.f32 %v6427_v57, %v1627_v19  ;;  %v1868_v7 = vadd.f32 %v6407_v42, %v6391_v0 }
 0x1f0   :  { %v1748_v15 = vpop.f32.mrf.mxu0  ;;  %v1801_v50 = vpop.f32.mrf.mxu1 }
 0x1f1   :  { %v1820_v47 = vadd.f32 %v1748_v15, %v1422_v6  ;;  %v1822_v63 = vadd.f32 %v1801_v50, %v1424_v16 }
 0x1f2   :  { %v1750_v41 = vpop.f32.mrf.mxu0  ;;  %v1803_v24 = vpop.f32.mrf.mxu1 }
 0x1f3   :  { %v1876_v49 = vadd.f32 %v1860_v55, %v1820_v47  ;;  %v1878_v22 = vadd.f32 %v1862_v33, %v1822_v63  ;;  %v1821_v45 = vadd.f32 %v1750_v41, %v6357_v36  ;;  %v1823_v2 = vadd.f32 %v1803_v24, %v6359_v40 }
 0x1f4   :  { %v1752_v52 = vpop.f32.mrf.mxu0  ;;  %v1805_v30 = vpop.f32.mrf.mxu1  ;;  %v1870_v47 = vadd.f32 %v6407_v42, %v6393_v29  ;;  %v1869_v33 = vadd.f32 %v6407_v42, %v6399_v37  ;;  %v1871_v29 = vadd.f32 %v6407_v42, %v6401_v18  ;;  %v1872_v42 = vadd.f32 %v6389_v4, %v6409_v43 }
 0x1f5   :  { %vm1892_vm10 = vcmp.gt.f32.partialorder %v1876_v49, 0.0  ;;  %v1908_v3 = vmul.f32 0.01, %v1876_v49  ;;  %v6433_v23 = vadd.f32 %v1861_v48, %v1821_v45  ;;  %v6435_v28 = vadd.f32 %v1863_v27, %v1823_v2  ;;  %v9535_v2 = vld [vmem:[#allocation47_spill] sm:$0xff]  ;;  %v9537_v27 = vld [vmem:[#allocation53_spill] sm:$0xff] }
 0x1f6   :  { %v1824_v20 = vadd.f32 %v1752_v52, %v1426_v21  ;;  %v1826_v39 = vadd.f32 %v1805_v30, %v1428_v1  ;;  %v6437_v10 = vpop.f32.mrf.mxu0  ;;  %v6439_v36 = vpop.f32.mrf.mxu1  ;;  %v1910_v60 = vmul.f32 0.01, %v1878_v22  ;;  %vm1894_vm11 = vcmp.gt.f32.partialorder %v1878_v22, 0.0  ;;  %v9536_v1 = vld [vmem:[#allocation50_spill] sm:$0xff]  ;;  %v9539_v52 = vld [vmem:[#allocation67_spill] sm:$0xff] }
 0x1f7   :  { %v6441_v40 = vsel %vm1892_vm10, %v1876_v49, %v1908_v3  ;;  %v552_v21 = vadd.f32 %v9535_v2, %v6251_v59  ;;  %v869_v48 = vadd.f32 %v9537_v27, %v9536_v1  ;;  %v9541_v30 = vld [vmem:[#allocation59_spill] sm:$0xff]  ;;  %vm1893_vm14 = vcmp.gt.f32.partialorder %v6433_v23, 0.0 }
 0x1f8   :  { %v1811_v26 = vpop.f32.mrf.mxu1  ;;  %2093 = vrot.lane.b32.xlu1 %v6441_v40, %s5662_s0  ;;  %v1758_v6 = vpop.f32.mrf.mxu0  ;;  %v1880_v16 = vadd.f32 %v1864_v44, %v1824_v20  ;;  %v1882_v17 = vadd.f32 %v1866_v5, %v1826_v39  ;;  %v6453_v55 = vsel %vm1894_vm11, %v1878_v22, %v1910_v60  ;;  %v9542_v59 = vld [vmem:[#allocation63_spill] sm:$0xff]  ;;  %v9543_v39 = vld [vmem:[#allocation66_spill] sm:$0xff]  ;;  %v1909_v5 = vmul.f32 0.01, %v6433_v23 }
 0x1f9   :  { %v1830_v32 = vadd.f32 %v1811_v26, %v6371_v51  ;;  %v1828_v13 = vadd.f32 %v1758_v6, %v6369_v12  ;;  %vm1895_vm15 = vcmp.gt.f32.partialorder %v6435_v28, 0.0 }
 0x1fa   :  { %v1760_v15 = vpop.f32.mrf.mxu0  ;;  %v1813_v50 = vpop.f32.mrf.mxu1  ;;  %vm1896_vm12 = vcmp.gt.f32.partialorder %v1880_v16, 0.0  ;;  %v1912_v63 = vmul.f32 0.01, %v1880_v16  ;;  %v1914_v51 = vmul.f32 0.01, %v1882_v17  ;;  %vm1898_vm13 = vcmp.gt.f32.partialorder %v1882_v17, 0.0 }
 0x1fb   :  { %v6461_v9 = vadd.f32 %v1870_v47, %v1830_v32  ;;  %v6463_v12 = vadd.f32 %v1868_v7, %v1828_v13  ;;  %v1829_v19 = vadd.f32 %v1760_v15, %v6373_v14  ;;  %v1831_v37 = vadd.f32 %v1813_v50, %v6375_v54 }
 0x1fc   :  { %2109 = vrot.lane.b32.xlu1 %v6453_v55, %s5662_s0  ;;  %v6459_v0 = vsel %vm1896_vm12, %v1880_v16, %v1912_v63  ;;  %v1815_v53 = vpop.f32.mrf.mxu1  ;;  %v1762_v56 = vpop.f32.mrf.mxu0  ;;  %v1874_v14 = vadd.f32 %v6389_v4, %v6411_v25  ;;  %v6483_v54 = vsel %vm1898_vm13, %v1882_v17, %v1914_v51  ;;  %v1911_v16 = vmul.f32 0.01, %v6435_v28 }
 0x1fd   :  { %2095 = vrot.lane.b32.xlu0 %v6459_v0, %s5662_s0  ;;  %v6471_v41 = vadd.f32 %v1869_v33, %v1829_v19  ;;  %v6473_v24 = vadd.f32 %v1871_v29, %v1831_v37  ;;  %v1834_v49 = vadd.f32 %v1815_v53, %v6379_v31  ;;  %v1832_v22 = vadd.f32 %v1762_v56, %v6377_v34  ;;  %v9550_v53 = vld [vmem:[#allocation48_spill] sm:$0xff]  ;;  %v9551_v29 = vld [vmem:[#allocation51_spill] sm:$0xff]  ;;  %v9552_v19 = vld [vmem:[#allocation54_spill] sm:$0xff] }
 0x1fe   :  { %v499_v31 = vadd.f32 %v6269_v38, %v6249_v58  ;;  %v816_v34 = vadd.f32 %v6305_v11, %v6289_v61  ;;  %v9538_v58 = vld [vmem:[#allocation62_spill] sm:$0xff]  ;;  %v9540_v61 = vld [vmem:[#allocation56_spill] sm:$0xff]  ;;  %vm1900_vm10 = vcmp.gt.f32.partialorder %v6463_v12, 0.0  ;;  %v1918_v15 = vmul.f32 0.01, %v6461_v9 }
 0x1ff   :  { %v6487_v18 = vadd.f32 %v1874_v14, %v1834_v49  ;;  %v6489_v45 = vadd.f32 %v1872_v42, %v1832_v22  ;;  %vm1902_vm11 = vcmp.gt.f32.partialorder %v6461_v9, 0.0  ;;  %v826_v37 = vadd.f32 %v9552_v19, %v9551_v29  ;;  %v9553_v49 = vld [vmem:[#allocation57_spill] sm:$0xff]  ;;  %v9554_v42 = vld [vmem:[#allocation60_spill] sm:$0xff] }
 0x200   :  { %1940 = vrot.lane.b32.xlu1 %v6441_v40, %s5664_s14  ;;  %v1029_v43 = vadd.f32 %v6323_v62, %v499_v31  ;;  %v1228_v25 = vadd.f32 %v6349_v35, %v816_v34  ;;  %v1031_v62 = vadd.f32 %v9540_v61, %v552_v21  ;;  %v1230_v35 = vadd.f32 %v9541_v30, %v869_v48  ;;  %v9556_v31 = vld [vmem:[#allocation49_spill] sm:$0xff]  ;;  %v9559_v21 = vld [vmem:[#allocation64_spill] sm:$0xff]  ;;  %v9560_v48 = vld [vmem:[#allocation58_spill] sm:$0xff]  ;;  %v1817_v61 = vpop.f32.mrf.mxu1 }
 0x201   :  { %2111 = vrot.lane.b32.xlu0 %v6483_v54, %s5662_s0  ;;  %v1920_v47 = vmul.f32 0.01, %v6489_v45  ;;  %vm1904_vm12 = vcmp.gt.f32.partialorder %v6489_v45, 0.0  ;;  %v6603_v63 = vsel %vm1902_vm11, %v6461_v9, %v1918_v15  ;;  %v1922_v33 = vmul.f32 0.01, %v6487_v18  ;;  %v9549_v9 = vld [vmem:[#allocation45_spill] sm:$0xff] }
 0x202   :  { %v1427_v38 = vadd.f32 %v9538_v58, %v1029_v43  ;;  %v1626_v11 = vadd.f32 %v9539_v52, %v1228_v25  ;;  %v1429_v20 = vadd.f32 %v9542_v59, %v1031_v62  ;;  %v1628_v60 = vadd.f32 %v9543_v39, %v1230_v35  ;;  %9546 = vst [vmem:[#allocation53_spill] sm:$0xff] %v6603_v63  ;;  %v9557_v43 = vld [vmem:[#allocation52_spill] sm:$0xff]  ;;  %v9558_v25 = vld [vmem:[#allocation55_spill] sm:$0xff]  ;;  %v9562_v62 = vld [vmem:[#allocation65_spill] sm:$0xff] }
 0x203   :  { %v6609_v51 = vsel %vm1904_vm12, %v6489_v45, %v1920_v47  ;;  %vm1906_vm13 = vcmp.gt.f32.partialorder %v6487_v18, 0.0  ;;  %v509_v56 = vadd.f32 %v9550_v53, %v9549_v9  ;;  %v1236_v14 = vadd.f32 %v9554_v42, %v826_v37  ;;  %v9555_v45 = vld [vmem:[#allocation46_spill] sm:$0xff] }
 0x204   :  { %1956 = vrot.lane.b32.xlu1 %v6453_v55, %s5664_s14  ;;  %v1825_v3 = vadd.f32 %v6437_v10, %v1427_v38  ;;  %v1865_v44 = vadd.f32 %v6427_v57, %v1626_v11  ;;  %v1827_v6 = vadd.f32 %v6439_v36, %v1429_v20  ;;  %v6541_v10 = vsel %vm1893_vm14, %v6433_v23, %v1909_v5  ;;  %v9561_v38 = vld [vmem:[#allocation61_spill] sm:$0xff] }
 0x205   :  { %1942 = vrot.lane.b32.xlu0 %v6459_v0, %s5664_s14  ;;  %v1867_v17 = vadd.f32 %v6427_v57, %v1628_v60  ;;  %v6551_v36 = vsel %vm1895_vm15, %v6435_v28, %v1911_v16  ;;  %v1916_v28 = vmul.f32 0.01, %v6463_v12  ;;  %9547 = vst [vmem:[#allocation62_spill] sm:$0xff] %v6609_v51  ;;  %v1037_v22 = vadd.f32 %v9553_v49, %v509_v56 }
 0x206   :  { %v1881_v26 = vadd.f32 %v1865_v44, %v1825_v3  ;;  %v562_v34 = vadd.f32 %v9556_v31, %v9555_v45  ;;  %v879_v2 = vadd.f32 %v9558_v25, %v9557_v43  ;;  %v1634_v27 = vadd.f32 %v6413_v46, %v1236_v14 }
 0x207   :  { %v1883_v32 = vadd.f32 %v1867_v17, %v1827_v6  ;;  %v6593_v50 = vsel %vm1900_vm10, %v6463_v12, %v1916_v28  ;;  %v6617_v12 = vsel %vm1906_vm13, %v6487_v18, %v1922_v33  ;;  %v1764_v18 = vpop.f32.mrf.mxu0  ;;  %v1435_v1 = vadd.f32 %v9559_v21, %v1037_v22 }
 0x208   :  { %2415 = vrot.lane.b32.xlu1 %v6441_v40, %s5665_s15  ;;  %v1913_v7 = vmul.f32 0.01, %v1881_v26  ;;  %vm1897_vm2 = vcmp.gt.f32.partialorder %v1881_v26, 0.0  ;;  %9545 = vst [vmem:[#allocation50_spill] sm:$0xff] %v6593_v50  ;;  %9548 = vst [vmem:[#allocation67_spill] sm:$0xff] %v6617_v12  ;;  %v1039_v58 = vadd.f32 %v9560_v48, %v562_v34  ;;  %v1238_v52 = vadd.f32 %v9561_v38, %v879_v2 }
 0x209   :  { %1958 = vrot.lane.b32.xlu0 %v6483_v54, %s5664_s14  ;;  %v1915_v57 = vmul.f32 0.01, %v1883_v32  ;;  %vm1899_vm3 = vcmp.gt.f32.partialorder %v1883_v32, 0.0  ;;  %v1833_v11 = vadd.f32 %v1764_v18, %v1435_v1  ;;  %v1873_v35 = vadd.f32 %v6389_v4, %v1634_v27 }
 0x20a   :  { %v6555_v23 = vsel %vm1897_vm2, %v1881_v26, %v1913_v7  ;;  %v1437_v30 = vadd.f32 %v9562_v62, %v1039_v58  ;;  %v1636_v3 = vadd.f32 %v6415_v8, %v1238_v52  ;;  %v1917_v46 = vmul.f32 0.01, %v6471_v41 }
 0x20b   :  { %9544 = vst [vmem:[#allocation47_spill] sm:$0xff] %v6555_v23  ;;  %v6561_v13 = vsel %vm1899_vm3, %v1883_v32, %v1915_v57  ;;  %vm1901_vm14 = vcmp.gt.f32.partialorder %v6471_v41, 0.0  ;;  %v1889_v59 = vadd.f32 %v1873_v35, %v1833_v11  ;;  %v1919_v8 = vmul.f32 0.01, %v6473_v24 }
 0x20c   :  { %2431 = vrot.lane.b32.xlu1 %v6453_v55, %s5665_s15  ;;  %v1835_v20 = vadd.f32 %v1817_v61, %v1437_v30  ;;  %v1875_v60 = vadd.f32 %v6389_v4, %v1636_v3  ;;  %v6672_v44 = vsel %vm1901_vm14, %v6471_v41, %v1917_v46  ;;  %vm1903_vm15 = vcmp.gt.f32.partialorder %v6473_v24, 0.0 }
 0x20d   :  { %2417 = vrot.lane.b32.xlu0 %v6459_v0, %s5665_s15  ;;  %9563 = vst [vmem:[#allocation56_spill] sm:$0xff] %v6672_v44  ;;  %v1921_v5 = vmul.f32 0.01, %v1889_v59  ;;  %vm1905_vm2 = vcmp.gt.f32.partialorder %v1889_v59, 0.0  ;;  %v6683_v4 = vsel %vm1903_vm15, %v6473_v24, %v1919_v8  ;;  %vm2180_vm10 = vcmask 261120  }
 0x20e   :  { %v1891_v26 = vadd.f32 %v1875_v60, %v1835_v20  ;;  %9564 = vst [vmem:[#allocation59_spill] sm:$0xff] %v6683_v4 }
 0x20f   :  { %v6689_v16 = vsel %vm1905_vm2, %v1889_v59, %v1921_v5 }
 0x210   :  { %2016 = vrot.lane.b32.xlu1 %v6441_v40, %s5666_s16  ;;  %v1923_v17 = vmul.f32 0.01, %v1891_v26  ;;  %vm1907_vm3 = vcmp.gt.f32.partialorder %v1891_v26, 0.0 }
 0x211   :  { %2433 = vrot.lane.b32.xlu0 %v6483_v54, %s5665_s15 }
 0x212   :  { %v6699_v24 = vsel %vm1907_vm3, %v1891_v26, %v1923_v17 }
 0x214   :  { %2032 = vrot.lane.b32.xlu1 %v6453_v55, %s5666_s16 }
 0x215   :  { %2018 = vrot.lane.b32.xlu0 %v6459_v0, %s5666_s16 }
 0x218   :  { %2903 = vrot.lane.b32.xlu1 %v6453_v55, %s5667_s17 }
 0x219   :  { %2034 = vrot.lane.b32.xlu0 %v6483_v54, %s5666_s16 }
 0x21c   :  { %2887 = vrot.lane.b32.xlu1 %v6441_v40, %s5667_s17 }
 0x21d   :  { %2905 = vrot.lane.b32.xlu0 %v6483_v54, %s5667_s17 }
 0x220   :  { %2101 = vrot.lane.b32.xlu1 %v6541_v10, %s5662_s0 }
 0x221   :  { %2889 = vrot.lane.b32.xlu0 %v6459_v0, %s5667_s17 }
 0x224   :  { %2117 = vrot.lane.b32.xlu1 %v6551_v36, %s5662_s0 }
 0x225   :  { %2103 = vrot.lane.b32.xlu0 %v6555_v23, %s5662_s0 }
 0x228   :  { %1948 = vrot.lane.b32.xlu1 %v6541_v10, %s5664_s14 }
 0x229   :  { %2119 = vrot.lane.b32.xlu0 %v6561_v13, %s5662_s0 }
 0x22c   :  { %1964 = vrot.lane.b32.xlu1 %v6551_v36, %s5664_s14 }
 0x22d   :  { %1950 = vrot.lane.b32.xlu0 %v6555_v23, %s5664_s14 }
 0x230   :  { %2423 = vrot.lane.b32.xlu1 %v6541_v10, %s5665_s15 }
 0x231   :  { %1966 = vrot.lane.b32.xlu0 %v6561_v13, %s5664_s14 }
 0x234   :  { %2439 = vrot.lane.b32.xlu1 %v6551_v36, %s5665_s15 }
 0x235   :  { %2425 = vrot.lane.b32.xlu0 %v6555_v23, %s5665_s15 }
 0x238   :  { %2024 = vrot.lane.b32.xlu1 %v6541_v10, %s5666_s16 }
 0x239   :  { %2441 = vrot.lane.b32.xlu0 %v6561_v13, %s5665_s15 }
 0x23c   :  { %2040 = vrot.lane.b32.xlu1 %v6551_v36, %s5666_s16 }
 0x23d   :  { %2026 = vrot.lane.b32.xlu0 %v6555_v23, %s5666_s16 }
 0x240   :  { %2895 = vrot.lane.b32.xlu1 %v6541_v10, %s5667_s17 }
 0x241   :  { %2042 = vrot.lane.b32.xlu0 %v6561_v13, %s5666_s16 }
 0x244   :  { %2097 = vrot.lane.b32.xlu1 %v6593_v50, %s5662_s0 }
 0x245   :  { %2897 = vrot.lane.b32.xlu0 %v6555_v23, %s5667_s17 }
 0x248   :  { %2113 = vrot.lane.b32.xlu1 %v6603_v63, %s5662_s0 }
 0x249   :  { %2099 = vrot.lane.b32.xlu0 %v6609_v51, %s5662_s0 }
 0x24c   :  { %1944 = vrot.lane.b32.xlu1 %v6593_v50, %s5664_s14 }
 0x24d   :  { %2115 = vrot.lane.b32.xlu0 %v6617_v12, %s5662_s0 }
 0x250   :  { %1960 = vrot.lane.b32.xlu1 %v6603_v63, %s5664_s14 }
 0x251   :  { %1946 = vrot.lane.b32.xlu0 %v6609_v51, %s5664_s14 }
 0x254   :  { %2419 = vrot.lane.b32.xlu1 %v6593_v50, %s5665_s15 }
 0x255   :  { %1962 = vrot.lane.b32.xlu0 %v6617_v12, %s5664_s14 }
 0x258   :  { %2435 = vrot.lane.b32.xlu1 %v6603_v63, %s5665_s15 }
 0x259   :  { %2421 = vrot.lane.b32.xlu0 %v6609_v51, %s5665_s15 }
 0x25c   :  { %2020 = vrot.lane.b32.xlu1 %v6593_v50, %s5666_s16 }
 0x25d   :  { %2437 = vrot.lane.b32.xlu0 %v6617_v12, %s5665_s15 }
 0x260   :  { %2036 = vrot.lane.b32.xlu1 %v6603_v63, %s5666_s16 }
 0x261   :  { %2022 = vrot.lane.b32.xlu0 %v6609_v51, %s5666_s16 }
 0x264   :  { %2907 = vrot.lane.b32.xlu1 %v6603_v63, %s5667_s17 }
 0x265   :  { %2038 = vrot.lane.b32.xlu0 %v6617_v12, %s5666_s16 }
 0x268   :  { %2891 = vrot.lane.b32.xlu1 %v6593_v50, %s5667_s17 }
 0x269   :  { %2909 = vrot.lane.b32.xlu0 %v6617_v12, %s5667_s17 }
 0x26a   :  { %v6668_v39 = vpop.permute.xlu1 %2093 }
 0x26c   :  { %2105 = vrot.lane.b32.xlu1 %v6672_v44, %s5662_s0 }
 0x26d   :  { %2893 = vrot.lane.b32.xlu0 %v6609_v51, %s5667_s17 }
 0x26e   :  { %v6680_v6 = vpop.permute.xlu1 %2109 }
 0x26f   :  { %v6685_v41 = vpop.permute.xlu0 %2095 }
 0x270   :  { %2121 = vrot.lane.b32.xlu1 %v6683_v4, %s5662_s0 }
 0x271   :  { %2107 = vrot.lane.b32.xlu0 %v6689_v16, %s5662_s0 }
 0x272   :  { %v6693_v7 = vpop.permute.xlu1 %1940 }
 0x273   :  { %v6695_v32 = vpop.permute.xlu0 %2111 }
 0x274   :  { %2911 = vrot.lane.b32.xlu1 %v6551_v36, %s5667_s17 }
 0x275   :  { %2123 = vrot.lane.b32.xlu0 %v6699_v24, %s5662_s0 }
 0x276   :  { %v6703_v57 = vpop.permute.xlu1 %1956 }
 0x277   :  { %v6705_v28 = vpop.permute.xlu0 %1942 }
 0x278   :  { %1952 = vrot.lane.b32.xlu1 %v6672_v44, %s5664_s14 }
 0x279   :  { %2913 = vrot.lane.b32.xlu0 %v6561_v13, %s5667_s17 }
 0x27a   :  { %v6711_v15 = vpop.permute.xlu1 %2415 }
 0x27b   :  { %v6713_v47 = vpop.permute.xlu0 %1958 }
 0x27c   :  { %1968 = vrot.lane.b32.xlu1 %v6683_v4, %s5664_s14 }
 0x27d   :  { %3124 = vrot.lane.b32.xlu0 %v6617_v12, %s5668_s18 }
 0x27e   :  { %v6719_v33 = vpop.permute.xlu1 %2431 }
 0x27f   :  { %v6721_v9 = vpop.permute.xlu0 %2417 }
 0x280   :  { %2427 = vrot.lane.b32.xlu1 %v6672_v44, %s5665_s15 }
 0x281   :  { %1954 = vrot.lane.b32.xlu0 %v6689_v16, %s5664_s14 }
 0x282   :  { %v6727_v53 = vpop.permute.xlu1 %2016 }
 0x283   :  { %9565 = vst [vmem:[#allocation63_spill] sm:$0xff] %v6727_v53  ;;  %v6729_v56 = vpop.permute.xlu0 %2433 }
 0x284   :  { %9566 = vst [vmem:[#allocation66_spill] sm:$0xff] %v6729_v56  ;;  %2443 = vrot.lane.b32.xlu1 %v6683_v4, %s5665_s15 }
 0x285   :  { %1970 = vrot.lane.b32.xlu0 %v6699_v24, %s5664_s14 }
 0x286   :  { %v6735_v29 = vpop.permute.xlu1 %2032 }
 0x287   :  { %9567 = vst [vmem:[#allocation45_spill] sm:$0xff] %v6735_v29  ;;  %v6737_v19 = vpop.permute.xlu0 %2018 }
 0x288   :  { %9568 = vst [vmem:[#allocation48_spill] sm:$0xff] %v6737_v19  ;;  %2028 = vrot.lane.b32.xlu1 %v6672_v44, %s5666_s16  ;;  %v9592_v19 = vld [vmem:[#allocation13_spill] sm:$0xff] }
 0x289   :  { %3108 = vrot.lane.b32.xlu0 %v6609_v51, %s5668_s18 }
 0x28a   :  { %v6743_v37 = vpop.permute.xlu1 %2903 }
 0x28b   :  { %9569 = vst [vmem:[#allocation51_spill] sm:$0xff] %v6743_v37  ;;  %v6745_v49 = vpop.permute.xlu0 %2034 }
 0x28c   :  { %9570 = vst [vmem:[#allocation54_spill] sm:$0xff] %v6745_v49  ;;  %2044 = vrot.lane.b32.xlu1 %v6683_v4, %s5666_s16 }
 0x28d   :  { %3112 = vrot.lane.b32.xlu0 %v6555_v23, %s5668_s18 }
 0x28e   :  { %v6751_v22 = vpop.permute.xlu1 %2887 }
 0x28f   :  { %9571 = vst [vmem:[#allocation57_spill] sm:$0xff] %v6751_v22  ;;  %v6753_v42 = vpop.permute.xlu0 %2905 }
 0x290   :  { %9572 = vst [vmem:[#allocation60_spill] sm:$0xff] %v6753_v42  ;;  %2899 = vrot.lane.b32.xlu1 %v6672_v44, %s5667_s17 }
 0x291   :  { %2429 = vrot.lane.b32.xlu0 %v6689_v16, %s5665_s15 }
 0x292   :  { %v6759_v14 = vpop.permute.xlu1 %2101 }
 0x293   :  { %v6761_v18 = vpop.permute.xlu0 %2889 }
 0x294   :  { %9573 = vst [vmem:[#allocation46_spill] sm:$0xff] %v6761_v18  ;;  %2915 = vrot.lane.b32.xlu1 %v6683_v4, %s5667_s17 }
 0x295   :  { %2445 = vrot.lane.b32.xlu0 %v6699_v24, %s5665_s15 }
 0x296   :  { %v6767_v45 = vpop.permute.xlu1 %2117 }
 0x297   :  { %v6769_v31 = vpop.permute.xlu0 %2103 }
 0x298   :  { %3114 = vrot.lane.b32.xlu1 %v6672_v44, %s5668_s18 }
 0x299   :  { %3120 = vrot.lane.b32.xlu0 %v6483_v54, %s5668_s18 }
 0x29a   :  { %v6775_v34 = vpop.permute.xlu1 %1948 }
 0x29b   :  { %v6777_v43 = vpop.permute.xlu0 %2119 }
 0x29c   :  { %3122 = vrot.lane.b32.xlu1 %v6603_v63, %s5668_s18 }
 0x29d   :  { %3104 = vrot.lane.b32.xlu0 %v6459_v0, %s5668_s18 }
 0x29e   :  { %v6783_v25 = vpop.permute.xlu1 %1964 }
 0x29f   :  { %v6785_v2 = vpop.permute.xlu0 %1950 }
 0x2a0   :  { %3106 = vrot.lane.b32.xlu1 %v6593_v50, %s5668_s18 }
 0x2a1   :  { %2030 = vrot.lane.b32.xlu0 %v6689_v16, %s5666_s16 }
 0x2a2   :  { %v6791_v21 = vpop.permute.xlu1 %2423 }
 0x2a3   :  { %v6793_v1 = vpop.permute.xlu0 %1966 }
 0x2a4   :  { %3130 = vrot.lane.b32.xlu1 %v6683_v4, %s5668_s18 }
 0x2a5   :  { %2046 = vrot.lane.b32.xlu0 %v6699_v24, %s5666_s16 }
 0x2a6   :  { %v6799_v27 = vpop.permute.xlu1 %2439 }
 0x2a7   :  { %v6801_v48 = vpop.permute.xlu0 %2425 }
 0x2a8   :  { %3110 = vrot.lane.b32.xlu1 %v6541_v10, %s5668_s18 }
 0x2a9   :  { %3128 = vrot.lane.b32.xlu0 %v6561_v13, %s5668_s18 }
 0x2aa   :  { %v6807_v58 = vpop.permute.xlu1 %2024 }
 0x2ab   :  { %9574 = vst [vmem:[#allocation49_spill] sm:$0xff] %v6807_v58  ;;  %v6809_v38 = vpop.permute.xlu0 %2441 }
 0x2ac   :  { %9575 = vst [vmem:[#allocation52_spill] sm:$0xff] %v6809_v38  ;;  %3118 = vrot.lane.b32.xlu1 %v6453_v55, %s5668_s18 }
 0x2ad   :  { %3339 = vrot.lane.b32.xlu0 %v6617_v12, %s5669_s19 }
 0x2ae   :  { %v6815_v52 = vpop.permute.xlu1 %2040 }
 0x2af   :  { %9576 = vst [vmem:[#allocation55_spill] sm:$0xff] %v6815_v52  ;;  %v6817_v11 = vpop.permute.xlu0 %2026 }
 0x2b0   :  { %9577 = vst [vmem:[#allocation64_spill] sm:$0xff] %v6817_v11  ;;  %3102 = vrot.lane.b32.xlu1 %v6441_v40, %s5668_s18  ;;  %v9593_v11 = vld [vmem:[#allocation14_spill] sm:$0xff] }
 0x2b1   :  { %3323 = vrot.lane.b32.xlu0 %v6609_v51, %s5669_s19 }
 0x2b2   :  { %v6823_v61 = vpop.permute.xlu1 %2895 }
 0x2b3   :  { %9578 = vst [vmem:[#allocation58_spill] sm:$0xff] %v6823_v61  ;;  %v6825_v62 = vpop.permute.xlu0 %2042 }
 0x2b4   :  { %9579 = vst [vmem:[#allocation61_spill] sm:$0xff] %v6825_v62  ;;  %3126 = vrot.lane.b32.xlu1 %v6551_v36, %s5668_s18 }
 0x2b5   :  { %3327 = vrot.lane.b32.xlu0 %v6555_v23, %s5669_s19 }
 0x2b6   :  { %v2098_v30 = vpop.permute.xlu1 %2097 }
 0x2b7   :  { %v6831_v35 = vpop.permute.xlu0 %2897 }
 0x2b8   :  { %9580 = vst [vmem:[#allocation65_spill] sm:$0xff] %v6831_v35  ;;  %3329 = vrot.lane.b32.xlu1 %v6672_v44, %s5669_s19 }
 0x2b9   :  { %3335 = vrot.lane.b32.xlu0 %v6483_v54, %s5669_s19 }
 0x2ba   :  { %v2114_v3 = vpop.permute.xlu1 %2113 }
 0x2bb   :  { %v6837_v46 = vpop.permute.xlu0 %2099 }
 0x2bc   :  { %3337 = vrot.lane.b32.xlu1 %v6603_v63, %s5669_s19 }
 0x2bd   :  { %3319 = vrot.lane.b32.xlu0 %v6459_v0, %s5669_s19 }
 0x2be   :  { %v6843_v59 = vpop.permute.xlu1 %1944 }
 0x2bf   :  { %v2116_v20 = vpop.permute.xlu0 %2115 }
 0x2c0   :  { %3321 = vrot.lane.b32.xlu1 %v6593_v50, %s5669_s19 }
 0x2c1   :  { %2901 = vrot.lane.b32.xlu0 %v6689_v16, %s5667_s17 }
 0x2c2   :  { %v6849_v60 = vpop.permute.xlu1 %1960 }
 0x2c3   :  { %v6851_v8 = vpop.permute.xlu0 %1946 }
 0x2c4   :  { %3345 = vrot.lane.b32.xlu1 %v6683_v4, %s5669_s19 }
 0x2c5   :  { %2917 = vrot.lane.b32.xlu0 %v6699_v24, %s5667_s17 }
 0x2c6   :  { %v6857_v5 = vpop.permute.xlu1 %2419 }
 0x2c7   :  { %v6859_v26 = vpop.permute.xlu0 %1962 }
 0x2c8   :  { %3325 = vrot.lane.b32.xlu1 %v6541_v10, %s5669_s19 }
 0x2c9   :  { %3343 = vrot.lane.b32.xlu0 %v6561_v13, %s5669_s19 }
 0x2ca   :  { %v6865_v17 = vpop.permute.xlu1 %2435 }
 0x2cb   :  { %v6867_v22 = vpop.permute.xlu0 %2421 }
 0x2cc   :  { %3333 = vrot.lane.b32.xlu1 %v6453_v55, %s5669_s19 }
 0x2cd   :  { %3554 = vrot.lane.b32.xlu0 %v6617_v12, %s5670_s20 }
 0x2ce   :  { %v6873_v18 = vpop.permute.xlu1 %2020 }
 0x2cf   :  { %9581 = vst [vmem:[#allocation68_spill] sm:$0xff] %v6873_v18  ;;  %v6875_v61 = vpop.permute.xlu0 %2437 }
 0x2d0   :  { %3317 = vrot.lane.b32.xlu1 %v6441_v40, %s5669_s19 }
 0x2d1   :  { %3116 = vrot.lane.b32.xlu0 %v6689_v16, %s5668_s18 }
 0x2d2   :  { %v6881_v37 = vpop.permute.xlu1 %2036 }
 0x2d3   :  { %9582 = vst [vmem:[#allocation69_spill] sm:$0xff] %v6881_v37  ;;  %v6883_v35 = vpop.permute.xlu0 %2022 }
 0x2d4   :  { %9583 = vst [vmem:[#allocation70_spill] sm:$0xff] %v6883_v35  ;;  %3341 = vrot.lane.b32.xlu1 %v6551_v36, %s5669_s19 }
 0x2d5   :  { %3132 = vrot.lane.b32.xlu0 %v6699_v24, %s5668_s18 }
 0x2d6   :  { %v6889_v42 = vpop.permute.xlu1 %2907 }
 0x2d7   :  { %9584 = vst [vmem:[#allocation71_spill] sm:$0xff] %v6889_v42  ;;  %v6891_v12 = vpop.permute.xlu0 %2038 }
 0x2d8   :  { %9585 = vst [vmem:[#allocation72_spill] sm:$0xff] %v6891_v12  ;;  %3544 = vrot.lane.b32.xlu1 %v6672_v44, %s5670_s20 }
 0x2d9   :  { %3538 = vrot.lane.b32.xlu0 %v6609_v51, %s5670_s20 }
 0x2da   :  { %v6897_v49 = vpop.permute.xlu1 %2891 }
 0x2db   :  { %9586 = vst [vmem:[#allocation73_spill] sm:$0xff] %v6897_v49  ;;  %v6899_v62 = vpop.permute.xlu0 %2909 }
 0x2dc   :  { %9587 = vst [vmem:[#allocation74_spill] sm:$0xff] %v6899_v62  ;;  %3552 = vrot.lane.b32.xlu1 %v6603_v63, %s5670_s20  ;;  %v2134_v62 = vsel %vm253_vm0, %v6685_v41, %v6769_v31 }
 0x2dd   :  { %3542 = vrot.lane.b32.xlu0 %v6555_v23, %s5670_s20  ;;  %v9590_v23 = vld [vmem:[#allocation15_spill] sm:$0xff] }
 0x2de   :  { %v2106_v37 = vpop.permute.xlu1 %2105  ;;  %v2146_v58 = vmul.f32 %v2134_v62, %v9590_v23 }
 0x2df   :  { %v6905_v42 = vpop.permute.xlu0 %2893  ;;  %v2135_v49 = vsel %vm253_vm0, %v2098_v30, %v2106_v37 }
 0x2e0   :  { %9588 = vst [vmem:[#allocation75_spill] sm:$0xff] %v6905_v42  ;;  %3536 = vrot.lane.b32.xlu1 %v6593_v50, %s5670_s20  ;;  %v2150_v50 = vmul.f32 %v2135_v49, %v9590_v23  ;;  %v2125_v49 = vsel %vm253_vm0, %v6680_v6, %v6767_v45 }
 0x2e1   :  { %3331 = vrot.lane.b32.xlu0 %v6689_v16, %s5669_s19 }
 0x2e2   :  { %v2122_v51 = vpop.permute.xlu1 %2121 }
 0x2e3   :  { %v2108_v63 = vpop.permute.xlu0 %2107  ;;  %v2127_v12 = vsel %vm253_vm0, %v2114_v3, %v2122_v51  ;;  %v2139_v29 = vsel %vm253_vm0, %v2122_v51, %v2098_v30  ;;  %v2138_v30 = vsel %vm253_vm0, %v6777_v43, %v6685_v41  ;;  %v9594_v41 = vld [vmem:[#allocation16_spill] sm:$0xff] }
 0x2e4   :  { %3560 = vrot.lane.b32.xlu1 %v6683_v4, %s5670_s20  ;;  %v2136_v42 = vsel %vm253_vm0, %v6837_v46, %v2108_v63  ;;  %v2133_v4 = vsel %vm253_vm0, %v6668_v39, %v6759_v14  ;;  %v2132_v51 = vsel %vm253_vm0, %v2108_v63, %v2116_v20  ;;  %v2149_v63 = vmul.f32 %v2139_v29, %v9592_v19 }
 0x2e5   :  { %v2154_v52 = vmul.f32 %v2136_v42, %v9590_v23  ;;  %3347 = vrot.lane.b32.xlu0 %v6699_v24, %s5669_s19  ;;  %v2126_v42 = vsel %vm253_vm0, %v6695_v32, %v6777_v43  ;;  %v2152_v18 = vmul.f32 %v2127_v12, %v9593_v11  ;;  %v2155_v43 = vmul.f32 %v2132_v51, %v9594_v41 }
 0x2e6   :  { %v6930_v53 = vpop.permute.xlu1 %2911  ;;  %v2142_v12 = vmul.f32 %v2133_v4, %v9590_v23  ;;  %v2137_v29 = vsel %vm253_vm0, %v6767_v45, %v6668_v39  ;;  %v2129_v39 = vsel %vm253_vm0, %v6759_v14, %v6680_v6  ;;  %v5565_v14 = vld [vmem:[%s9256_s7 + $0x20] sm:$0xff]  }
 0x2e7   :  { %9591 = vst [vmem:[#allocation12_spill] sm:$0xff] %v6930_v53  ;;  %v2131_v53 = vsel %vm253_vm0, %v2106_v37, %v2114_v3  ;;  %v2124_v35 = vpop.permute.xlu0 %2123  ;;  %v2167_v62 = vpack.c.bf16 %v2154_v52, %v2150_v50  ;;  %v2130_v52 = vsel %vm253_vm0, %v6769_v31, %v6695_v32  ;;  %v2144_v32 = vmul.f32 %v2125_v49, %v9593_v11 }
 0x2e8   :  { %3540 = vrot.lane.b32.xlu1 %v6541_v10, %s5670_s20  ;;  %v2128_v56 = vsel %vm253_vm0, %v2116_v20, %v2124_v35  ;;  %v2140_v38 = vsel %vm253_vm0, %v2124_v35, %v6837_v46  ;;  %v2151_v35 = vmul.f32 %v2131_v53, %v9594_v41  ;;  %v2163_v45 = vpack.c.bf16 %v2146_v58, %v2142_v12  ;;  %v9595_v12 = vld [vmem:[#allocation17_spill] sm:$0xff] }
 0x2e9   :  { %v2153_v37 = vmul.f32 %v2140_v38, %v9592_v19  ;;  %v2156_v3 = vmul.f32 %v2128_v56, %v9593_v11  ;;  %3550 = vrot.lane.b32.xlu0 %v6483_v54, %s5670_s20  ;;  %2199 = vmatprep.subr.bf16.mxu0 %v2167_v62  ;;  %v2148_v38 = vmul.f32 %v2126_v42, %v9593_v11 }
 0x2ea   :  { %v1953_v50 = vpop.permute.xlu1 %1952  ;;  %v2145_v56 = vmul.f32 %v2138_v30, %v9592_v19  ;;  %v2141_v31 = vmul.f32 %v2137_v29, %v9592_v19  ;;  %v2147_v51 = vmul.f32 %v2130_v52, %v9594_v41  ;;  %v2168_v53 = vpack.c.bf16 %v2155_v43, %v2151_v35 }
 0x2eb   :  { %v2166_v46 = vpack.c.bf16 %v2153_v37, %v2149_v63  ;;  %v6979_v20 = vpop.permute.xlu0 %2913  ;;  %v2169_v4 = vpack.c.bf16 %v2156_v3, %v2152_v18  ;;  %v2165_v18 = vpack.c.bf16 %v2148_v38, %v2144_v32  ;;  %v2143_v30 = vmul.f32 %v2129_v39, %v9594_v41  ;;  %v3749_v38 = vld [vmem:[%s9257_s8 + $0x10] sm:$0xff] }
 0x2ec   :  { %3548 = vrot.lane.b32.xlu1 %v6453_v55, %s5670_s20  ;;  %v2162_v62 = vpack.c.bf16 %v2145_v56, %v2141_v31  ;;  %v1982_v49 = vsel %vm157_vm1, %v6843_v59, %v1953_v50  ;;  %v1981_v43 = vsel %vm157_vm1, %v6705_v28, %v6785_v2  ;;  %v1980_v3 = vsel %vm157_vm1, %v6693_v7, %v6775_v34 }
 0x2ed   :  { %3534 = vrot.lane.b32.xlu0 %v6459_v0, %s5670_s20  ;;  %2200 = vmatpush1.bf16.msra.mxu0 %v2166_v46  ;;  %v2164_v58 = vpack.c.bf16 %v2147_v51, %v2143_v30  ;;  %v1997_v29 = vmul.f32 %v1982_v49, %v9595_v12  ;;  %v9596_v39 = vmov 0   ;;  %v1972_v32 = vsel %vm157_vm1, %v6703_v57, %v6783_v25 }
 0x2ee   :  { %v1969_v42 = vpop.permute.xlu1 %1968  ;;  %2252 = vmatprep.subr.bf16.mxu1 %v2169_v4  ;;  %2201 = vmatprep.subr.bf16.mxu0 %v2163_v45  ;;  %v1984_v45 = vsel %vm157_vm1, %v6783_v25, %v6693_v7  ;;  %v1973_v51 = vsel %vm157_vm1, %v6713_v47, %v6793_v1  ;;  %v1978_v7 = vsel %vm157_vm1, %v1953_v50, %v6849_v60 }
 0x2ef   :  { %2253 = vmatpush1.bf16.msra.mxu1 %v2168_v53  ;;  %v6993_v6 = vpop.permute.xlu0 %3124  ;;  %v1974_v56 = vsel %vm157_vm1, %v6849_v60, %v1969_v42  ;;  %v1986_v35 = vsel %vm157_vm1, %v1969_v42, %v6843_v59  ;;  %v1993_v59 = vmul.f32 %v1981_v43, %v9595_v12  ;;  %v1985_v53 = vsel %vm157_vm1, %v6793_v1, %v6705_v28  ;;  %v5566_v28 = vld [vmem:[%s9256_s7 + $0x28] sm:$0xff]   ;;  %v3747_v1 = vld [vmem:[%s9257_s8] sm:$0xff]  ;;  %v9599_v60 = vld [vmem:[#allocation19_spill] sm:$0xff] }
 0x2f0   :  { %3532 = vrot.lane.b32.xlu1 %v6441_v40, %s5670_s20  ;;  %2254 = vmatprep.subr.bf16.mxu1 %v2165_v18  ;;  %v9597_v18 = vld [vmem:[#allocation18_spill] sm:$0xff] }
 0x2f1   :  { %3546 = vrot.lane.b32.xlu0 %v6689_v16, %s5670_s20  ;;  %2202 = vmatpush1.bf16.msra.mxu0 %v2162_v62  ;;  %v1996_v30 = vmul.f32 %v1986_v35, %v9597_v18  ;;  %v9598_v62 = vld [vmem:[#allocation20_spill] sm:$0xff]  ;;  %v1998_v35 = vmul.f32 %v1978_v7, %v9599_v60 }
 0x2f2   :  { %v7005_v63 = vpop.permute.xlu1 %2427 }
 0x2f3   :  { %2255 = vmatpush1.bf16.msra.mxu1 %v2164_v58  ;;  %v1955_v37 = vpop.permute.xlu0 %1954 }
 0x2f4   :  { %3556 = vrot.lane.b32.xlu1 %v6551_v36, %s5670_s20  ;;  %v1983_v52 = vsel %vm157_vm1, %v6851_v8, %v1955_v37  ;;  %5424 = vmatmul.mubr.msk.bf16.vlgmr.msra.gmra.mxu0 %vm2180_vm10, %v5565_v14  ;;  %v1979_v31 = vsel %vm157_vm1, %v1955_v37, %v6859_v26  ;;  %v1989_v37 = vmul.f32 %v1980_v3, %v9595_v12 }
 0x2f5   :  { %v2001_v46 = vmul.f32 %v1983_v52, %v9595_v12  ;;  %3562 = vrot.lane.b32.xlu0 %v6699_v24, %s5670_s20  ;;  %2229 = vmatprep.mubr.bf16.mxu0 %v9596_v39  ;;  %v2002_v50 = vmul.f32 %v1979_v31, %v9599_v60  ;;  %v1995_v52 = vmul.f32 %v1973_v51, %v9598_v62 }
 0x2f6   :  { %v7034_v4 = vpop.permute.xlu1 %2443  ;;  %5426 = vmatmul.mubr.msk.bf16.vlgmr.msra.gmra.mxu1 %vm2180_vm10, %v5565_v14  ;;  %v1999_v14 = vmul.f32 %v1974_v56, %v9598_v62  ;;  %v1992_v56 = vmul.f32 %v1985_v53, %v9597_v18  ;;  %v1991_v51 = vmul.f32 %v1972_v32, %v9598_v62  ;;  %v2009_v7 = vpack.c.bf16 %v1993_v59, %v1989_v37  ;;  %v5567_v59 = vld [vmem:[%s9256_s7] sm:$0xff]  }
 0x2f7   :  { %v1971_v25 = vpop.permute.xlu0 %1970  ;;  %v2013_v42 = vpack.c.bf16 %v2001_v46, %v1997_v29  ;;  %2282 = vmatprep.mubr.bf16.mxu1 %v9596_v39  ;;  %v1977_v29 = vsel %vm157_vm1, %v6785_v2, %v6713_v47  ;;  %v1976_v47 = vsel %vm157_vm1, %v6775_v34, %v6703_v57  ;;  %v1988_v2 = vmul.f32 %v1984_v45, %v9597_v18  ;;  %v3748_v57 = vld [vmem:[%s9257_s8 + $0x8] sm:$0xff] }
 0x2f8   :  { %3763 = vperm.xlu1 %5542, %v3749_v38   ;;  %v1975_v58 = vsel %vm157_vm1, %v6859_v26, %v1971_v25  ;;  %v1987_v49 = vsel %vm157_vm1, %v1971_v25, %v6851_v8  ;;  %v3750_v38 = vld [vmem:[%s9257_s8 + $0x18] sm:$0xff]  ;;  %v1994_v53 = vmul.f32 %v1977_v29, %v9599_v60  ;;  %v2014_v25 = vpack.c.bf16 %v2002_v50, %v1998_v35 }
 0x2f9   :  { %v2000_v43 = vmul.f32 %v1987_v49, %v9597_v18  ;;  %v2003_v26 = vmul.f32 %v1975_v58, %v9598_v62  ;;  %3558 = vrot.lane.b32.xlu0 %v6561_v13, %s5670_s20  ;;  %2321 = vmatprep.subr.bf16.mxu0 %v2013_v42  ;;  %v1990_v34 = vmul.f32 %v1976_v47, %v9599_v60  ;;  %v9602_v47 = vld [vmem:[#allocation66_spill] sm:$0xff] }
 0x2fa   :  { %v7081_v8 = vpop.permute.xlu1 %2028  ;;  %v2008_v32 = vpack.c.bf16 %v1992_v56, %v1988_v2  ;;  %v2457_v49 = vsel %vm572_vm4, %v6857_v5, %v7005_v63  ;;  %v2461_v37 = vsel %vm572_vm4, %v7034_v4, %v6857_v5  ;;  %v2447_v56 = vsel %vm572_vm4, %v6719_v33, %v6799_v27 }
 0x2fb   :  { %v2012_v46 = vpack.c.bf16 %v2000_v43, %v1996_v30  ;;  %v7094_v31 = vpop.permute.xlu0 %3108  ;;  %v2015_v3 = vpack.c.bf16 %v2003_v26, %v1999_v14  ;;  %v2011_v30 = vpack.c.bf16 %v1995_v52, %v1991_v51  ;;  %v2010_v14 = vpack.c.bf16 %v1994_v53, %v1990_v34  ;;  %v9600_v43 = vld [vmem:[#allocation21_spill] sm:$0xff] }
 0x2fc   :  { %3753 = vperm.xlu1 %5542, %v3747_v1   ;;  %5425 = vmatmul.mubr.msk.bf16.gmra.mxu0 %vm2180_vm10, %v5566_v28  ;;  %v2456_v1 = vsel %vm572_vm4, %v6721_v9, %v6801_v48  ;;  %v2472_v26 = vmul.f32 %v2457_v49, %v9600_v43  ;;  %v2449_v5 = vsel %vm572_vm4, %v6865_v17, %v7034_v4 }
 0x2fd   :  { %3768 = vperm.xlu0 %5541, %v3750_v38   ;;  %2322 = vmatpush1.bf16.msra.mxu0 %v2012_v46  ;;  %v2455_v38 = vsel %vm572_vm4, %v6711_v15, %v6791_v21  ;;  %v2468_v46 = vmul.f32 %v2456_v1, %v9600_v43  ;;  %v2452_v1 = vsel %vm572_vm4, %v6801_v48, %v9602_v47 }
 0x2fe   :  { %v7104_v42 = vpop.permute.xlu1 %2044  ;;  %5427 = vmatmul.mubr.msk.bf16.gmra.mxu1 %vm2180_vm10, %v5566_v28  ;;  %2374 = vmatprep.subr.bf16.mxu1 %v2015_v3  ;;  %v9601_v3 = vld [vmem:[#allocation52_spill] sm:$0xff] }
 0x2ff   :  { %2323 = vmatprep.subr.bf16.mxu0 %v2009_v7  ;;  %2375 = vmatpush1.bf16.msra.mxu1 %v2014_v25  ;;  %v7111_v45 = vpop.permute.xlu0 %3112  ;;  %v2448_v2 = vsel %vm572_vm4, %v9602_v47, %v9601_v3  ;;  %v2460_v51 = vsel %vm572_vm4, %v9601_v3, %v6721_v9  ;;  %v2453_v25 = vsel %vm572_vm4, %v7005_v63, %v6865_v17  ;;  %v9603_v7 = vld [vmem:[#allocation22_spill] sm:$0xff] }
 0x300   :  { %2376 = vmatprep.subr.bf16.mxu1 %v2011_v30  ;;  %2341 = vmatprep.mubr.bf16.mxu0 %v9596_v39  ;;  %v2471_v30 = vmul.f32 %v2461_v37, %v9603_v7  ;;  %v5568_v9 = vld [vmem:[%s9256_s7 + $0x8] sm:$0xff]  }
 0x301   :  { %3758 = vperm.xlu0 %5541, %v3748_v57   ;;  %2324 = vmatpush1.bf16.msra.mxu0 %v2008_v32  ;;  %v9604_v32 = vld [vmem:[#allocation24_spill] sm:$0xff] }
 0x302   :  { %v7117_v58 = vpop.permute.xlu1 %2899  ;;  %2394 = vmatprep.mubr.bf16.mxu1 %v9596_v39 }
 0x303   :  { %2377 = vmatpush1.bf16.msra.mxu1 %v2010_v14  ;;  %v2430_v28 = vpop.permute.xlu0 %2429  ;;  %v9605_v14 = vld [vmem:[#allocation23_spill] sm:$0xff] }
 0x304   :  { %v2458_v50 = vsel %vm572_vm4, %v6867_v22, %v2430_v28  ;;  %5430 = vmatmul.mubr.msk.bf16.vlgmr.msra.gmra.mxu0 %vm2180_vm10, %v5567_v59  ;;  %v2454_v35 = vsel %vm572_vm4, %v2430_v28, %v6875_v61  ;;  %v2473_v37 = vmul.f32 %v2453_v25, %v9605_v14  ;;  %v2469_v3 = vmul.f32 %v2452_v1, %v9605_v14  ;;  %v9606_v25 = vld [vmem:[#allocation68_spill] sm:$0xff] }
 0x305   :  { %v2476_v29 = vmul.f32 %v2458_v50, %v9600_v43  ;;  %2351 = vmatprep.mubr.bf16.mxu0 %v9596_v39  ;;  %v2477_v49 = vmul.f32 %v2454_v35, %v9605_v14  ;;  %v2470_v50 = vmul.f32 %v2448_v2, %v9604_v32 }
 0x306   :  { %v7138_v52 = vpop.permute.xlu1 %2915  ;;  %5432 = vmatmul.mubr.msk.bf16.vlgmr.msra.gmra.mxu1 %vm2180_vm10, %v5567_v59  ;;  %v2474_v59 = vmul.f32 %v2449_v5, %v9604_v32 }
 0x307   :  { %v2446_v53 = vpop.permute.xlu0 %2445  ;;  %v2489_v4 = vpack.c.bf16 %v2476_v29, %v2472_v26  ;;  %2404 = vmatprep.mubr.bf16.mxu1 %v9596_v39  ;;  %v2467_v26 = vmul.f32 %v2460_v51, %v9603_v7  ;;  %v2490_v47 = vpack.c.bf16 %v2477_v49, %v2473_v37  ;;  %v9609_v49 = vld [vmem:[#allocation70_spill] sm:$0xff]  ;;  %v9612_v37 = vld [vmem:[#allocation63_spill] sm:$0xff] }
 0x308   :  { %v2450_v57 = vsel %vm572_vm4, %v6875_v61, %v2446_v53  ;;  %v2462_v34 = vsel %vm572_vm4, %v2446_v53, %v6867_v22  ;;  %v2464_v61 = vmul.f32 %v2455_v38, %v9600_v43  ;;  %v2459_v22 = vsel %vm572_vm4, %v6799_v27, %v6711_v15 }
 0x309   :  { %v2475_v17 = vmul.f32 %v2462_v34, %v9603_v7  ;;  %v2478_v63 = vmul.f32 %v2450_v57, %v9604_v32  ;;  %2520 = vmatprep.subr.bf16.mxu0 %v2489_v4  ;;  %v2451_v15 = vsel %vm572_vm4, %v6791_v21, %v6719_v33  ;;  %v2466_v27 = vmul.f32 %v2447_v56, %v9604_v32  ;;  %v9607_v34 = vld [vmem:[#allocation64_spill] sm:$0xff] }
 0x30a   :  { %v7185_v28 = vpop.permute.xlu1 %3114  ;;  %v2485_v48 = vpack.c.bf16 %v2468_v46, %v2464_v61  ;;  %v2463_v35 = vmul.f32 %v2459_v22, %v9603_v7  ;;  %v2465_v33 = vmul.f32 %v2451_v15, %v9605_v14  ;;  %v5569_v46 = vld [vmem:[%s9256_s7 + $0x30] sm:$0xff]   ;;  %v2062_v22 = vsel %vm204_vm5, %v7104_v42, %v9606_v25  ;;  %v9614_v15 = vld [vmem:[#allocation45_spill] sm:$0xff] }
 0x30b   :  { %v2488_v29 = vpack.c.bf16 %v2475_v17, %v2471_v30  ;;  %v7199_v5 = vpop.permute.xlu0 %3120  ;;  %v2491_v38 = vpack.c.bf16 %v2478_v63, %v2474_v59  ;;  %v2487_v51 = vpack.c.bf16 %v2470_v50, %v2466_v27  ;;  %v2058_v30 = vsel %vm204_vm5, %v9606_v25, %v7081_v8  ;;  %v9610_v63 = vld [vmem:[#allocation25_spill] sm:$0xff] }
 0x30c   :  { %5431 = vmatmul.mubr.msk.bf16.gmra.mxu0 %vm2180_vm10, %v5568_v9  ;;  %v2484_v21 = vpack.c.bf16 %v2467_v26, %v2463_v35  ;;  %v2486_v53 = vpack.c.bf16 %v2469_v3, %v2465_v33  ;;  %v2073_v61 = vmul.f32 %v2058_v30, %v9610_v63  ;;  %v9611_v26 = vld [vmem:[#allocation49_spill] sm:$0xff]  ;;  %v9616_v3 = vld [vmem:[#allocation72_spill] sm:$0xff] }
 0x30d   :  { %2521 = vmatpush1.bf16.msra.mxu0 %v2488_v29  ;;  %2573 = vmatprep.subr.bf16.mxu1 %v2491_v38  ;;  %v2056_v29 = vsel %vm204_vm5, %v9612_v37, %v9611_v26  ;;  %v9613_v38 = vld [vmem:[#allocation55_spill] sm:$0xff]  ;;  %v9617_v33 = vld [vmem:[#allocation61_spill] sm:$0xff] }
 0x30e   :  { %v7209_v2 = vpop.permute.xlu1 %3122  ;;  %5433 = vmatmul.mubr.msk.bf16.gmra.mxu1 %vm2180_vm10, %v5568_v9  ;;  %2522 = vmatprep.subr.bf16.mxu0 %v2485_v48  ;;  %v9608_v9 = vld [vmem:[#allocation48_spill] sm:$0xff]  ;;  %v2048_v27 = vsel %vm204_vm5, %v9614_v15, %v9613_v38  ;;  %v9615_v48 = vld [vmem:[#allocation69_spill] sm:$0xff] }
 0x30f   :  { %2574 = vmatpush1.bf16.msra.mxu1 %v2490_v47  ;;  %v7213_v56 = vpop.permute.xlu0 %3104  ;;  %2540 = vmatprep.mubr.bf16.mxu0 %v9596_v39  ;;  %v2057_v59 = vsel %vm204_vm5, %v9608_v9, %v9607_v34  ;;  %v2050_v35 = vsel %vm204_vm5, %v9615_v48, %v7104_v42  ;;  %v2061_v25 = vsel %vm204_vm5, %v9617_v33, %v9608_v9  ;;  %v5570_v9 = vld [vmem:[%s9256_s7 + $0x38] sm:$0xff]  }
 0x310   :  { %2575 = vmatprep.subr.bf16.mxu1 %v2487_v51  ;;  %2593 = vmatprep.mubr.bf16.mxu1 %v9596_v39  ;;  %v2069_v51 = vmul.f32 %v2057_v59, %v9610_v63 }
 0x311   :  { %2523 = vmatpush1.bf16.msra.mxu0 %v2484_v21  ;;  %v9618_v21 = vld [vmem:[#allocation54_spill] sm:$0xff] }
 0x312   :  { %v7220_v4 = vpop.permute.xlu1 %3106 }
 0x313   :  { %2576 = vmatpush1.bf16.msra.mxu1 %v2486_v53  ;;  %v2031_v57 = vpop.permute.xlu0 %2030  ;;  %v2049_v53 = vsel %vm204_vm5, %v9618_v21, %v9617_v33  ;;  %v9621_v33 = vld [vmem:[#allocation28_spill] sm:$0xff] }
 0x314   :  { %v2059_v17 = vsel %vm204_vm5, %v9609_v49, %v2031_v57  ;;  %5440 = vmatmul.mubr.msk.bf16.vlgmr.msra.gmra.mxu0 %vm2180_vm10, %v5569_v46  ;;  %v2055_v47 = vsel %vm204_vm5, %v2031_v57, %v9616_v3  ;;  %v9619_v57 = vld [vmem:[#allocation27_spill] sm:$0xff] }
 0x315   :  { %v2077_v1 = vmul.f32 %v2059_v17, %v9610_v63  ;;  %2550 = vmatprep.mubr.bf16.mxu0 %v9596_v39  ;;  %v2072_v59 = vmul.f32 %v2062_v22, %v9619_v57  ;;  %v2078_v11 = vmul.f32 %v2055_v47, %v9621_v33 }
 0x316   :  { %v7240_v50 = vpop.permute.xlu1 %3130  ;;  %5442 = vmatmul.mubr.msk.bf16.vlgmr.msra.gmra.mxu1 %vm2180_vm10, %v5569_v46  ;;  %v2054_v46 = vsel %vm204_vm5, %v7081_v8, %v9615_v48 }
 0x317   :  { %v2047_v30 = vpop.permute.xlu0 %2046  ;;  %v2090_v42 = vpack.c.bf16 %v2077_v1, %v2073_v61  ;;  %2603 = vmatprep.mubr.bf16.mxu1 %v9596_v39  ;;  %v9620_v61 = vld [vmem:[#allocation26_spill] sm:$0xff] }
 0x318   :  { %v2051_v17 = vsel %vm204_vm5, %v9616_v3, %v2047_v30  ;;  %v2063_v19 = vsel %vm204_vm5, %v2047_v30, %v9609_v49  ;;  %v2075_v1 = vmul.f32 %v2050_v35, %v9620_v61  ;;  %v2065_v3 = vmul.f32 %v2056_v29, %v9610_v63 }
 0x319   :  { %v2076_v8 = vmul.f32 %v2063_v19, %v9619_v57  ;;  %v2079_v22 = vmul.f32 %v2051_v17, %v9620_v61  ;;  %2642 = vmatprep.subr.bf16.mxu0 %v2090_v42  ;;  %v2060_v49 = vsel %vm204_vm5, %v9613_v38, %v9612_v37  ;;  %v2053_v35 = vsel %vm204_vm5, %v9607_v34, %v9618_v21 }
 0x31a   :  { %v7287_v48 = vpop.permute.xlu1 %3110  ;;  %v2071_v47 = vmul.f32 %v2049_v53, %v9620_v61  ;;  %v2068_v19 = vmul.f32 %v2061_v25, %v9619_v57  ;;  %v2074_v30 = vmul.f32 %v2054_v46, %v9621_v33  ;;  %v2052_v37 = vsel %vm204_vm5, %v9611_v26, %v9614_v15 }
 0x31b   :  { %v2089_v42 = vpack.c.bf16 %v2076_v8, %v2072_v59  ;;  %v7301_v17 = vpop.permute.xlu0 %3128  ;;  %v2092_v29 = vpack.c.bf16 %v2079_v22, %v2075_v1  ;;  %v2067_v38 = vmul.f32 %v2048_v27, %v9620_v61  ;;  %v2086_v34 = vpack.c.bf16 %v2069_v51, %v2065_v3  ;;  %v9622_v51 = vld [vmem:[#allocation56_spill] sm:$0xff]  ;;  %v5571_v1 = vld [vmem:[%s9256_s7 + $0x10] sm:$0xff]  }
 0x31c   :  { %5441 = vmatmul.mubr.msk.bf16.gmra.mxu0 %vm2180_vm10, %v5570_v9  ;;  %v2064_v21 = vmul.f32 %v2060_v49, %v9619_v57  ;;  %v2070_v53 = vmul.f32 %v2053_v35, %v9621_v33  ;;  %v2091_v25 = vpack.c.bf16 %v2078_v11, %v2074_v30  ;;  %v2066_v26 = vmul.f32 %v2052_v37, %v9621_v33  ;;  %v9623_v22 = vld [vmem:[#allocation59_spill] sm:$0xff]  ;;  %v9624_v35 = vld [vmem:[#allocation50_spill] sm:$0xff] }
 0x31d   :  { %2643 = vmatpush1.bf16.msra.mxu0 %v2089_v42  ;;  %2695 = vmatprep.subr.bf16.mxu1 %v2092_v29  ;;  %v2088_v59 = vpack.c.bf16 %v2071_v47, %v2067_v38  ;;  %v2746_v11 = vpack.c.bf16 %v6689_v16, %v9622_v51  ;;  %v2748_v3 = vpack.c.bf16 %v6699_v24, %v9623_v22  ;;  %v9625_v47 = vld [vmem:[#allocation62_spill] sm:$0xff]  ;;  %v9627_v42 = vld [vmem:[#allocation53_spill] sm:$0xff]  ;;  %v9628_v29 = vld [vmem:[#allocation67_spill] sm:$0xff] }
 0x31e   :  { %v7311_v46 = vpop.permute.xlu1 %3118  ;;  %5443 = vmatmul.mubr.msk.bf16.gmra.mxu1 %vm2180_vm10, %v5570_v9  ;;  %2644 = vmatprep.subr.bf16.mxu0 %v2086_v34  ;;  %v2085_v15 = vpack.c.bf16 %v2068_v19, %v2064_v21  ;;  %v2087_v9 = vpack.c.bf16 %v2070_v53, %v2066_v26  ;;  %v2745_v16 = vpack.c.bf16 %v9625_v47, %v9624_v35  ;;  %v9626_v19 = vld [vmem:[#allocation47_spill] sm:$0xff]  ;;  %v5572_v21 = vld [vmem:[%s9256_s7 + $0x18] sm:$0xff]   ;;  %v9634_v22 = vld [vmem:[#allocation58_spill] sm:$0xff] }
 0x31f   :  { %2696 = vmatpush1.bf16.msra.mxu1 %v2091_v25  ;;  %v7315_v27 = vpop.permute.xlu0 %3339  ;;  %2662 = vmatprep.mubr.bf16.mxu0 %v9596_v39  ;;  %v2742_v30 = vpack.c.bf16 %v9626_v19, %v6541_v10  ;;  %v2747_v37 = vpack.c.bf16 %v9628_v29, %v9627_v42  ;;  %v2744_v24 = vpack.c.bf16 %v6561_v13, %v6551_v36  ;;  %v9635_v47 = vld [vmem:[#allocation46_spill] sm:$0xff] }
 0x320   :  { %2697 = vmatprep.subr.bf16.mxu1 %v2088_v59  ;;  %2715 = vmatprep.mubr.bf16.mxu1 %v9596_v39  ;;  %v2741_v10 = vpack.c.bf16 %v6459_v0, %v6441_v40  ;;  %v2743_v53 = vpack.c.bf16 %v6483_v54, %v6453_v55  ;;  %v5573_v55 = vld [vmem:[%s9256_s7 + $0x40] sm:$0xff]   ;;  %v9629_v0 = vld [vmem:[#allocation60_spill] sm:$0xff]  ;;  %v9636_v19 = vld [vmem:[#allocation30_spill] sm:$0xff] }
 0x321   :  { %2645 = vmatpush1.bf16.msra.mxu0 %v2085_v15  ;;  %v9630_v54 = vld [vmem:[#allocation65_spill] sm:$0xff]  ;;  %v9631_v15 = vld [vmem:[#allocation71_spill] sm:$0xff]  ;;  %v9637_v42 = vld [vmem:[#allocation74_spill] sm:$0xff] }
 0x322   :  { %v7324_v8 = vpop.permute.xlu1 %3102  ;;  %2777 = vmatprep.subr.bf16.mxu0 %v2746_v11  ;;  %v2924_v59 = vsel %vm1048_vm6, %v9630_v54, %v9629_v0  ;;  %v2925_v51 = vsel %vm1048_vm6, %v7117_v58, %v9631_v15  ;;  %v9632_v11 = vld [vmem:[#allocation73_spill] sm:$0xff] }
 0x323   :  { %2698 = vmatpush1.bf16.msra.mxu1 %v2087_v9  ;;  %v7328_v49 = vpop.permute.xlu0 %3323  ;;  %v9633_v9 = vld [vmem:[#allocation51_spill] sm:$0xff] }
 0x324   :  { %2830 = vmatprep.subr.bf16.mxu1 %v2748_v3  ;;  %5446 = vmatmul.mubr.msk.bf16.vlgmr.msra.gmra.mxu0 %vm2180_vm10, %v5571_v1  ;;  %v2923_v3 = vsel %vm1048_vm6, %v9634_v22, %v9633_v9 }
 0x325   :  { %2778 = vmatpush1.bf16.msra.mxu0 %v2745_v16  ;;  %2672 = vmatprep.mubr.bf16.mxu0 %v9596_v39  ;;  %v2928_v16 = vsel %vm1048_vm6, %v9635_v47, %v9630_v54 }
 0x326   :  { %v7337_v38 = vpop.permute.xlu1 %3126  ;;  %5448 = vmatmul.mubr.msk.bf16.vlgmr.msra.gmra.mxu1 %vm2180_vm10, %v5571_v1  ;;  %2779 = vmatprep.subr.bf16.mxu0 %v2742_v30  ;;  %v2929_v1 = vsel %vm1048_vm6, %v9632_v11, %v7117_v58  ;;  %v2940_v30 = vmul.f32 %v2924_v59, %v9636_v19  ;;  %v9640_v59 = vld [vmem:[#allocation57_spill] sm:$0xff] }
 0x327   :  { %2831 = vmatpush1.bf16.msra.mxu1 %v2747_v37  ;;  %v7343_v34 = vpop.permute.xlu0 %3327  ;;  %2725 = vmatprep.mubr.bf16.mxu1 %v9596_v39  ;;  %v9638_v37 = vld [vmem:[#allocation75_spill] sm:$0xff]  ;;  %v2927_v23 = vsel %vm1048_vm6, %v9640_v59, %v9634_v22  ;;  %v2932_v22 = vsel %vm1048_vm6, %v6979_v20, %v9635_v47  ;;  %v5574_v47 = vld [vmem:[%s9256_s7 + $0x48] sm:$0xff]  }
 0x328   :  { %2832 = vmatprep.subr.bf16.mxu1 %v2744_v24  ;;  %v9639_v24 = vld [vmem:[#allocation31_spill] sm:$0xff] }
 0x329   :  { %2780 = vmatpush1.bf16.msra.mxu0 %v2741_v10  ;;  %v2943_v10 = vmul.f32 %v2929_v1, %v9639_v24  ;;  %v2933_v1 = vsel %vm1048_vm6, %v7138_v52, %v9632_v11 }
 0x32a   :  { %v7353_v25 = vpop.permute.xlu1 %3329 }
 0x32b   :  { %2833 = vmatpush1.bf16.msra.mxu1 %v2743_v53  ;;  %v7355_v36 = vpop.permute.xlu0 %3335 }
 0x32c   :  { %5447 = vmatmul.mubr.msk.bf16.gmra.mxu0 %vm2180_vm10, %v5572_v21 }
 0x32d   :  { %2797 = vmatprep.mubr.bf16.mxu0 %v9596_v39 }
 0x32e   :  { %v7358_v13 = vpop.permute.xlu1 %3337  ;;  %5449 = vmatmul.mubr.msk.bf16.gmra.mxu1 %vm2180_vm10, %v5572_v21  ;;  %v2944_v21 = vmul.f32 %v2925_v51, %v9636_v19  ;;  %v2921_v51 = vsel %vm1048_vm6, %v9631_v15, %v7138_v52  ;;  %v9641_v15 = vld [vmem:[#allocation12_spill] sm:$0xff] }
 0x32f   :  { %v7362_v40 = vpop.permute.xlu0 %3319  ;;  %2850 = vmatprep.mubr.bf16.mxu1 %v9596_v39  ;;  %v2931_v61 = vsel %vm1048_vm6, %v9641_v15, %v9640_v59 }
 0x332   :  { %v7372_v26 = vpop.permute.xlu1 %3321 }
 0x333   :  { %v2902_v35 = vpop.permute.xlu0 %2901 }
 0x334   :  { %v2926_v29 = vsel %vm1048_vm6, %v2902_v35, %v9637_v42  ;;  %v2930_v58 = vsel %vm1048_vm6, %v9638_v37, %v2902_v35  ;;  %5456 = vmatmul.mubr.msk.bf16.vlgmr.msra.gmra.mxu0 %vm2180_vm10, %v5573_v55  ;;  %v2936_v35 = vmul.f32 %v2923_v3, %v9636_v19 }
 0x335   :  { %v2947_v53 = vmul.f32 %v2930_v58, %v9639_v24  ;;  %v2948_v54 = vmul.f32 %v2926_v29, %v9636_v19  ;;  %2807 = vmatprep.mubr.bf16.mxu0 %v9596_v39  ;;  %v2939_v29 = vmul.f32 %v2928_v16, %v9639_v24  ;;  %v9642_v16 = vld [vmem:[#allocation32_spill] sm:$0xff] }
 0x336   :  { %v7402_v41 = vpop.permute.xlu1 %3345  ;;  %5458 = vmatmul.mubr.msk.bf16.vlgmr.msra.gmra.mxu1 %vm2180_vm10, %v5573_v55  ;;  %v2957_v11 = vpack.c.bf16 %v2940_v30, %v2936_v35  ;;  %v2920_v30 = vsel %vm1048_vm6, %v9629_v0, %v6979_v20 }
 0x337   :  { %v2960_v3 = vpack.c.bf16 %v2947_v53, %v2943_v10  ;;  %v2918_v58 = vpop.permute.xlu0 %2917  ;;  %v2961_v19 = vpack.c.bf16 %v2948_v54, %v2944_v21  ;;  %2860 = vmatprep.mubr.bf16.mxu1 %v9596_v39  ;;  %v2945_v10 = vmul.f32 %v2921_v51, %v9642_v16  ;;  %v9643_v21 = vld [vmem:[#allocation29_spill] sm:$0xff]  ;;  %v2941_v20 = vmul.f32 %v2920_v30, %v9642_v16 }
 0x338   :  { %v2922_v52 = vsel %vm1048_vm6, %v9637_v42, %v2918_v58  ;;  %v2934_v55 = vsel %vm1048_vm6, %v2918_v58, %v9638_v37  ;;  %v2946_v53 = vmul.f32 %v2933_v1, %v9643_v21  ;;  %v2935_v42 = vmul.f32 %v2927_v23, %v9639_v24 }
 0x339   :  { %v2949_v54 = vmul.f32 %v2922_v52, %v9642_v16  ;;  %v2950_v59 = vmul.f32 %v2934_v55, %v9643_v21  ;;  %2992 = vmatprep.subr.bf16.mxu0 %v2961_v19  ;;  %v2942_v37 = vmul.f32 %v2932_v22, %v9643_v21  ;;  %v2919_v19 = vsel %vm1048_vm6, %v9633_v9, %v9641_v15  ;;  %v5575_v15 = vld [vmem:[%s9256_s7 + $0x50] sm:$0xff]  }
 0x33a   :  { %v7442_v57 = vpop.permute.xlu1 %3325  ;;  %2993 = vmatpush1.bf16.msra.mxu0 %v2960_v3  ;;  %v2956_v58 = vpack.c.bf16 %v2939_v29, %v2935_v42  ;;  %v2938_v23 = vmul.f32 %v2931_v61, %v9643_v21  ;;  %v2937_v22 = vmul.f32 %v2919_v19, %v9642_v16  ;;  %v3140_v61 = vsel %vm1247_vm7, %v7185_v28, %v7209_v2 }
 0x33b   :  { %v2962_v35 = vpack.c.bf16 %v2949_v54, %v2945_v10  ;;  %v7450_v51 = vpop.permute.xlu0 %3343  ;;  %2994 = vmatprep.subr.bf16.mxu0 %v2957_v11  ;;  %v2963_v1 = vpack.c.bf16 %v2950_v59, %v2946_v53  ;;  %v3144_v9 = vsel %vm1247_vm7, %v7220_v4, %v7185_v28  ;;  %v3138_v11 = vsel %vm1247_vm7, %v7287_v48, %v7311_v46  ;;  %v9644_v10 = vld [vmem:[#allocation34_spill] sm:$0xff]  ;;  %v9645_v53 = vld [vmem:[#allocation35_spill] sm:$0xff] }
 0x33c   :  { %5457 = vmatmul.mubr.msk.bf16.gmra.mxu0 %vm2180_vm10, %v5574_v47  ;;  %v2959_v29 = vpack.c.bf16 %v2942_v37, %v2938_v23  ;;  %v2958_v52 = vpack.c.bf16 %v2941_v20, %v2937_v22  ;;  %v3159_v28 = vmul.f32 %v3140_v61, %v9644_v10  ;;  %v3158_v54 = vmul.f32 %v3144_v9, %v9645_v53  ;;  %v9646_v20 = vld [vmem:[#allocation36_spill] sm:$0xff] }
 0x33d   :  { %3045 = vmatprep.subr.bf16.mxu1 %v2963_v1  ;;  %3012 = vmatprep.mubr.bf16.mxu0 %v9596_v39  ;;  %v3136_v42 = vsel %vm1247_vm7, %v7209_v2, %v7240_v50  ;;  %v3148_v30 = vsel %vm1247_vm7, %v7240_v50, %v7220_v4  ;;  %v3151_v1 = vmul.f32 %v3138_v11, %v9644_v10 }
 0x33e   :  { %v7459_v0 = vpop.permute.xlu1 %3333  ;;  %5459 = vmatmul.mubr.msk.bf16.gmra.mxu1 %vm2180_vm10, %v5574_v47  ;;  %2995 = vmatpush1.bf16.msra.mxu0 %v2956_v58  ;;  %v3139_v47 = vsel %vm1247_vm7, %v7111_v45, %v7199_v5  ;;  %v3142_v2 = vsel %vm1247_vm7, %v7324_v8, %v7287_v48  ;;  %v3143_v23 = vsel %vm1247_vm7, %v7213_v56, %v7111_v45 }
 0x33f   :  { %3046 = vmatpush1.bf16.msra.mxu1 %v2962_v35  ;;  %v7464_v3 = vpop.permute.xlu0 %3554  ;;  %3065 = vmatprep.mubr.bf16.mxu1 %v9596_v39  ;;  %v3155_v19 = vmul.f32 %v3139_v47, %v9644_v10  ;;  %v3146_v48 = vsel %vm1247_vm7, %v7337_v38, %v7324_v8  ;;  %v3150_v47 = vmul.f32 %v3142_v2, %v9645_v53  ;;  %v5576_v8 = vld [vmem:[%s9256_s7 + $0x58] sm:$0xff]  }
 0x340   :  { %3047 = vmatprep.subr.bf16.mxu1 %v2959_v29  ;;  %v3160_v29 = vmul.f32 %v3136_v42, %v9646_v20 }
 0x342   :  { %v7478_v55 = vpop.permute.xlu1 %3317 }
 0x343   :  { %3048 = vmatpush1.bf16.msra.mxu1 %v2958_v52  ;;  %v3117_v59 = vpop.permute.xlu0 %3116  ;;  %v9647_v52 = vld [vmem:[#allocation33_spill] sm:$0xff] }
 0x344   :  { %v3141_v37 = vsel %vm1247_vm7, %v3117_v59, %v6993_v6  ;;  %v3145_v35 = vsel %vm1247_vm7, %v7094_v31, %v3117_v59  ;;  %5466 = vmatmul.mubr.msk.bf16.vlgmr.msra.gmra.mxu0 %vm2180_vm10, %v5575_v15  ;;  %v3161_v11 = vmul.f32 %v3148_v30, %v9647_v52  ;;  %v3154_v30 = vmul.f32 %v3143_v23, %v9645_v53 }
 0x345   :  { %v3162_v58 = vmul.f32 %v3145_v35, %v9645_v53  ;;  %v3163_v4 = vmul.f32 %v3141_v37, %v9644_v10  ;;  %3022 = vmatprep.mubr.bf16.mxu0 %v9596_v39  ;;  %v3153_v37 = vmul.f32 %v3146_v48, %v9647_v52  ;;  %v5577_v48 = vld [vmem:[%s9256_s7 + $0x60] sm:$0xff]  }
 0x346   :  { %v7512_v50 = vpop.permute.xlu1 %3341  ;;  %5468 = vmatmul.mubr.msk.bf16.vlgmr.msra.gmra.mxu1 %vm2180_vm10, %v5575_v15 }
 0x347   :  { %v3175_v22 = vpack.c.bf16 %v3162_v58, %v3158_v54  ;;  %v3133_v61 = vpop.permute.xlu0 %3132  ;;  %v3176_v9 = vpack.c.bf16 %v3163_v4, %v3159_v28  ;;  %3075 = vmatprep.mubr.bf16.mxu1 %v9596_v39  ;;  %v3147_v28 = vsel %vm1247_vm7, %v7301_v17, %v7213_v56  ;;  %v3171_v4 = vpack.c.bf16 %v3154_v30, %v3150_v47  ;;  %v9648_v47 = vld [vmem:[#allocation38_spill] sm:$0xff] }
 0x348   :  { %v3137_v45 = vsel %vm1247_vm7, %v6993_v6, %v3133_v61  ;;  %v3149_v15 = vsel %vm1247_vm7, %v3133_v61, %v7094_v31  ;;  %v3172_v6 = vpack.c.bf16 %v3155_v19, %v3151_v1  ;;  %v3134_v31 = vsel %vm1247_vm7, %v7311_v46, %v7337_v38 }
 0x349   :  { %v3164_v54 = vmul.f32 %v3137_v45, %v9646_v20  ;;  %v3165_v59 = vmul.f32 %v3149_v15, %v9647_v52  ;;  %3207 = vmatprep.subr.bf16.mxu0 %v3176_v9  ;;  %v3135_v1 = vsel %vm1247_vm7, %v7199_v5, %v7301_v17  ;;  %v3157_v58 = vmul.f32 %v3147_v28, %v9647_v52  ;;  %v9649_v45 = vld [vmem:[#allocation39_spill] sm:$0xff] }
 0x34a   :  { %v7544_v42 = vpop.permute.xlu1 %3544  ;;  %3208 = vmatpush1.bf16.msra.mxu0 %v3175_v22  ;;  %v3152_v46 = vmul.f32 %v3134_v31, %v9646_v20  ;;  %v3156_v23 = vmul.f32 %v3135_v1, %v9646_v20  ;;  %v3355_v17 = vsel %vm1446_vm8, %v7353_v25, %v7358_v13  ;;  %v3353_v9 = vsel %vm1446_vm8, %v7442_v57, %v7459_v0 }
 0x34b   :  { %v3177_v35 = vpack.c.bf16 %v3164_v54, %v3160_v29  ;;  %v7552_v56 = vpop.permute.xlu0 %3538  ;;  %3209 = vmatprep.subr.bf16.mxu0 %v3172_v6  ;;  %v3178_v2 = vpack.c.bf16 %v3165_v59, %v3161_v11  ;;  %v3174_v19 = vpack.c.bf16 %v3157_v58, %v3153_v37  ;;  %v3359_v29 = vsel %vm1446_vm8, %v7372_v26, %v7353_v25 }
 0x34c   :  { %5467 = vmatmul.mubr.msk.bf16.gmra.mxu0 %vm2180_vm10, %v5576_v8  ;;  %v3173_v22 = vpack.c.bf16 %v3156_v23, %v3152_v46  ;;  %v3354_v11 = vsel %vm1446_vm8, %v7343_v34, %v7355_v36  ;;  %v3374_v25 = vmul.f32 %v3355_v17, %v9648_v47  ;;  %v3373_v15 = vmul.f32 %v3359_v29, %v9649_v45 }
 0x34d   :  { %3260 = vmatprep.subr.bf16.mxu1 %v3178_v2  ;;  %3227 = vmatprep.mubr.bf16.mxu0 %v9596_v39  ;;  %v3351_v28 = vsel %vm1446_vm8, %v7358_v13, %v7402_v41  ;;  %v3363_v54 = vsel %vm1446_vm8, %v7402_v41, %v7372_v26  ;;  %v3366_v30 = vmul.f32 %v3353_v9, %v9648_v47  ;;  %v9650_v2 = vld [vmem:[#allocation40_spill] sm:$0xff] }
 0x34e   :  { %v7561_v38 = vpop.permute.xlu1 %3552  ;;  %5469 = vmatmul.mubr.msk.bf16.gmra.mxu1 %vm2180_vm10, %v5576_v8  ;;  %3210 = vmatpush1.bf16.msra.mxu0 %v3171_v4  ;;  %v3357_v13 = vsel %vm1446_vm8, %v7478_v55, %v7442_v57  ;;  %v3370_v37 = vmul.f32 %v3354_v11, %v9648_v47  ;;  %v3375_v1 = vmul.f32 %v3351_v28, %v9650_v2 }
 0x34f   :  { %3261 = vmatpush1.bf16.msra.mxu1 %v3177_v35  ;;  %v7566_v5 = vpop.permute.xlu0 %3542  ;;  %3280 = vmatprep.mubr.bf16.mxu1 %v9596_v39  ;;  %v3358_v35 = vsel %vm1446_vm8, %v7362_v40, %v7343_v34  ;;  %v3361_v57 = vsel %vm1446_vm8, %v7512_v50, %v7478_v55  ;;  %v3365_v17 = vmul.f32 %v3357_v13, %v9649_v45  ;;  %v5578_v55 = vld [vmem:[%s9256_s7 + $0x68] sm:$0xff]  }
 0x350   :  { %3262 = vmatprep.subr.bf16.mxu1 %v3174_v19  ;;  %v9651_v19 = vld [vmem:[#allocation37_spill] sm:$0xff] }
 0x351   :  { %v3376_v23 = vmul.f32 %v3363_v54, %v9651_v19  ;;  %v3350_v54 = vsel %vm1446_vm8, %v7355_v36, %v7450_v51  ;;  %v3570_v36 = vsel %vm1645_vm9, %v7544_v42, %v7561_v38 }
 0x352   :  { %v7580_v61 = vpop.permute.xlu1 %3536  ;;  %v3371_v13 = vmul.f32 %v3350_v54, %v9650_v2 }
 0x353   :  { %3263 = vmatpush1.bf16.msra.mxu1 %v3173_v22  ;;  %v3332_v8 = vpop.permute.xlu0 %3331 }
 0x354   :  { %v3356_v59 = vsel %vm1446_vm8, %v3332_v8, %v7315_v27  ;;  %v3360_v6 = vsel %vm1446_vm8, %v7328_v49, %v3332_v8  ;;  %5476 = vmatmul.mubr.msk.bf16.vlgmr.msra.gmra.mxu0 %vm2180_vm10, %v5577_v48 }
 0x355   :  { %v3377_v31 = vmul.f32 %v3360_v6, %v9649_v45  ;;  %v3378_v41 = vmul.f32 %v3356_v59, %v9648_v47  ;;  %3237 = vmatprep.mubr.bf16.mxu0 %v9596_v39 }
 0x356   :  { %v3561_v26 = vpop.permute.xlu1 %3560  ;;  %5478 = vmatmul.mubr.msk.bf16.vlgmr.msra.gmra.mxu1 %vm2180_vm10, %v5577_v48  ;;  %v3362_v48 = vsel %vm1446_vm8, %v7450_v51, %v7362_v40  ;;  %v3574_v51 = vsel %vm1645_vm9, %v7580_v61, %v7544_v42 }
 0x357   :  { %v3390_v58 = vpack.c.bf16 %v3377_v31, %v3373_v15  ;;  %v3348_v4 = vpop.permute.xlu0 %3347  ;;  %v3391_v46 = vpack.c.bf16 %v3378_v41, %v3374_v25  ;;  %3290 = vmatprep.mubr.bf16.mxu1 %v9596_v39  ;;  %v3369_v25 = vmul.f32 %v3358_v35, %v9649_v45  ;;  %v3368_v15 = vmul.f32 %v3361_v57, %v9651_v19  ;;  %v5579_v41 = vld [vmem:[%s9256_s7 + $0x70] sm:$0xff]   ;;  %v9652_v57 = vld [vmem:[#allocation42_spill] sm:$0xff] }
 0x358   :  { %v3352_v34 = vsel %vm1446_vm8, %v7315_v27, %v3348_v4  ;;  %v3364_v29 = vsel %vm1446_vm8, %v3348_v4, %v7328_v49  ;;  %v3387_v27 = vpack.c.bf16 %v3370_v37, %v3366_v30  ;;  %v3349_v49 = vsel %vm1446_vm8, %v7459_v0, %v7512_v50  ;;  %v9653_v4 = vld [vmem:[#allocation43_spill] sm:$0xff] }
 0x359   :  { %v3379_v22 = vmul.f32 %v3352_v34, %v9650_v2  ;;  %v3380_v9 = vmul.f32 %v3364_v29, %v9651_v19  ;;  %3422 = vmatprep.subr.bf16.mxu0 %v3391_v46  ;;  %v3372_v59 = vmul.f32 %v3362_v48, %v9651_v19  ;;  %v3386_v6 = vpack.c.bf16 %v3369_v25, %v3365_v17 }
 0x35a   :  { %v3541_v11 = vpop.permute.xlu1 %3540  ;;  %3423 = vmatpush1.bf16.msra.mxu0 %v3390_v58  ;;  %v3367_v0 = vmul.f32 %v3349_v49, %v9650_v2  ;;  %v3589_v58 = vmul.f32 %v3570_v36, %v9652_v57  ;;  %v3588_v46 = vmul.f32 %v3574_v51, %v9653_v4  ;;  %v3578_v17 = vsel %vm1645_vm9, %v3561_v26, %v7580_v61 }
 0x35b   :  { %v3392_v8 = vpack.c.bf16 %v3379_v22, %v3375_v1  ;;  %v7650_v28 = vpop.permute.xlu0 %3550  ;;  %3424 = vmatprep.subr.bf16.mxu0 %v3387_v27  ;;  %v3393_v40 = vpack.c.bf16 %v3380_v9, %v3376_v23  ;;  %v3389_v30 = vpack.c.bf16 %v3372_v59, %v3368_v15  ;;  %v3566_v23 = vsel %vm1645_vm9, %v7561_v38, %v3561_v26  ;;  %v9654_v22 = vld [vmem:[#allocation44_spill] sm:$0xff] }
 0x35c   :  { %5477 = vmatmul.mubr.msk.bf16.gmra.mxu0 %vm2180_vm10, %v5578_v55  ;;  %v3388_v37 = vpack.c.bf16 %v3371_v13, %v3367_v0  ;;  %v3569_v34 = vsel %vm1645_vm9, %v7566_v5, %v7650_v28  ;;  %v3590_v9 = vmul.f32 %v3566_v23, %v9654_v22 }
 0x35d   :  { %3475 = vmatprep.subr.bf16.mxu1 %v3393_v40  ;;  %3442 = vmatprep.mubr.bf16.mxu0 %v9596_v39  ;;  %v3585_v25 = vmul.f32 %v3569_v34, %v9652_v57  ;;  %v9655_v40 = vld [vmem:[#allocation41_spill] sm:$0xff] }
 0x35e   :  { %v3549_v50 = vpop.permute.xlu1 %3548  ;;  %5479 = vmatmul.mubr.msk.bf16.gmra.mxu1 %vm2180_vm10, %v5578_v55  ;;  %3425 = vmatpush1.bf16.msra.mxu0 %v3386_v6  ;;  %v3591_v54 = vmul.f32 %v3578_v17, %v9655_v40 }
 0x35f   :  { %3476 = vmatpush1.bf16.msra.mxu1 %v3392_v8  ;;  %v3535_v31 = vpop.permute.xlu0 %3534  ;;  %3495 = vmatprep.mubr.bf16.mxu1 %v9596_v39  ;;  %v3568_v1 = vsel %vm1645_vm9, %v3541_v11, %v3549_v50 }
 0x360   :  { %3477 = vmatprep.subr.bf16.mxu1 %v3389_v30  ;;  %v3581_v38 = vmul.f32 %v3568_v1, %v9652_v57  ;;  %v3573_v49 = vsel %vm1645_vm9, %v3535_v31, %v7566_v5  ;;  %v5580_v5 = vld [vmem:[%s9256_s7 + $0x78] sm:$0xff]  }
 0x362   :  { %v3533_v35 = vpop.permute.xlu1 %3532  ;;  %v3602_v51 = vpack.c.bf16 %v3585_v25, %v3581_v38 }
 0x363   :  { %3478 = vmatpush1.bf16.msra.mxu1 %v3388_v37  ;;  %v3547_v42 = vpop.permute.xlu0 %3546  ;;  %v3572_v61 = vsel %vm1645_vm9, %v3533_v35, %v3541_v11 }
 0x364   :  { %v3571_v29 = vsel %vm1645_vm9, %v3547_v42, %v7464_v3  ;;  %v3575_v55 = vsel %vm1645_vm9, %v7552_v56, %v3547_v42  ;;  %5486 = vmatmul.mubr.msk.bf16.vlgmr.msra.gmra.mxu0 %vm2180_vm10, %v5579_v41  ;;  %v3580_v59 = vmul.f32 %v3572_v61, %v9653_v4 }
 0x365   :  { %v3592_v26 = vmul.f32 %v3575_v55, %v9653_v4  ;;  %v3593_v48 = vmul.f32 %v3571_v29, %v9652_v57  ;;  %3452 = vmatprep.mubr.bf16.mxu0 %v9596_v39  ;;  %v5582_v29 = vld [vmem:[%s9256_s7 + $0x88] sm:$0xff]  }
 0x366   :  { %5488 = vmatmul.mubr.msk.bf16.vlgmr.msra.gmra.mxu1 %vm2180_vm10, %v5579_v41  ;;  %v3557_v27 = vpop.permute.xlu1 %3556  ;;  %v3584_v41 = vmul.f32 %v3573_v49, %v9653_v4 }
 0x367   :  { %v3605_v15 = vpack.c.bf16 %v3592_v26, %v3588_v46  ;;  %v3563_v8 = vpop.permute.xlu0 %3562  ;;  %v3606_v11 = vpack.c.bf16 %v3593_v48, %v3589_v58  ;;  %3505 = vmatprep.mubr.bf16.mxu1 %v9596_v39  ;;  %v3564_v30 = vsel %vm1645_vm9, %v3549_v50, %v3557_v27 }
 0x368   :  { %v3567_v6 = vsel %vm1645_vm9, %v7464_v3, %v3563_v8  ;;  %v3579_v0 = vsel %vm1645_vm9, %v3563_v8, %v7552_v56  ;;  %v3576_v3 = vsel %vm1645_vm9, %v3557_v27, %v3533_v35  ;;  %v3601_v58 = vpack.c.bf16 %v3584_v41, %v3580_v59 }
 0x369   :  { %v3594_v13 = vmul.f32 %v3567_v6, %v9654_v22  ;;  %v3595_v36 = vmul.f32 %v3579_v0, %v9655_v40  ;;  %3637 = vmatprep.subr.bf16.mxu0 %v3606_v11  ;;  %v3582_v46 = vmul.f32 %v3564_v30, %v9654_v22  ;;  %v3583_v42 = vmul.f32 %v3576_v3, %v9655_v40 }
 0x36a   :  { %3638 = vmatpush1.bf16.msra.mxu0 %v3605_v15 }
 0x36b   :  { %v3607_v56 = vpack.c.bf16 %v3594_v13, %v3590_v9  ;;  %v3559_v37 = vpop.permute.xlu0 %3558  ;;  %3639 = vmatprep.subr.bf16.mxu0 %v3602_v51  ;;  %v3608_v1 = vpack.c.bf16 %v3595_v36, %v3591_v54 }
 0x36c   :  { %v3565_v50 = vsel %vm1645_vm9, %v7650_v28, %v3559_v37  ;;  %v3577_v23 = vsel %vm1645_vm9, %v3559_v37, %v3535_v31  ;;  %5487 = vmatmul.mubr.msk.bf16.gmra.mxu0 %vm2180_vm10, %v5580_v5  ;;  %v5581_v31 = vld [vmem:[%s9256_s7 + $0x80] sm:$0xff]  }
 0x36d   :  { %v3586_v35 = vmul.f32 %v3565_v50, %v9654_v22  ;;  %v3587_v17 = vmul.f32 %v3577_v23, %v9655_v40  ;;  %3690 = vmatprep.subr.bf16.mxu1 %v3608_v1  ;;  %3657 = vmatprep.mubr.bf16.mxu0 %v9596_v39 }
 0x36e   :  { %5489 = vmatmul.mubr.msk.bf16.gmra.mxu1 %vm2180_vm10, %v5580_v5  ;;  %3640 = vmatpush1.bf16.msra.mxu0 %v3601_v58 }
 0x36f   :  { %v3603_v34 = vpack.c.bf16 %v3586_v35, %v3582_v46  ;;  %3691 = vmatpush1.bf16.msra.mxu1 %v3607_v56  ;;  %v3604_v28 = vpack.c.bf16 %v3587_v17, %v3583_v42  ;;  %3710 = vmatprep.mubr.bf16.mxu1 %v9596_v39 }
 0x371   :  { %3692 = vmatprep.subr.bf16.mxu1 %v3604_v28 }
 0x373   :  { %3693 = vmatpush1.bf16.msra.mxu1 %v3603_v34 }
 0x374   :  { %5496 = vmatmul.mubr.msk.bf16.vlgmr.msra.gmra.mxu0 %vm2180_vm10, %v5581_v31 }
 0x375   :  { %3667 = vmatprep.mubr.bf16.mxu0 %v9596_v39 }
 0x376   :  { %5498 = vmatmul.mubr.msk.bf16.vlgmr.msra.gmra.mxu1 %vm2180_vm10, %v5581_v31 }
 0x377   :  { %3720 = vmatprep.mubr.bf16.mxu1 %v9596_v39 }
 0x37c   :  { %5497 = vmatmul.mubr.msk.bf16.gmra.mxu0 %vm2180_vm10, %v5582_v29 }
 0x37d   :  { %4107 = vmatprep.mubr.bf16.mxu0 %v9596_v39 }
 0x37e   :  { %5499 = vmatmul.mubr.msk.bf16.gmra.mxu1 %vm2180_vm10, %v5582_v29 }
 0x37f   :  { %4148 = vmatprep.mubr.bf16.mxu1 %v9596_v39 }
 0x3b4   :  { %v2221_v55 = vpop.f32.mrf.mxu0 }
 0x3b6   :  { %v2274_v38 = vpop.f32.mrf.mxu1  ;;  %v2223_v61 = vpop.f32.mrf.mxu0 }
 0x3b8   :  { %v2276_v26 = vpop.f32.mrf.mxu1  ;;  %v2225_v48 = vpop.f32.mrf.mxu0 }
 0x3ba   :  { %v2278_v9 = vpop.f32.mrf.mxu1  ;;  %v2227_v27 = vpop.f32.mrf.mxu0 }
 0x3bc   :  { %v2280_v25 = vpop.f32.mrf.mxu1  ;;  %v2231_v49 = vpop.f32.mrf.mxu0 }
 0x3be   :  { %v2284_v15 = vpop.f32.mrf.mxu1  ;;  %v2233_v8 = vpop.f32.mrf.mxu0 }
 0x3c0   :  { %v2286_v11 = vpop.f32.mrf.mxu1  ;;  %v2235_v54 = vpop.f32.mrf.mxu0 }
 0x3c2   :  { %v2288_v59 = vpop.f32.mrf.mxu1  ;;  %v2237_v6 = vpop.f32.mrf.mxu0 }
 0x3c4   :  { %v2290_v0 = vpop.f32.mrf.mxu1  ;;  %v2343_v5 = vpop.f32.mrf.mxu0 }
 0x3c5   :  { %v7753_v30 = vadd.f32 %v2343_v5, %v2221_v55 }
 0x3c6   :  { %v2396_v13 = vpop.f32.mrf.mxu1  ;;  %v2345_v36 = vpop.f32.mrf.mxu0 }
 0x3c7   :  { %v7755_v51 = vadd.f32 %v2396_v13, %v2274_v38  ;;  %v7757_v41 = vadd.f32 %v2345_v36, %v2223_v61 }
 0x3c8   :  { %v2398_v3 = vpop.f32.mrf.mxu1  ;;  %v2347_v56 = vpop.f32.mrf.mxu0 }
 0x3c9   :  { %v7759_v37 = vadd.f32 %v2398_v3, %v2276_v26  ;;  %v7761_v1 = vadd.f32 %v2347_v56, %v2225_v48 }
 0x3ca   :  { %v2400_v58 = vpop.f32.mrf.mxu1  ;;  %v2349_v46 = vpop.f32.mrf.mxu0 }
 0x3cb   :  { %v7763_v50 = vadd.f32 %v2400_v58, %v2278_v9  ;;  %v7765_v23 = vadd.f32 %v2349_v46, %v2227_v27 }
 0x3cc   :  { %v2402_v42 = vpop.f32.mrf.mxu1  ;;  %v2353_v35 = vpop.f32.mrf.mxu0 }
 0x3cd   :  { %v7767_v17 = vadd.f32 %v2402_v42, %v2280_v25  ;;  %v7769_v34 = vadd.f32 %v2353_v35, %v2231_v49 }
 0x3ce   :  { %v2406_v28 = vpop.f32.mrf.mxu1  ;;  %v2355_v31 = vpop.f32.mrf.mxu0 }
 0x3cf   :  { %v7771_v29 = vadd.f32 %v2406_v28, %v2284_v15  ;;  %v7773_v55 = vadd.f32 %v2355_v31, %v2233_v8 }
 0x3d0   :  { %v2408_v38 = vpop.f32.mrf.mxu1  ;;  %v2357_v61 = vpop.f32.mrf.mxu0 }
 0x3d1   :  { %v7775_v26 = vadd.f32 %v2408_v38, %v2286_v11  ;;  %v7777_v48 = vadd.f32 %v2357_v61, %v2235_v54 }
 0x3d2   :  { %v2410_v9 = vpop.f32.mrf.mxu1  ;;  %v2359_v27 = vpop.f32.mrf.mxu0 }
 0x3d3   :  { %v7779_v5 = vadd.f32 %v2410_v9, %v2288_v59  ;;  %v7781_v25 = vadd.f32 %v2359_v27, %v2237_v6 }
 0x3d4   :  { %v2412_v49 = vpop.f32.mrf.mxu1  ;;  %v2542_v13 = vpop.f32.mrf.mxu0 }
 0x3d5   :  { %v7783_v36 = vadd.f32 %v2412_v49, %v2290_v0 }
 0x3d6   :  { %v2595_v15 = vpop.f32.mrf.mxu1  ;;  %v2544_v3 = vpop.f32.mrf.mxu0 }
 0x3d8   :  { %v2597_v8 = vpop.f32.mrf.mxu1  ;;  %v2546_v56 = vpop.f32.mrf.mxu0 }
 0x3da   :  { %v2599_v58 = vpop.f32.mrf.mxu1  ;;  %v2548_v46 = vpop.f32.mrf.mxu0 }
 0x3dc   :  { %v2601_v11 = vpop.f32.mrf.mxu1  ;;  %v2552_v42 = vpop.f32.mrf.mxu0 }
 0x3de   :  { %v2605_v54 = vpop.f32.mrf.mxu1  ;;  %v2554_v35 = vpop.f32.mrf.mxu0 }
 0x3e0   :  { %v2607_v28 = vpop.f32.mrf.mxu1  ;;  %v2556_v31 = vpop.f32.mrf.mxu0 }
 0x3e2   :  { %v2609_v59 = vpop.f32.mrf.mxu1  ;;  %v2558_v38 = vpop.f32.mrf.mxu0 }
 0x3e4   :  { %v2611_v6 = vpop.f32.mrf.mxu1  ;;  %v2664_v61 = vpop.f32.mrf.mxu0 }
 0x3e5   :  { %v7785_v9 = vadd.f32 %v2664_v61, %v2542_v13 }
 0x3e6   :  { %v2717_v0 = vpop.f32.mrf.mxu1  ;;  %v2666_v27 = vpop.f32.mrf.mxu0 }
 0x3e7   :  { %v7787_v49 = vadd.f32 %v2717_v0, %v2595_v15  ;;  %v2667_v40 = vadd.f32 %v2666_v27, %v2544_v3 }
 0x3e8   :  { %v2719_v22 = vpop.f32.mrf.mxu1  ;;  %v2668_v4 = vpop.f32.mrf.mxu0 }
 0x3e9   :  { %v2720_v57 = vadd.f32 %v2719_v22, %v2597_v8  ;;  %v7789_v39 = vadd.f32 %v2668_v4, %v2546_v56 }
 0x3ea   :  { %v2721_v19 = vpop.f32.mrf.mxu1  ;;  %v2670_v2 = vpop.f32.mrf.mxu0 }
 0x3eb   :  { %v7791_v47 = vadd.f32 %v2721_v19, %v2599_v58  ;;  %v2671_v45 = vadd.f32 %v2670_v2, %v2548_v46 }
 0x3ec   :  { %v2723_v52 = vpop.f32.mrf.mxu1  ;;  %v2674_v20 = vpop.f32.mrf.mxu0 }
 0x3ed   :  { %v2724_v10 = vadd.f32 %v2723_v52, %v2601_v11  ;;  %v2675_v13 = vadd.f32 %v2674_v20, %v2552_v42 }
 0x3ee   :  { %v2727_v61 = vpop.f32.mrf.mxu1  ;;  %v2676_v53 = vpop.f32.mrf.mxu0 }
 0x3ef   :  { %v2728_v21 = vadd.f32 %v2727_v61, %v2605_v54  ;;  %v2677_v15 = vadd.f32 %v2676_v53, %v2554_v35 }
 0x3f0   :  { %v2729_v0 = vpop.f32.mrf.mxu1  ;;  %v2678_v3 = vpop.f32.mrf.mxu0 }
 0x3f1   :  { %v2730_v27 = vadd.f32 %v2729_v0, %v2607_v28  ;;  %v2679_v16 = vadd.f32 %v2678_v3, %v2556_v31 }
 0x3f2   :  { %v2731_v22 = vpop.f32.mrf.mxu1  ;;  %v2680_v4 = vpop.f32.mrf.mxu0 }
 0x3f3   :  { %v2732_v8 = vadd.f32 %v2731_v22, %v2609_v59  ;;  %v2681_v56 = vadd.f32 %v2680_v4, %v2558_v38 }
 0x3f4   :  { %v2733_v24 = vpop.f32.mrf.mxu1  ;;  %v7793_v19 = vpop.f32.mrf.mxu0 }
 0x3f5   :  { %v2734_v2 = vadd.f32 %v2733_v24, %v2611_v6 }
 0x3f6   :  { %v7795_v58 = vpop.f32.mrf.mxu1  ;;  %v2801_v52 = vpop.f32.mrf.mxu0 }
 0x3f7   :  { %v2872_v20 = vadd.f32 %v2801_v52, %v7757_v41 }
 0x3f8   :  { %v2854_v46 = vpop.f32.mrf.mxu1  ;;  %v7798_v11 = vpop.f32.mrf.mxu0 }
 0x3f9   :  { %v2874_v53 = vadd.f32 %v2854_v46, %v7759_v37 }
 0x3fa   :  { %v7801_v42 = vpop.f32.mrf.mxu1  ;;  %v2805_v54 = vpop.f32.mrf.mxu0 }
 0x3fb   :  { %v2876_v35 = vadd.f32 %v2805_v54, %v7765_v23 }
 0x3fc   :  { %v2858_v28 = vpop.f32.mrf.mxu1  ;;  %v2809_v31 = vpop.f32.mrf.mxu0 }
 0x3fd   :  { %v2878_v59 = vadd.f32 %v2858_v28, %v7767_v17  ;;  %v2879_v24 = vadd.f32 %v2809_v31, %v7769_v34 }
 0x3fe   :  { %v2862_v38 = vpop.f32.mrf.mxu1  ;;  %v2811_v6 = vpop.f32.mrf.mxu0 }
 0x3ff   :  { %v2881_v41 = vadd.f32 %v2862_v38, %v7771_v29  ;;  %v2880_v61 = vadd.f32 %v2811_v6, %v7773_v55 }
 0x400   :  { %v2864_v0 = vpop.f32.mrf.mxu1  ;;  %v2813_v3 = vpop.f32.mrf.mxu0 }
 0x401   :  { %v2882_v37 = vadd.f32 %v2864_v0, %v7775_v26  ;;  %v2883_v22 = vadd.f32 %v2813_v3, %v7777_v48 }
 0x402   :  { %v2866_v4 = vpop.f32.mrf.mxu1  ;;  %v2815_v23 = vpop.f32.mrf.mxu0 }
 0x403   :  { %v2885_v52 = vadd.f32 %v2866_v4, %v7779_v5  ;;  %v2884_v17 = vadd.f32 %v2815_v23, %v7781_v25 }
 0x404   :  { %v2868_v46 = vpop.f32.mrf.mxu1  ;;  %v7812_v34 = vpop.f32.mrf.mxu0 }
 0x405   :  { %v2886_v54 = vadd.f32 %v2868_v46, %v7783_v36 }
 0x406   :  { %v7815_v29 = vpop.f32.mrf.mxu1  ;;  %v3016_v55 = vpop.f32.mrf.mxu0 }
 0x407   :  { %v3087_v28 = vadd.f32 %v3016_v55, %v2667_v40 }
 0x408   :  { %v3069_v31 = vpop.f32.mrf.mxu1  ;;  %v7817_v38 = vpop.f32.mrf.mxu0 }
 0x409   :  { %v3089_v26 = vadd.f32 %v3069_v31, %v2720_v57 }
 0x40a   :  { %v7819_v48 = vpop.f32.mrf.mxu1  ;;  %v3020_v6 = vpop.f32.mrf.mxu0 }
 0x40b   :  { %v3091_v0 = vadd.f32 %v3020_v6, %v2671_v45 }
 0x40c   :  { %v3073_v5 = vpop.f32.mrf.mxu1  ;;  %v3024_v3 = vpop.f32.mrf.mxu0 }
 0x40d   :  { %v3093_v25 = vadd.f32 %v3073_v5, %v2724_v10  ;;  %v3094_v4 = vadd.f32 %v3024_v3, %v2675_v13 }
 0x40e   :  { %v3077_v23 = vpop.f32.mrf.mxu1  ;;  %v3026_v33 = vpop.f32.mrf.mxu0 }
 0x40f   :  { %v3096_v63 = vadd.f32 %v3077_v23, %v2728_v21  ;;  %v3095_v36 = vadd.f32 %v3026_v33, %v2677_v15 }
 0x410   :  { %v3079_v46 = vpop.f32.mrf.mxu1  ;;  %v3028_v32 = vpop.f32.mrf.mxu0 }
 0x411   :  { %v3097_v7 = vadd.f32 %v3079_v46, %v2730_v27  ;;  %v3098_v40 = vadd.f32 %v3028_v32, %v2679_v16 }
 0x412   :  { %v3081_v55 = vpop.f32.mrf.mxu1  ;;  %v3030_v14 = vpop.f32.mrf.mxu0 }
 0x413   :  { %v7821_v43 = vadd.f32 %v3081_v55, %v2732_v8  ;;  %v7823_v57 = vadd.f32 %v3030_v14, %v2681_v56 }
 0x414   :  { %v3083_v31 = vpop.f32.mrf.mxu1  ;;  %v3229_v45 = vpop.f32.mrf.mxu0 }
 0x415   :  { %v7825_v6 = vadd.f32 %v3083_v31, %v2734_v2 }
 0x416   :  { %v7827_v10 = vpop.f32.mrf.mxu1  ;;  %v3231_v13 = vpop.f32.mrf.mxu0 }
 0x417   :  { %v7829_v5 = vadd.f32 %v3231_v13, %v2872_v20 }
 0x418   :  { %v3284_v33 = vpop.f32.mrf.mxu1  ;;  %v7831_v21 = vpop.f32.mrf.mxu0 }
 0x419   :  { %v7833_v15 = vadd.f32 %v3284_v33, %v2874_v53 }
 0x41a   :  { %v7835_v32 = vpop.f32.mrf.mxu1  ;;  %v3235_v16 = vpop.f32.mrf.mxu0 }
 0x41b   :  { %v7837_v27 = vadd.f32 %v3235_v16, %v2876_v35 }
 0x41c   :  { %v3288_v14 = vpop.f32.mrf.mxu1  ;;  %v3239_v8 = vpop.f32.mrf.mxu0 }
 0x41d   :  { %v7839_v56 = vadd.f32 %v3288_v14, %v2878_v59  ;;  %v7841_v2 = vadd.f32 %v3239_v8, %v2879_v24 }
 0x41e   :  { %v3292_v3 = vpop.f32.mrf.mxu1  ;;  %v3241_v23 = vpop.f32.mrf.mxu0 }
 0x41f   :  { %v7843_v20 = vadd.f32 %v3292_v3, %v2881_v41  ;;  %v7845_v46 = vadd.f32 %v3241_v23, %v2880_v61 }
 0x420   :  { %v3294_v55 = vpop.f32.mrf.mxu1  ;;  %v3243_v53 = vpop.f32.mrf.mxu0 }
 0x421   :  { %v7847_v31 = vadd.f32 %v3294_v55, %v2882_v37  ;;  %v7849_v13 = vadd.f32 %v3243_v53, %v2883_v22 }
 0x422   :  { %v3296_v35 = vpop.f32.mrf.mxu1  ;;  %v3245_v33 = vpop.f32.mrf.mxu0 }
 0x423   :  { %v7851_v16 = vadd.f32 %v3296_v35, %v2885_v52  ;;  %v7853_v59 = vadd.f32 %v3245_v33, %v2884_v17  ;;  %v7859_v52 = vpop.permute.xlu1 %3763 }
 0x424   :  { %v3298_v24 = vpop.f32.mrf.mxu1  ;;  %v3444_v14 = vpop.f32.mrf.mxu0 }
 0x425   :  { %v7855_v8 = vadd.f32 %v3298_v24, %v2886_v54 }
 0x426   :  { %v3497_v41 = vpop.f32.mrf.mxu1  ;;  %v3446_v3 = vpop.f32.mrf.mxu0 }
 0x427   :  { %v3517_v61 = vadd.f32 %v3446_v3, %v3087_v28  ;;  %v3086_v28 = vadd.f32 %v7812_v34, %v7785_v9  ;;  %v7879_v34 = vpop.permute.xlu0 %3768 }
 0x428   :  { %v3499_v23 = vpop.f32.mrf.mxu1  ;;  %v3448_v62 = vpop.f32.mrf.mxu0 }
 0x429   :  { %v3519_v18 = vadd.f32 %v3499_v23, %v3089_v26 }
 0x42a   :  { %v3501_v37 = vpop.f32.mrf.mxu1  ;;  %v3450_v55 = vpop.f32.mrf.mxu0 }
 0x42b   :  { %v7857_v22 = vadd.f32 %v3450_v55, %v3091_v0  ;;  %v3088_v0 = vadd.f32 %v7815_v29, %v7787_v49  ;;  %v3516_v55 = vadd.f32 %v3444_v14, %v3086_v28 }
 0x42c   :  { %v3503_v53 = vpop.f32.mrf.mxu1  ;;  %v3454_v60 = vpop.f32.mrf.mxu0 }
 0x42d   :  { %v7861_v17 = vadd.f32 %v3503_v53, %v3093_v25  ;;  %v7863_v35 = vadd.f32 %v3454_v60, %v3094_v4  ;;  %v2871_v25 = vadd.f32 %v7793_v19, %v7753_v30  ;;  %v3518_v53 = vadd.f32 %v3497_v41, %v3088_v0 }
 0x42e   :  { %v3507_v54 = vpop.f32.mrf.mxu1  ;;  %v3456_v33 = vpop.f32.mrf.mxu0  ;;  %v3090_v19 = vadd.f32 %v7817_v38, %v7789_v39 }
 0x42f   :  { %v7867_v24 = vadd.f32 %v3507_v54, %v3096_v63  ;;  %v7869_v26 = vadd.f32 %v3456_v33, %v3095_v36  ;;  %v3754_v63 = vpop.permute.xlu1 %3753  ;;  %v2873_v36 = vadd.f32 %v7795_v58, %v7755_v51  ;;  %v3301_v49 = vadd.f32 %v3229_v45, %v2871_v25 }
 0x430   :  { %v3509_v3 = vpop.f32.mrf.mxu1  ;;  %v3458_v23 = vpop.f32.mrf.mxu0  ;;  %v3771_v58 = vadd.f32 %v3754_v63, %v3516_v55  ;;  %v3773_v45 = vadd.f32 %v3754_v63, %v3518_v53 }
 0x431   :  { %v7875_v60 = vadd.f32 %v3509_v3, %v3097_v7  ;;  %v7877_v4 = vadd.f32 %v3458_v23, %v3098_v40  ;;  %v2875_v7 = vadd.f32 %v7798_v11, %v7761_v1  ;;  %v3092_v40 = vadd.f32 %v7819_v48, %v7791_v47  ;;  %v3759_v3 = vpop.permute.xlu0 %3758 }
 0x432   :  { %v3511_v12 = vpop.f32.mrf.mxu1  ;;  %v3460_v9 = vpop.f32.mrf.mxu0  ;;  %v3303_v51 = vadd.f32 %v7827_v10, %v2873_v36  ;;  %v3772_v1 = vadd.f32 %v3754_v63, %v3517_v61  ;;  %v3520_v11 = vadd.f32 %v3448_v62, %v3090_v19  ;;  %v3774_v62 = vadd.f32 %v3754_v63, %v3519_v18 }
 0x433   :  { %v7884_v29 = vadd.f32 %v3511_v12, %v7821_v43  ;;  %v7887_v30 = vadd.f32 %v3460_v9, %v7823_v57  ;;  %v2877_v57 = vadd.f32 %v7801_v42, %v7763_v50  ;;  %v3522_v38 = vadd.f32 %v3501_v37, %v3092_v40 }
 0x434   :  { %v3513_v14 = vpop.f32.mrf.mxu1  ;;  %v3659_v41 = vpop.f32.mrf.mxu0  ;;  %v3305_v10 = vadd.f32 %v7831_v21, %v2875_v7  ;;  %v3775_v61 = vadd.f32 %v3759_v3, %v3520_v11  ;;  %v3781_v11 = vadd.f32 %v7859_v52, %v7867_v24  ;;  %v3783_v24 = vadd.f32 %v7879_v34, %v7877_v4 }
 0x435   :  { %v7897_v12 = vadd.f32 %v3513_v14, %v7825_v6  ;;  %v3731_v43 = vadd.f32 %v3659_v41, %v3301_v49  ;;  %v3307_v28 = vadd.f32 %v7835_v32, %v2877_v57  ;;  %v3776_v32 = vadd.f32 %v3759_v3, %v7857_v22 }
 0x436   :  { %v3712_v54 = vpop.f32.mrf.mxu1  ;;  %v3661_v39 = vpop.f32.mrf.mxu0  ;;  %v3779_v22 = vadd.f32 %v7859_v52, %v7863_v35 }
 0x437   :  { %v3787_v33 = vadd.f32 %v3771_v58, %v3731_v43  ;;  %v3733_v47 = vadd.f32 %v3712_v54, %v3303_v51  ;;  %v3732_v48 = vadd.f32 %v3661_v39, %v7829_v5  ;;  %v3777_v5 = vadd.f32 %v3759_v3, %v3522_v38 }
 0x438   :  { %v3714_v6 = vpop.f32.mrf.mxu1  ;;  %v3663_v0 = vpop.f32.mrf.mxu0  ;;  %v3780_v54 = vadd.f32 %v7859_v52, %v7869_v26 }
 0x439   :  { %vm3803_vm11 = vcmp.gt.f32.partialorder %v3787_v33, 0.0  ;;  %v3819_v23 = vmul.f32 0.01, %v3787_v33  ;;  %v3789_v50 = vadd.f32 %v3773_v45, %v3733_v47  ;;  %v7904_v42 = vadd.f32 %v3772_v1, %v3732_v48 }
 0x43a   :  { %v3734_v37 = vadd.f32 %v3714_v6, %v7833_v15  ;;  %v3735_v25 = vadd.f32 %v3663_v0, %v3305_v10  ;;  %v3716_v55 = vpop.f32.mrf.mxu1  ;;  %v3665_v53 = vpop.f32.mrf.mxu0  ;;  %v3778_v15 = vadd.f32 %v3759_v3, %v7861_v17  ;;  %v3782_v47 = vadd.f32 %v7859_v52, %v7875_v60 }
 0x43b   :  { %v7907_v9 = vsel %vm3803_vm11, %v3787_v33, %v3819_v23  ;;  %vm3805_vm12 = vcmp.gt.f32.partialorder %v3789_v50, 0.0  ;;  %v3821_v21 = vmul.f32 0.01, %v3789_v50  ;;  %v3737_v7 = vadd.f32 %v3716_v55, %v3307_v28 }
 0x43c   :  { %9656 = vst [vmem:[#allocation52_spill] sm:$0xff] %v7907_v9  ;;  %v7910_v36 = vadd.f32 %v3774_v62, %v3734_v37  ;;  %v3791_v49 = vadd.f32 %v3775_v61, %v3735_v25  ;;  %v3718_v19 = vpop.f32.mrf.mxu1  ;;  %3998 = vrot.lane.b32.xlu1 %v7907_v9, %s5662_s0  ;;  %v3669_v18 = vpop.f32.mrf.mxu0  ;;  %v3736_v63 = vadd.f32 %v3665_v53, %v7837_v27  ;;  %vm3804_vm15 = vcmp.gt.f32.partialorder %v7904_v42, 0.0 }
 0x43d   :  { %v3738_v40 = vadd.f32 %v3718_v19, %v7839_v56  ;;  %v3739_v14 = vadd.f32 %v3669_v18, %v7841_v2  ;;  %v7920_v41 = vsel %vm3805_vm12, %v3789_v50, %v3821_v21  ;;  %v3793_v57 = vadd.f32 %v3777_v5, %v3737_v7 }
 0x43e   :  { %9657 = vst [vmem:[#allocation66_spill] sm:$0xff] %v7920_v41  ;;  %vm3807_vm13 = vcmp.gt.f32.partialorder %v3791_v49, 0.0  ;;  %v3722_v51 = vpop.f32.mrf.mxu1  ;;  %v3671_v58 = vpop.f32.mrf.mxu0  ;;  %v3823_v43 = vmul.f32 0.01, %v3791_v49  ;;  %v7922_v45 = vadd.f32 %v3776_v32, %v3736_v63  ;;  %v3785_v0 = vadd.f32 %v7879_v34, %v7884_v29 }
 0x43f   :  { %v7924_v1 = vadd.f32 %v3778_v15, %v3738_v40  ;;  %v7926_v17 = vadd.f32 %v3779_v22, %v3739_v14  ;;  %v3741_v27 = vadd.f32 %v3722_v51, %v7843_v20  ;;  %v3740_v56 = vadd.f32 %v3671_v58, %v7845_v46 }
 0x440   :  { %v3724_v2 = vpop.f32.mrf.mxu1  ;;  %4014 = vrot.lane.b32.xlu1 %v7920_v41, %s5662_s0  ;;  %v3673_v35 = vpop.f32.mrf.mxu0  ;;  %v7936_v39 = vsel %vm3807_vm13, %v3791_v49, %v3823_v43  ;;  %v3825_v38 = vmul.f32 0.01, %v3793_v57  ;;  %vm3809_vm14 = vcmp.gt.f32.partialorder %v3793_v57, 0.0  ;;  %vm3806_vm2 = vcmp.gt.f32.partialorder %v7910_v36, 0.0 }
 0x441   :  { %9658 = vst [vmem:[#allocation68_spill] sm:$0xff] %v7936_v39  ;;  %4000 = vrot.lane.b32.xlu0 %v7936_v39, %s5662_s0  ;;  %v7940_v46 = vadd.f32 %v3781_v11, %v3741_v27  ;;  %v7942_v33 = vadd.f32 %v3780_v54, %v3740_v56  ;;  %v3742_v26 = vadd.f32 %v3724_v2, %v7847_v31  ;;  %vm3808_vm3 = vcmp.gt.f32.partialorder %v7922_v45, 0.0 }
 0x442   :  { %v3726_v20 = vpop.f32.mrf.mxu1  ;;  %v3743_v48 = vadd.f32 %v3673_v35, %v7849_v13  ;;  %v3675_v10 = vpop.f32.mrf.mxu0  ;;  %v7952_v6 = vsel %vm3809_vm14, %v3793_v57, %v3825_v38  ;;  %v3784_v31 = vadd.f32 %v7879_v34, %v7887_v30  ;;  %v3786_v13 = vadd.f32 %v7879_v34, %v7897_v12 }
 0x443   :  { %9659 = vst [vmem:[#allocation64_spill] sm:$0xff] %v7952_v6  ;;  %v7956_v3 = vadd.f32 %v3782_v47, %v3742_v26  ;;  %v3745_v60 = vadd.f32 %v3726_v20, %v7851_v16  ;;  %v3744_v4 = vadd.f32 %v3675_v10, %v7853_v59  ;;  %v3820_v59 = vmul.f32 0.01, %v7904_v42 }
 0x444   :  { %v3728_v28 = vpop.f32.mrf.mxu1  ;;  %3851 = vrot.lane.b32.xlu1 %v7907_v9, %s5664_s14  ;;  %v7958_v52 = vadd.f32 %v3783_v24, %v3743_v48  ;;  %v3822_v34 = vmul.f32 0.01, %v7910_v36  ;;  %v3824_v30 = vmul.f32 0.01, %v7922_v45  ;;  %v3826_v62 = vmul.f32 0.01, %v7924_v1 }
 0x445   :  { %4016 = vrot.lane.b32.xlu0 %v7952_v6, %s5662_s0  ;;  %v3746_v23 = vadd.f32 %v3728_v28, %v7855_v8  ;;  %v7971_v29 = vadd.f32 %v3785_v0, %v3745_v60  ;;  %v7973_v50 = vadd.f32 %v3784_v31, %v3744_v4  ;;  %v8022_v8 = vsel %vm3804_vm15, %v7904_v42, %v3820_v59 }
 0x446   :  { %9660 = vst [vmem:[#allocation48_spill] sm:$0xff] %v8022_v8  ;;  %v8033_v12 = vsel %vm3806_vm2, %v7910_v36, %v3822_v34  ;;  %v8038_v42 = vsel %vm3808_vm3, %v7922_v45, %v3824_v30  ;;  %vm3810_vm11 = vcmp.gt.f32.partialorder %v7924_v1, 0.0  ;;  %v3827_v37 = vmul.f32 0.01, %v7926_v17 }
 0x447   :  { %v7975_v16 = vadd.f32 %v3786_v13, %v3746_v23  ;;  %9661 = vst [vmem:[#allocation70_spill] sm:$0xff] %v8033_v12  ;;  %9662 = vst [vmem:[#allocation49_spill] sm:$0xff] %v8038_v42  ;;  %v8047_v61 = vsel %vm3810_vm11, %v7924_v1, %v3826_v62  ;;  %vm3811_vm12 = vcmp.gt.f32.partialorder %v7926_v17, 0.0  ;;  %v3829_v55 = vmul.f32 0.01, %v7940_v46 }
 0x448   :  { %3867 = vrot.lane.b32.xlu1 %v7920_v41, %s5664_s14  ;;  %9663 = vst [vmem:[#allocation63_spill] sm:$0xff] %v8047_v61  ;;  %v8098_v25 = vsel %vm3811_vm12, %v7926_v17, %v3827_v37  ;;  %vm3813_vm13 = vcmp.gt.f32.partialorder %v7940_v46, 0.0  ;;  %v3831_v53 = vmul.f32 0.01, %v7958_v52  ;;  %vm3815_vm14 = vcmp.gt.f32.partialorder %v7958_v52, 0.0 }
 0x449   :  { %3853 = vrot.lane.b32.xlu0 %v7936_v39, %s5664_s14  ;;  %9664 = vst [vmem:[#allocation55_spill] sm:$0xff] %v8098_v25  ;;  %v8111_v21 = vsel %vm3813_vm13, %v7940_v46, %v3829_v55  ;;  %v3833_v36 = vmul.f32 0.01, %v7971_v29  ;;  %vm3817_vm15 = vcmp.gt.f32.partialorder %v7971_v29, 0.0  ;;  %v3828_v48 = vmul.f32 0.01, %v7942_v33 }
 0x44a   :  { %9665 = vst [vmem:[#allocation45_spill] sm:$0xff] %v8111_v21  ;;  %v8116_v32 = vsel %vm3815_vm14, %v7958_v52, %v3831_v53  ;;  %vm3812_vm2 = vcmp.gt.f32.partialorder %v7942_v33, 0.0  ;;  %v3830_v52 = vmul.f32 0.01, %v7956_v3  ;;  %vm3814_vm3 = vcmp.gt.f32.partialorder %v7956_v3, 0.0  ;;  %v9671_v55 = vld [vmem:[#allocation17_spill] sm:$0xff] }
 0x44b   :  { %9666 = vst [vmem:[#allocation69_spill] sm:$0xff] %v8116_v32  ;;  %v8129_v19 = vsel %vm3817_vm15, %v7971_v29, %v3833_v36  ;;  %v8242_v0 = vsel %vm3812_vm2, %v7942_v33, %v3828_v48  ;;  %v3832_v31 = vmul.f32 0.01, %v7973_v50  ;;  %vm3816_vm11 = vcmp.gt.f32.partialorder %v7973_v50, 0.0  ;;  %v9672_v36 = vld [vmem:[#allocation19_spill] sm:$0xff] }
 0x44c   :  { %4242 = vrot.lane.b32.xlu1 %v7907_v9, %s5665_s15  ;;  %9667 = vst [vmem:[#allocation72_spill] sm:$0xff] %v8129_v19  ;;  %v8255_v33 = vsel %vm3814_vm3, %v7956_v3, %v3830_v52  ;;  %v3834_v29 = vmul.f32 0.01, %v7975_v16  ;;  %vm3818_vm12 = vcmp.gt.f32.partialorder %v7975_v16, 0.0 }
 0x44d   :  { %3869 = vrot.lane.b32.xlu0 %v7952_v6, %s5664_s14  ;;  %9668 = vst [vmem:[#allocation61_spill] sm:$0xff] %v8255_v33  ;;  %v8262_v23 = vsel %vm3816_vm11, %v7973_v50, %v3832_v31 }
 0x44e   :  { %9669 = vst [vmem:[#allocation54_spill] sm:$0xff] %v8262_v23  ;;  %v8277_v50 = vsel %vm3818_vm12, %v7975_v16, %v3834_v29 }
 0x44f   :  { %9670 = vst [vmem:[#allocation56_spill] sm:$0xff] %v8277_v50 }
 0x450   :  { %4258 = vrot.lane.b32.xlu1 %v7920_v41, %s5665_s15 }
 0x451   :  { %4244 = vrot.lane.b32.xlu0 %v7936_v39, %s5665_s15 }
 0x454   :  { %3924 = vrot.lane.b32.xlu1 %v7907_v9, %s5666_s16 }
 0x455   :  { %4260 = vrot.lane.b32.xlu0 %v7952_v6, %s5665_s15 }
 0x458   :  { %3940 = vrot.lane.b32.xlu1 %v7920_v41, %s5666_s16 }
 0x459   :  { %3926 = vrot.lane.b32.xlu0 %v7936_v39, %s5666_s16 }
 0x45c   :  { %4601 = vrot.lane.b32.xlu1 %v7920_v41, %s5667_s17 }
 0x45d   :  { %3942 = vrot.lane.b32.xlu0 %v7952_v6, %s5666_s16 }
 0x460   :  { %4585 = vrot.lane.b32.xlu1 %v7907_v9, %s5667_s17 }
 0x461   :  { %4603 = vrot.lane.b32.xlu0 %v7952_v6, %s5667_s17 }
 0x464   :  { %4764 = vrot.lane.b32.xlu1 %v7920_v41, %s5668_s18 }
 0x465   :  { %4587 = vrot.lane.b32.xlu0 %v7936_v39, %s5667_s17 }
 0x468   :  { %4748 = vrot.lane.b32.xlu1 %v7907_v9, %s5668_s18 }
 0x469   :  { %4766 = vrot.lane.b32.xlu0 %v7952_v6, %s5668_s18 }
 0x46c   :  { %4927 = vrot.lane.b32.xlu1 %v7920_v41, %s5669_s19 }
 0x46d   :  { %4750 = vrot.lane.b32.xlu0 %v7936_v39, %s5668_s18 }
 0x470   :  { %4911 = vrot.lane.b32.xlu1 %v7907_v9, %s5669_s19 }
 0x471   :  { %4929 = vrot.lane.b32.xlu0 %v7952_v6, %s5669_s19 }
 0x474   :  { %4006 = vrot.lane.b32.xlu1 %v8022_v8, %s5662_s0 }
 0x475   :  { %4913 = vrot.lane.b32.xlu0 %v7936_v39, %s5669_s19 }
 0x478   :  { %4022 = vrot.lane.b32.xlu1 %v8033_v12, %s5662_s0 }
 0x479   :  { %4008 = vrot.lane.b32.xlu0 %v8038_v42, %s5662_s0 }
 0x47c   :  { %3859 = vrot.lane.b32.xlu1 %v8022_v8, %s5664_s14 }
 0x47d   :  { %4024 = vrot.lane.b32.xlu0 %v8047_v61, %s5662_s0 }
 0x480   :  { %3875 = vrot.lane.b32.xlu1 %v8033_v12, %s5664_s14 }
 0x481   :  { %3861 = vrot.lane.b32.xlu0 %v8038_v42, %s5664_s14 }
 0x484   :  { %4250 = vrot.lane.b32.xlu1 %v8022_v8, %s5665_s15 }
 0x485   :  { %3877 = vrot.lane.b32.xlu0 %v8047_v61, %s5664_s14 }
 0x488   :  { %4266 = vrot.lane.b32.xlu1 %v8033_v12, %s5665_s15 }
 0x489   :  { %4252 = vrot.lane.b32.xlu0 %v8038_v42, %s5665_s15 }
 0x48c   :  { %3932 = vrot.lane.b32.xlu1 %v8022_v8, %s5666_s16 }
 0x48d   :  { %4268 = vrot.lane.b32.xlu0 %v8047_v61, %s5665_s15 }
 0x490   :  { %3948 = vrot.lane.b32.xlu1 %v8033_v12, %s5666_s16 }
 0x491   :  { %3934 = vrot.lane.b32.xlu0 %v8038_v42, %s5666_s16 }
 0x494   :  { %4593 = vrot.lane.b32.xlu1 %v8022_v8, %s5667_s17 }
 0x495   :  { %3950 = vrot.lane.b32.xlu0 %v8047_v61, %s5666_s16 }
 0x498   :  { %4609 = vrot.lane.b32.xlu1 %v8033_v12, %s5667_s17 }
 0x499   :  { %4595 = vrot.lane.b32.xlu0 %v8038_v42, %s5667_s17 }
 0x49c   :  { %4756 = vrot.lane.b32.xlu1 %v8022_v8, %s5668_s18 }
 0x49d   :  { %4611 = vrot.lane.b32.xlu0 %v8047_v61, %s5667_s17 }
 0x4a0   :  { %4772 = vrot.lane.b32.xlu1 %v8033_v12, %s5668_s18 }
 0x4a1   :  { %4758 = vrot.lane.b32.xlu0 %v8038_v42, %s5668_s18 }
 0x4a4   :  { %4919 = vrot.lane.b32.xlu1 %v8022_v8, %s5669_s19 }
 0x4a5   :  { %4774 = vrot.lane.b32.xlu0 %v8047_v61, %s5668_s18 }
 0x4a8   :  { %4935 = vrot.lane.b32.xlu1 %v8033_v12, %s5669_s19 }
 0x4a9   :  { %4921 = vrot.lane.b32.xlu0 %v8038_v42, %s5669_s19 }
 0x4ac   :  { %4002 = vrot.lane.b32.xlu1 %v8098_v25, %s5662_s0 }
 0x4ad   :  { %4937 = vrot.lane.b32.xlu0 %v8047_v61, %s5669_s19 }
 0x4ae   :  { %v8108_v5 = vpop.permute.xlu1 %3998 }
 0x4b0   :  { %4018 = vrot.lane.b32.xlu1 %v8111_v21, %s5662_s0 }
 0x4b1   :  { %4004 = vrot.lane.b32.xlu0 %v8116_v32, %s5662_s0 }
 0x4b2   :  { %v8122_v49 = vpop.permute.xlu1 %4014 }
 0x4b3   :  { %v8124_v7 = vpop.permute.xlu0 %4000 }
 0x4b4   :  { %3855 = vrot.lane.b32.xlu1 %v8098_v25, %s5664_s14 }
 0x4b5   :  { %4020 = vrot.lane.b32.xlu0 %v8129_v19, %s5662_s0 }
 0x4b6   :  { %v8133_v18 = vpop.permute.xlu1 %3851 }
 0x4b7   :  { %v8135_v15 = vpop.permute.xlu0 %4016 }
 0x4b8   :  { %3871 = vrot.lane.b32.xlu1 %v8111_v21, %s5664_s14 }
 0x4b9   :  { %3857 = vrot.lane.b32.xlu0 %v8116_v32, %s5664_s14 }
 0x4ba   :  { %v8141_v63 = vpop.permute.xlu1 %3867 }
 0x4bb   :  { %v8143_v40 = vpop.permute.xlu0 %3853 }
 0x4bc   :  { %4246 = vrot.lane.b32.xlu1 %v8098_v25, %s5665_s15 }
 0x4bd   :  { %3873 = vrot.lane.b32.xlu0 %v8129_v19, %s5664_s14 }
 0x4be   :  { %v8149_v14 = vpop.permute.xlu1 %4242 }
 0x4bf   :  { %v8151_v22 = vpop.permute.xlu0 %3869 }
 0x4c0   :  { %4262 = vrot.lane.b32.xlu1 %v8111_v21, %s5665_s15 }
 0x4c1   :  { %4248 = vrot.lane.b32.xlu0 %v8116_v32, %s5665_s15 }
 0x4c2   :  { %v8157_v51 = vpop.permute.xlu1 %4258 }
 0x4c3   :  { %v8159_v58 = vpop.permute.xlu0 %4244 }
 0x4c4   :  { %3928 = vrot.lane.b32.xlu1 %v8098_v25, %s5666_s16 }
 0x4c5   :  { %4264 = vrot.lane.b32.xlu0 %v8129_v19, %s5665_s15 }
 0x4c6   :  { %v8165_v43 = vpop.permute.xlu1 %3924 }
 0x4c7   :  { %v8167_v57 = vpop.permute.xlu0 %4260 }
 0x4c8   :  { %3944 = vrot.lane.b32.xlu1 %v8111_v21, %s5666_s16 }
 0x4c9   :  { %3930 = vrot.lane.b32.xlu0 %v8116_v32, %s5666_s16 }
 0x4ca   :  { %v8173_v45 = vpop.permute.xlu1 %3940 }
 0x4cb   :  { %v8175_v1 = vpop.permute.xlu0 %3926 }
 0x4cc   :  { %4605 = vrot.lane.b32.xlu1 %v8111_v21, %s5667_s17 }
 0x4cd   :  { %3946 = vrot.lane.b32.xlu0 %v8129_v19, %s5666_s16 }
 0x4ce   :  { %v8181_v17 = vpop.permute.xlu1 %4601 }
 0x4cf   :  { %v8183_v27 = vpop.permute.xlu0 %3942 }
 0x4d0   :  { %4589 = vrot.lane.b32.xlu1 %v8098_v25, %s5667_s17 }
 0x4d1   :  { %4607 = vrot.lane.b32.xlu0 %v8129_v19, %s5667_s17 }
 0x4d2   :  { %v8189_v56 = vpop.permute.xlu1 %4585 }
 0x4d3   :  { %v8191_v2 = vpop.permute.xlu0 %4603 }
 0x4d4   :  { %4768 = vrot.lane.b32.xlu1 %v8111_v21, %s5668_s18 }
 0x4d5   :  { %4591 = vrot.lane.b32.xlu0 %v8116_v32, %s5667_s17 }
 0x4d6   :  { %v8197_v35 = vpop.permute.xlu1 %4764 }
 0x4d7   :  { %v8199_v11 = vpop.permute.xlu0 %4587 }
 0x4d8   :  { %4752 = vrot.lane.b32.xlu1 %v8098_v25, %s5668_s18 }
 0x4d9   :  { %4770 = vrot.lane.b32.xlu0 %v8129_v19, %s5668_s18 }
 0x4da   :  { %v8205_v54 = vpop.permute.xlu1 %4748 }
 0x4db   :  { %v8207_v38 = vpop.permute.xlu0 %4766 }
 0x4dc   :  { %4931 = vrot.lane.b32.xlu1 %v8111_v21, %s5669_s19 }
 0x4dd   :  { %4754 = vrot.lane.b32.xlu0 %v8116_v32, %s5668_s18 }
 0x4de   :  { %v8213_v20 = vpop.permute.xlu1 %4927 }
 0x4df   :  { %v8215_v46 = vpop.permute.xlu0 %4750 }
 0x4e0   :  { %4915 = vrot.lane.b32.xlu1 %v8098_v25, %s5669_s19 }
 0x4e1   :  { %4933 = vrot.lane.b32.xlu0 %v8129_v19, %s5669_s19 }
 0x4e2   :  { %v8221_v47 = vpop.permute.xlu1 %4911 }
 0x4e3   :  { %v8223_v24 = vpop.permute.xlu0 %4929 }
 0x4e4   :  { %5094 = vrot.lane.b32.xlu1 %v8111_v21, %s5670_s20 }
 0x4e5   :  { %4917 = vrot.lane.b32.xlu0 %v8116_v32, %s5669_s19 }
 0x4e6   :  { %v8229_v26 = vpop.permute.xlu1 %4006 }
 0x4e7   :  { %v8233_v10 = vpop.permute.xlu0 %4913 }
 0x4e8   :  { %5078 = vrot.lane.b32.xlu1 %v8098_v25, %s5670_s20  ;;  %v9681_v25 = vld [vmem:[#allocation23_spill] sm:$0xff] }
 0x4e9   :  { %5096 = vrot.lane.b32.xlu0 %v8129_v19, %s5670_s20 }
 0x4ea   :  { %v8239_v28 = vpop.permute.xlu1 %4022 }
 0x4eb   :  { %v8246_v60 = vpop.permute.xlu0 %4008 }
 0x4ec   :  { %4010 = vrot.lane.b32.xlu1 %v8242_v0, %s5662_s0 }
 0x4ed   :  { %5080 = vrot.lane.b32.xlu0 %v8116_v32, %s5670_s20  ;;  %v9679_v32 = vld [vmem:[#allocation21_spill] sm:$0xff] }
 0x4ee   :  { %v3860_v13 = vpop.permute.xlu1 %3859 }
 0x4ef   :  { %v8257_v4 = vpop.permute.xlu0 %4024  ;;  %v3887_v3 = vsel %vm157_vm1, %v3860_v13, %v8141_v63  ;;  %v3891_v34 = vsel %vm157_vm1, %v8133_v18, %v3860_v13 }
 0x4f0   :  { %4026 = vrot.lane.b32.xlu1 %v8255_v33, %s5662_s0  ;;  %v8286_v53 = vmul.f32 %v3891_v34, %v9671_v55  ;;  %v8289_v48 = vmul.f32 %v3887_v3, %v9672_v36 }
 0x4f1   :  { %4012 = vrot.lane.b32.xlu0 %v8262_v23, %s5662_s0 }
 0x4f2   :  { %v3876_v59 = vpop.permute.xlu1 %3875  ;;  %9673 = vst [vmem:[#allocation59_spill] sm:$0xff] %v8289_v48 }
 0x4f3   :  { %v3862_v30 = vpop.permute.xlu0 %3861  ;;  %v3883_v13 = vsel %vm157_vm1, %v8141_v63, %v3876_v59  ;;  %v3895_v29 = vsel %vm157_vm1, %v3876_v59, %v8133_v18  ;;  %v9677_v59 = vld [vmem:[#allocation20_spill] sm:$0xff] }
 0x4f4   :  { %3863 = vrot.lane.b32.xlu1 %v8242_v0, %s5664_s14  ;;  %v3888_v62 = vsel %vm157_vm1, %v3862_v30, %v8151_v22  ;;  %v3892_v37 = vsel %vm157_vm1, %v8143_v40, %v3862_v30  ;;  %v8321_v3 = vmul.f32 %v3883_v13, %v9677_v59 }
 0x4f5   :  { %v8292_v52 = vmul.f32 %v3892_v37, %v9671_v55  ;;  %v8295_v16 = vmul.f32 %v3888_v62, %v9672_v36  ;;  %4028 = vrot.lane.b32.xlu0 %v8277_v50, %s5662_s0  ;;  %v9675_v37 = vld [vmem:[#allocation18_spill] sm:$0xff] }
 0x4f6   :  { %v4251_v31 = vpop.permute.xlu1 %4250  ;;  %v8318_v18 = vmul.f32 %v3895_v29, %v9675_v37 }
 0x4f7   :  { %9674 = vst [vmem:[#allocation50_spill] sm:$0xff] %v8295_v16  ;;  %v3878_v34 = vpop.permute.xlu0 %3877  ;;  %v4282_v29 = vsel %vm572_vm4, %v8149_v14, %v4251_v31 }
 0x4f8   :  { %3879 = vrot.lane.b32.xlu1 %v8255_v33, %s5664_s14  ;;  %v3884_v62 = vsel %vm157_vm1, %v8151_v22, %v3878_v34  ;;  %v3896_v63 = vsel %vm157_vm1, %v3878_v34, %v8143_v40  ;;  %9676 = vst [vmem:[#allocation62_spill] sm:$0xff] %v8318_v18  ;;  %v4278_v40 = vsel %vm572_vm4, %v4251_v31, %v8157_v51 }
 0x4f9   :  { %v8324_v19 = vmul.f32 %v3896_v63, %v9675_v37  ;;  %v8327_v21 = vmul.f32 %v3884_v62, %v9677_v59  ;;  %3865 = vrot.lane.b32.xlu0 %v8262_v23, %s5664_s14  ;;  %v8350_v31 = vmul.f32 %v4282_v29, %v9679_v32  ;;  %v8353_v13 = vmul.f32 %v4278_v40, %v9681_v25 }
 0x4fa   :  { %v4267_v22 = vpop.permute.xlu1 %4266 }
 0x4fb   :  { %9678 = vst [vmem:[#allocation47_spill] sm:$0xff] %v8324_v19  ;;  %v4253_v34 = vpop.permute.xlu0 %4252  ;;  %9680 = vst [vmem:[#allocation53_spill] sm:$0xff] %v8350_v31  ;;  %v4286_v29 = vsel %vm572_vm4, %v4267_v22, %v8149_v14  ;;  %v9685_v19 = vld [vmem:[#allocation22_spill] sm:$0xff]  ;;  %v9691_v31 = vld [vmem:[#allocation25_spill] sm:$0xff] }
 0x4fc   :  { %4254 = vrot.lane.b32.xlu1 %v8242_v0, %s5665_s15  ;;  %v4279_v63 = vsel %vm572_vm4, %v4253_v34, %v8167_v57  ;;  %v4283_v30 = vsel %vm572_vm4, %v8159_v58, %v4253_v34  ;;  %9682 = vst [vmem:[#allocation67_spill] sm:$0xff] %v8353_v13  ;;  %v4274_v34 = vsel %vm572_vm4, %v8157_v51, %v4267_v22  ;;  %v9687_v22 = vld [vmem:[#allocation24_spill] sm:$0xff] }
 0x4fd   :  { %v8356_v48 = vmul.f32 %v4283_v30, %v9679_v32  ;;  %v8359_v16 = vmul.f32 %v4279_v63, %v9681_v25  ;;  %3881 = vrot.lane.b32.xlu0 %v8277_v50, %s5664_s14  ;;  %v8382_v14 = vmul.f32 %v4286_v29, %v9685_v19  ;;  %v8385_v40 = vmul.f32 %v4274_v34, %v9687_v22 }
 0x4fe   :  { %v3933_v62 = vpop.permute.xlu1 %3932 }
 0x4ff   :  { %9683 = vst [vmem:[#allocation60_spill] sm:$0xff] %v8356_v48  ;;  %9684 = vst [vmem:[#allocation65_spill] sm:$0xff] %v8359_v16  ;;  %v4269_v30 = vpop.permute.xlu0 %4268  ;;  %v3964_v29 = vsel %vm204_vm5, %v8165_v43, %v3933_v62  ;;  %v9693_v48 = vld [vmem:[#allocation28_spill] sm:$0xff] }
 0x500   :  { %4270 = vrot.lane.b32.xlu1 %v8255_v33, %s5665_s15  ;;  %v4275_v18 = vsel %vm572_vm4, %v8167_v57, %v4269_v30  ;;  %v4287_v51 = vsel %vm572_vm4, %v4269_v30, %v8159_v58  ;;  %9686 = vst [vmem:[#allocation71_spill] sm:$0xff] %v8382_v14  ;;  %9688 = vst [vmem:[#allocation73_spill] sm:$0xff] %v8385_v40  ;;  %v3960_v58 = vsel %vm204_vm5, %v3933_v62, %v8173_v45 }
 0x501   :  { %v8388_v13 = vmul.f32 %v4287_v51, %v9685_v19  ;;  %v8391_v16 = vmul.f32 %v4275_v18, %v9687_v22  ;;  %4256 = vrot.lane.b32.xlu0 %v8262_v23, %s5665_s15  ;;  %v8414_v62 = vmul.f32 %v3964_v29, %v9691_v31  ;;  %v8417_v34 = vmul.f32 %v3960_v58, %v9693_v48 }
 0x502   :  { %v3949_v57 = vpop.permute.xlu1 %3948 }
 0x503   :  { %9689 = vst [vmem:[#allocation51_spill] sm:$0xff] %v8388_v13  ;;  %9690 = vst [vmem:[#allocation58_spill] sm:$0xff] %v8391_v16  ;;  %v3935_v30 = vpop.permute.xlu0 %3934  ;;  %v3968_v29 = vsel %vm204_vm5, %v3949_v57, %v8165_v43  ;;  %v9697_v16 = vld [vmem:[#allocation27_spill] sm:$0xff] }
 0x504   :  { %3936 = vrot.lane.b32.xlu1 %v8242_v0, %s5666_s16  ;;  %v3961_v51 = vsel %vm204_vm5, %v3935_v30, %v8183_v27  ;;  %v3965_v63 = vsel %vm204_vm5, %v8175_v1, %v3935_v30  ;;  %9692 = vst [vmem:[#allocation46_spill] sm:$0xff] %v8414_v62  ;;  %9694 = vst [vmem:[#allocation74_spill] sm:$0xff] %v8417_v34  ;;  %v3956_v30 = vsel %vm204_vm5, %v8173_v45, %v3949_v57  ;;  %v9699_v57 = vld [vmem:[#allocation26_spill] sm:$0xff]  ;;  %v9701_v62 = vld [vmem:[#allocation31_spill] sm:$0xff] }
 0x505   :  { %v8420_v14 = vmul.f32 %v3965_v63, %v9691_v31  ;;  %v8423_v13 = vmul.f32 %v3961_v51, %v9693_v48  ;;  %4272 = vrot.lane.b32.xlu0 %v8277_v50, %s5665_s15  ;;  %v8446_v43 = vmul.f32 %v3968_v29, %v9697_v16  ;;  %v8449_v58 = vmul.f32 %v3956_v30, %v9699_v57 }
 0x506   :  { %v4594_v18 = vpop.permute.xlu1 %4593 }
 0x507   :  { %9695 = vst [vmem:[#allocation75_spill] sm:$0xff] %v8420_v14  ;;  %9696 = vst [vmem:[#allocation57_spill] sm:$0xff] %v8423_v13  ;;  %v3951_v63 = vpop.permute.xlu0 %3950  ;;  %v4625_v29 = vsel %vm1048_vm6, %v8189_v56, %v4594_v18  ;;  %v9703_v14 = vld [vmem:[#allocation30_spill] sm:$0xff] }
 0x508   :  { %3952 = vrot.lane.b32.xlu1 %v8255_v33, %s5666_s16  ;;  %v3957_v40 = vsel %vm204_vm5, %v8183_v27, %v3951_v63  ;;  %v3969_v45 = vsel %vm204_vm5, %v3951_v63, %v8175_v1  ;;  %9698 = vst [vmem:[#allocation12_spill] sm:$0xff] %v8446_v43  ;;  %v4621_v1 = vsel %vm1048_vm6, %v4594_v18, %v8181_v17 }
 0x509   :  { %v8452_v34 = vmul.f32 %v3969_v45, %v9697_v16  ;;  %v8455_v13 = vmul.f32 %v3957_v40, %v9699_v57  ;;  %3938 = vrot.lane.b32.xlu0 %v8262_v23, %s5666_s16  ;;  %v8478_v18 = vmul.f32 %v4625_v29, %v9701_v62  ;;  %v8481_v30 = vmul.f32 %v4621_v1, %v9703_v14 }
 0x50a   :  { %v4610_v27 = vpop.permute.xlu1 %4609 }
 0x50b   :  { %9700 = vst [vmem:[#allocation17_spill] sm:$0xff] %v8452_v34  ;;  %v4596_v63 = vpop.permute.xlu0 %4595  ;;  %9702 = vst [vmem:[#allocation19_spill] sm:$0xff] %v8478_v18  ;;  %v4629_v29 = vsel %vm1048_vm6, %v4610_v27, %v8189_v56 }
 0x50c   :  { %5082 = vrot.lane.b32.xlu1 %v8022_v8, %s5670_s20  ;;  %v4622_v45 = vsel %vm1048_vm6, %v4596_v63, %v8191_v2  ;;  %v4626_v51 = vsel %vm1048_vm6, %v8199_v11, %v4596_v63  ;;  %9704 = vst [vmem:[#allocation18_spill] sm:$0xff] %v8481_v30  ;;  %v4617_v63 = vsel %vm1048_vm6, %v8181_v17, %v4610_v27  ;;  %v9709_v27 = vld [vmem:[#allocation29_spill] sm:$0xff]  ;;  %v9713_v30 = vld [vmem:[#allocation35_spill] sm:$0xff] }
 0x50d   :  { %v8484_v43 = vmul.f32 %v4626_v51, %v9701_v62  ;;  %v8487_v8 = vmul.f32 %v4622_v45, %v9703_v14  ;;  %3954 = vrot.lane.b32.xlu0 %v8277_v50, %s5666_s16  ;;  %v9707_v62 = vld [vmem:[#allocation32_spill] sm:$0xff]  ;;  %v8513_v1 = vmul.f32 %v4629_v29, %v9709_v27 }
 0x50e   :  { %v4757_v40 = vpop.permute.xlu1 %4756  ;;  %v8510_v56 = vmul.f32 %v4617_v63, %v9707_v62 }
 0x50f   :  { %9705 = vst [vmem:[#allocation20_spill] sm:$0xff] %v8484_v43  ;;  %9706 = vst [vmem:[#allocation21_spill] sm:$0xff] %v8487_v8  ;;  %v4612_v51 = vpop.permute.xlu0 %4611  ;;  %v4788_v63 = vsel %vm1247_vm7, %v8205_v54, %v4757_v40  ;;  %v9715_v8 = vld [vmem:[#allocation34_spill] sm:$0xff] }
 0x510   :  { %4597 = vrot.lane.b32.xlu1 %v8242_v0, %s5667_s17  ;;  %v4618_v14 = vsel %vm1048_vm6, %v8191_v2, %v4612_v51  ;;  %v4630_v17 = vsel %vm1048_vm6, %v4612_v51, %v8199_v11  ;;  %9708 = vst [vmem:[#allocation23_spill] sm:$0xff] %v8510_v56  ;;  %9710 = vst [vmem:[#allocation22_spill] sm:$0xff] %v8513_v1  ;;  %v4784_v11 = vsel %vm1247_vm7, %v4757_v40, %v8197_v35 }
 0x511   :  { %v8516_v18 = vmul.f32 %v4618_v14, %v9707_v62  ;;  %v8519_v43 = vmul.f32 %v4630_v17, %v9709_v27  ;;  %5084 = vrot.lane.b32.xlu0 %v8038_v42, %s5670_s20  ;;  %v8542_v40 = vmul.f32 %v4788_v63, %v9713_v30  ;;  %v8545_v29 = vmul.f32 %v4784_v11, %v9715_v8 }
 0x512   :  { %v4773_v2 = vpop.permute.xlu1 %4772 }
 0x513   :  { %9711 = vst [vmem:[#allocation24_spill] sm:$0xff] %v8516_v18  ;;  %9712 = vst [vmem:[#allocation25_spill] sm:$0xff] %v8519_v43  ;;  %v4759_v14 = vpop.permute.xlu0 %4758  ;;  %v4792_v63 = vsel %vm1247_vm7, %v4773_v2, %v8205_v54  ;;  %v9719_v43 = vld [vmem:[#allocation36_spill] sm:$0xff] }
 0x514   :  { %4613 = vrot.lane.b32.xlu1 %v8255_v33, %s5667_s17  ;;  %v4785_v17 = vsel %vm1247_vm7, %v4759_v14, %v8207_v38  ;;  %v4789_v45 = vsel %vm1247_vm7, %v8215_v46, %v4759_v14  ;;  %9714 = vst [vmem:[#allocation28_spill] sm:$0xff] %v8542_v40  ;;  %9716 = vst [vmem:[#allocation27_spill] sm:$0xff] %v8545_v29  ;;  %v4780_v14 = vsel %vm1247_vm7, %v8197_v35, %v4773_v2  ;;  %v9721_v2 = vld [vmem:[#allocation33_spill] sm:$0xff]  ;;  %v9725_v29 = vld [vmem:[#allocation39_spill] sm:$0xff] }
 0x515   :  { %v8548_v56 = vmul.f32 %v4789_v45, %v9713_v30  ;;  %v8551_v18 = vmul.f32 %v4785_v17, %v9715_v8  ;;  %5092 = vrot.lane.b32.xlu0 %v7952_v6, %s5670_s20  ;;  %v8574_v54 = vmul.f32 %v4780_v14, %v9719_v43  ;;  %v8577_v11 = vmul.f32 %v4792_v63, %v9721_v2 }
 0x516   :  { %v4920_v51 = vpop.permute.xlu1 %4919 }
 0x517   :  { %9717 = vst [vmem:[#allocation26_spill] sm:$0xff] %v8548_v56  ;;  %9718 = vst [vmem:[#allocation76_spill] sm:$0xff] %v8551_v18  ;;  %v4775_v45 = vpop.permute.xlu0 %4774  ;;  %v4951_v14 = vsel %vm1446_vm8, %v8221_v47, %v4920_v51  ;;  %v9727_v18 = vld [vmem:[#allocation38_spill] sm:$0xff] }
 0x518   :  { %4760 = vrot.lane.b32.xlu1 %v8242_v0, %s5668_s18  ;;  %v4781_v1 = vsel %vm1247_vm7, %v8207_v38, %v4775_v45  ;;  %v4793_v35 = vsel %vm1247_vm7, %v4775_v45, %v8215_v46  ;;  %9720 = vst [vmem:[#allocation77_spill] sm:$0xff] %v8574_v54  ;;  %9722 = vst [vmem:[#allocation78_spill] sm:$0xff] %v8577_v11  ;;  %v4947_v46 = vsel %vm1446_vm8, %v4920_v51, %v8213_v20 }
 0x519   :  { %v8580_v40 = vmul.f32 %v4781_v1, %v9719_v43  ;;  %v8583_v56 = vmul.f32 %v4793_v35, %v9721_v2  ;;  %5076 = vrot.lane.b32.xlu0 %v7936_v39, %s5670_s20  ;;  %v8606_v51 = vmul.f32 %v4951_v14, %v9725_v29  ;;  %v8609_v63 = vmul.f32 %v4947_v46, %v9727_v18 }
 0x51a   :  { %v4936_v38 = vpop.permute.xlu1 %4935 }
 0x51b   :  { %9723 = vst [vmem:[#allocation79_spill] sm:$0xff] %v8580_v40  ;;  %9724 = vst [vmem:[#allocation80_spill] sm:$0xff] %v8583_v56  ;;  %v4922_v1 = vpop.permute.xlu0 %4921  ;;  %v4955_v46 = vsel %vm1446_vm8, %v4936_v38, %v8221_v47  ;;  %v9731_v56 = vld [vmem:[#allocation40_spill] sm:$0xff] }
 0x51c   :  { %4776 = vrot.lane.b32.xlu1 %v8255_v33, %s5668_s18  ;;  %v4948_v35 = vsel %vm1446_vm8, %v4922_v1, %v8223_v24  ;;  %v4952_v17 = vsel %vm1446_vm8, %v8233_v10, %v4922_v1  ;;  %9726 = vst [vmem:[#allocation81_spill] sm:$0xff] %v8606_v51  ;;  %9728 = vst [vmem:[#allocation82_spill] sm:$0xff] %v8609_v63  ;;  %v4943_v1 = vsel %vm1446_vm8, %v8213_v20, %v4936_v38  ;;  %v9733_v38 = vld [vmem:[#allocation37_spill] sm:$0xff] }
 0x51d   :  { %v8612_v54 = vmul.f32 %v4952_v17, %v9725_v29  ;;  %v8615_v40 = vmul.f32 %v4948_v35, %v9727_v18  ;;  %4599 = vrot.lane.b32.xlu0 %v8262_v23, %s5667_s17  ;;  %v8640_v47 = vmul.f32 %v4943_v1, %v9731_v56  ;;  %v8643_v17 = vmul.f32 %v4955_v46, %v9733_v38  ;;  %v5237_v63 = vld [vmem:[%s9259_s10] sm:$0xf] }
 0x51e   :  { %v8619_v45 = vpop.permute.xlu1 %4002 }
 0x51f   :  { %9729 = vst [vmem:[#allocation83_spill] sm:$0xff] %v8612_v54  ;;  %9730 = vst [vmem:[#allocation84_spill] sm:$0xff] %v8615_v40  ;;  %v4938_v14 = vpop.permute.xlu0 %4937 }
 0x520   :  { %4923 = vrot.lane.b32.xlu1 %v8242_v0, %s5669_s19  ;;  %v4944_v11 = vsel %vm1446_vm8, %v8223_v24, %v4938_v14  ;;  %v4956_v20 = vsel %vm1446_vm8, %v4938_v14, %v8233_v10  ;;  %9732 = vst [vmem:[#allocation85_spill] sm:$0xff] %v8640_v47  ;;  %9734 = vst [vmem:[#allocation86_spill] sm:$0xff] %v8643_v17 }
 0x521   :  { %v8646_v51 = vmul.f32 %v4944_v11, %v9731_v56  ;;  %v8649_v54 = vmul.f32 %v4956_v20, %v9733_v38  ;;  %4615 = vrot.lane.b32.xlu0 %v8277_v50, %s5667_s17 }
 0x522   :  { %v8653_v24 = vpop.permute.xlu1 %4018 }
 0x523   :  { %9735 = vst [vmem:[#allocation87_spill] sm:$0xff] %v8646_v51  ;;  %9736 = vst [vmem:[#allocation88_spill] sm:$0xff] %v8649_v54  ;;  %v8657_v14 = vpop.permute.xlu0 %4004 }
 0x524   :  { %4939 = vrot.lane.b32.xlu1 %v8255_v33, %s5669_s19 }
 0x525   :  { %4762 = vrot.lane.b32.xlu0 %v8262_v23, %s5668_s18 }
 0x526   :  { %v8665_v1 = vpop.permute.xlu1 %3855 }
 0x527   :  { %v8667_v46 = vpop.permute.xlu0 %4020 }
 0x528   :  { %5086 = vrot.lane.b32.xlu1 %v8242_v0, %s5670_s20 }
 0x529   :  { %4778 = vrot.lane.b32.xlu0 %v8277_v50, %s5668_s18 }
 0x52a   :  { %v8673_v20 = vpop.permute.xlu1 %3871 }
 0x52b   :  { %v8675_v10 = vpop.permute.xlu0 %3857 }
 0x52c   :  { %5090 = vrot.lane.b32.xlu1 %v7920_v41, %s5670_s20 }
 0x52d   :  { %4925 = vrot.lane.b32.xlu0 %v8262_v23, %s5669_s19 }
 0x52e   :  { %v8681_v11 = vpop.permute.xlu1 %4246 }
 0x52f   :  { %v8683_v35 = vpop.permute.xlu0 %3873 }
 0x530   :  { %5102 = vrot.lane.b32.xlu1 %v8255_v33, %s5670_s20  ;;  %v9755_v33 = vld [vmem:[#allocation14_spill] sm:$0xff] }
 0x531   :  { %4941 = vrot.lane.b32.xlu0 %v8277_v50, %s5669_s19 }
 0x532   :  { %v8689_v47 = vpop.permute.xlu1 %4262 }
 0x533   :  { %v8691_v51 = vpop.permute.xlu0 %4248 }
 0x534   :  { %5074 = vrot.lane.b32.xlu1 %v7907_v9, %s5670_s20 }
 0x535   :  { %5088 = vrot.lane.b32.xlu0 %v8262_v23, %s5670_s20 }
 0x536   :  { %v8697_v17 = vpop.permute.xlu1 %3928 }
 0x537   :  { %v8699_v54 = vpop.permute.xlu0 %4264 }
 0x538   :  { %5098 = vrot.lane.b32.xlu1 %v8033_v12, %s5670_s20 }
 0x539   :  { %5104 = vrot.lane.b32.xlu0 %v8277_v50, %s5670_s20  ;;  %v4042_v50 = vsel %vm253_vm0, %v8239_v28, %v8108_v5 }
 0x53a   :  { %v8708_v40 = vpop.permute.xlu1 %3944 }
 0x53b   :  { %v8710_v38 = vpop.permute.xlu0 %3930 }
 0x53c   :  { %5240 = vperm.xlu1 %5542, %v5237_v63  }
 0x53d   :  { %5100 = vrot.lane.b32.xlu0 %v8047_v61, %s5670_s20  ;;  %v9754_v61 = vld [vmem:[#allocation16_spill] sm:$0xff] }
 0x53e   :  { %v8714_v56 = vpop.permute.xlu1 %4605 }
 0x53f   :  { %9737 = vst [vmem:[#allocation89_spill] sm:$0xff] %v8714_v56  ;;  %v8716_v18 = vpop.permute.xlu0 %3946 }
 0x542   :  { %v8718_v29 = vpop.permute.xlu1 %4589 }
 0x543   :  { %9738 = vst [vmem:[#allocation90_spill] sm:$0xff] %v8718_v29  ;;  %v8720_v2 = vpop.permute.xlu0 %4607 }
 0x544   :  { %9739 = vst [vmem:[#allocation91_spill] sm:$0xff] %v8720_v2 }
 0x546   :  { %v8722_v43 = vpop.permute.xlu1 %4768 }
 0x547   :  { %9740 = vst [vmem:[#allocation92_spill] sm:$0xff] %v8722_v43  ;;  %v8724_v8 = vpop.permute.xlu0 %4591 }
 0x548   :  { %9741 = vst [vmem:[#allocation93_spill] sm:$0xff] %v8724_v8 }
 0x54a   :  { %v8726_v30 = vpop.permute.xlu1 %4752 }
 0x54b   :  { %9742 = vst [vmem:[#allocation94_spill] sm:$0xff] %v8726_v30  ;;  %v8728_v27 = vpop.permute.xlu0 %4770 }
 0x54c   :  { %9743 = vst [vmem:[#allocation95_spill] sm:$0xff] %v8728_v27 }
 0x54e   :  { %v8730_v63 = vpop.permute.xlu1 %4931 }
 0x54f   :  { %9744 = vst [vmem:[#allocation96_spill] sm:$0xff] %v8730_v63  ;;  %v8732_v62 = vpop.permute.xlu0 %4754  ;;  %v4038_v63 = vsel %vm253_vm0, %v8108_v5, %v8229_v26  ;;  %v9756_v5 = vld [vmem:[#allocation13_spill] sm:$0xff] }
 0x550   :  { %9745 = vst [vmem:[#allocation97_spill] sm:$0xff] %v8732_v62  ;;  %v4039_v62 = vsel %vm253_vm0, %v8124_v7, %v8246_v60 }
 0x552   :  { %v8734_v6 = vpop.permute.xlu1 %4915 }
 0x553   :  { %9746 = vst [vmem:[#allocation98_spill] sm:$0xff] %v8734_v6  ;;  %v8736_v41 = vpop.permute.xlu0 %4933  ;;  %v4030_v6 = vsel %vm253_vm0, %v8122_v49, %v8239_v28 }
 0x554   :  { %9747 = vst [vmem:[#allocation99_spill] sm:$0xff] %v8736_v41 }
 0x556   :  { %v8738_v39 = vpop.permute.xlu1 %5094 }
 0x557   :  { %9748 = vst [vmem:[#allocation100_spill] sm:$0xff] %v8738_v39  ;;  %v8740_v9 = vpop.permute.xlu0 %4917 }
 0x558   :  { %9749 = vst [vmem:[#allocation101_spill] sm:$0xff] %v8740_v9 }
 0x55a   :  { %v8742_v2 = vpop.permute.xlu1 %5078 }
 0x55b   :  { %9750 = vst [vmem:[#allocation102_spill] sm:$0xff] %v8742_v2  ;;  %v8744_v43 = vpop.permute.xlu0 %5096 }
 0x55c   :  { %9751 = vst [vmem:[#allocation103_spill] sm:$0xff] %v8744_v43  ;;  %v4034_v43 = vsel %vm253_vm0, %v8229_v26, %v8122_v49 }
 0x55e   :  { %v4011_v8 = vpop.permute.xlu1 %4010 }
 0x55f   :  { %v8746_v30 = vpop.permute.xlu0 %5080  ;;  %v4036_v41 = vsel %vm253_vm0, %v4011_v8, %v8653_v24  ;;  %v4040_v39 = vsel %vm253_vm0, %v8619_v45, %v4011_v8  ;;  %v4031_v8 = vsel %vm253_vm0, %v8135_v15, %v8257_v4 }
 0x560   :  { %9752 = vst [vmem:[#allocation104_spill] sm:$0xff] %v8746_v30  ;;  %v9753_v30 = vld [vmem:[#allocation15_spill] sm:$0xff] }
 0x561   :  { %v4047_v2 = vmul.f32 %v4038_v63, %v9753_v30  ;;  %v4055_v26 = vmul.f32 %v4040_v39, %v9753_v30  ;;  %v4056_v63 = vmul.f32 %v4036_v41, %v9754_v61  ;;  %v4051_v34 = vmul.f32 %v4039_v62, %v9753_v30 }
 0x562   :  { %v4027_v9 = vpop.permute.xlu1 %4026 }
 0x563   :  { %v4013_v27 = vpop.permute.xlu0 %4012  ;;  %v4032_v29 = vsel %vm253_vm0, %v8653_v24, %v4027_v9  ;;  %v4044_v56 = vsel %vm253_vm0, %v4027_v9, %v8619_v45  ;;  %v4035_v24 = vsel %vm253_vm0, %v8246_v60, %v8135_v15  ;;  %v4043_v9 = vsel %vm253_vm0, %v8257_v4, %v8124_v7 }
 0x564   :  { %v4037_v12 = vsel %vm253_vm0, %v4013_v27, %v8667_v46  ;;  %v4041_v49 = vsel %vm253_vm0, %v8657_v14, %v4013_v27  ;;  %v4049_v27 = vmul.f32 %v4030_v6, %v9755_v33  ;;  %v4054_v28 = vmul.f32 %v4044_v56, %v9756_v5 }
 0x565   :  { %v4059_v39 = vmul.f32 %v4041_v49, %v9753_v30  ;;  %v4060_v41 = vmul.f32 %v4037_v12, %v9754_v61  ;;  %v4053_v12 = vmul.f32 %v4031_v8, %v9755_v33  ;;  %v4057_v6 = vmul.f32 %v4032_v29, %v9755_v33 }
 0x566   :  { %v3864_v42 = vpop.permute.xlu1 %3863  ;;  %v4048_v29 = vmul.f32 %v4034_v43, %v9754_v61  ;;  %v4065_v8 = vpack.c.bf16 %v4051_v34, %v4047_v2 }
 0x567   :  { %v4070_v45 = vpack.c.bf16 %v4060_v41, %v4056_v63  ;;  %v4029_v49 = vpop.permute.xlu0 %4028  ;;  %v4069_v23 = vpack.c.bf16 %v4059_v39, %v4055_v26  ;;  %v3889_v7 = vsel %vm157_vm1, %v3864_v42, %v8673_v20  ;;  %v3893_v4 = vsel %vm157_vm1, %v8665_v1, %v3864_v42 }
 0x568   :  { %v4033_v15 = vsel %vm253_vm0, %v8667_v46, %v4029_v49  ;;  %v4045_v60 = vsel %vm253_vm0, %v4029_v49, %v8657_v14  ;;  %v4046_v46 = vmul.f32 %v4042_v50, %v9756_v5  ;;  %v4052_v14 = vmul.f32 %v4035_v24, %v9754_v61 }
 0x569   :  { %v4058_v62 = vmul.f32 %v4045_v60, %v9756_v5  ;;  %v4061_v30 = vmul.f32 %v4033_v15, %v9755_v33  ;;  %4087 = vmatprep.subr.bf16.mxu0 %v4069_v23  ;;  %v4050_v26 = vmul.f32 %v4043_v9, %v9756_v5  ;;  %v4067_v49 = vpack.c.bf16 %v4053_v12, %v4049_v27 }
 0x56a   :  { %v3880_v56 = vpop.permute.xlu1 %3879  ;;  %v3908_v42 = vmul.f32 %v3893_v4, %v9671_v55  ;;  %v3909_v60 = vmul.f32 %v3889_v7, %v9672_v36  ;;  %v4066_v27 = vpack.c.bf16 %v4052_v14, %v4048_v29  ;;  %vm5269_vm0 = vcmask 1043456  }
 0x56b   :  { %v4068_v63 = vpack.c.bf16 %v4058_v62, %v4054_v28  ;;  %v3866_v39 = vpop.permute.xlu0 %3865  ;;  %v4071_v41 = vpack.c.bf16 %v4061_v30, %v4057_v6  ;;  %v3897_v61 = vsel %vm157_vm1, %v3880_v56, %v8665_v1  ;;  %v3885_v2 = vsel %vm157_vm1, %v8673_v20, %v3880_v56 }
 0x56c   :  { %v3890_v33 = vsel %vm157_vm1, %v3866_v39, %v8683_v35  ;;  %v3894_v23 = vsel %vm157_vm1, %v8675_v10, %v3866_v39  ;;  %v4064_v24 = vpack.c.bf16 %v4050_v26, %v4046_v46  ;;  %v3907_v1 = vmul.f32 %v3897_v61, %v9675_v37 }
 0x56d   :  { %v3912_v50 = vmul.f32 %v3894_v23, %v9671_v55  ;;  %v3913_v34 = vmul.f32 %v3890_v33, %v9672_v36  ;;  %4088 = vmatpush1.bf16.msra.mxu0 %v4068_v63  ;;  %4128 = vmatprep.subr.bf16.mxu1 %v4071_v41  ;;  %v9757_v26 = vpack.c.bf16 %v8292_v52, %v8286_v53  ;;  %v9759_v52 = vmov 0  }
 0x56e   :  { %v4255_v43 = vpop.permute.xlu1 %4254  ;;  %4089 = vmatprep.subr.bf16.mxu0 %v4065_v8  ;;  %4129 = vmatpush1.bf16.msra.mxu1 %v4070_v45  ;;  %v3910_v45 = vmul.f32 %v3885_v2, %v9677_v59 }
 0x56f   :  { %v3922_v9 = vpack.c.bf16 %v3913_v34, %v3909_v60  ;;  %4130 = vmatprep.subr.bf16.mxu1 %v4067_v49  ;;  %v3882_v12 = vpop.permute.xlu0 %3881  ;;  %v3921_v5 = vpack.c.bf16 %v3912_v50, %v3908_v42  ;;  %v4284_v55 = vsel %vm572_vm4, %v8681_v11, %v4255_v43  ;;  %v4280_v28 = vsel %vm572_vm4, %v4255_v43, %v8689_v47  ;;  %v9764_v34 = vld [vmem:[#allocation59_spill] sm:$0xff] }
 0x570   :  { %v3886_v36 = vsel %vm157_vm1, %v8683_v35, %v3882_v12  ;;  %v3898_v20 = vsel %vm157_vm1, %v3882_v12, %v8675_v10  ;;  %v5501_v35 = vld [vmem:[%s9258_s9 + $0x4] sm:$0x3]  ;;  %v4299_v10 = vmul.f32 %v4284_v55, %v9679_v32  ;;  %v4300_v56 = vmul.f32 %v4280_v28, %v9681_v25 }
 0x571   :  { %v3911_v6 = vmul.f32 %v3898_v20, %v9675_v37  ;;  %v3914_v15 = vmul.f32 %v3886_v36, %v9677_v59  ;;  %4090 = vmatpush1.bf16.msra.mxu0 %v4064_v24  ;;  %v9767_v28 = vld [vmem:[#allocation53_spill] sm:$0xff] }
 0x572   :  { %v4271_v7 = vpop.permute.xlu1 %4270  ;;  %4131 = vmatpush1.bf16.msra.mxu1 %v4066_v27  ;;  %4172 = vmatprep.subr.bf16.mxu0 %v3921_v5 }
 0x573   :  { %v3920_v4 = vpack.c.bf16 %v3911_v6, %v3907_v1  ;;  %v4257_v62 = vpop.permute.xlu0 %4256  ;;  %v3923_v30 = vpack.c.bf16 %v3914_v15, %v3910_v45  ;;  %v4288_v37 = vsel %vm572_vm4, %v4271_v7, %v8681_v11  ;;  %v4276_v46 = vsel %vm572_vm4, %v8689_v47, %v4271_v7  ;;  %v9766_v45 = vld [vmem:[#allocation60_spill] sm:$0xff]  ;;  %v9769_v7 = vld [vmem:[#allocation58_spill] sm:$0xff] }
 0x574   :  { %v4281_v59 = vsel %vm572_vm4, %v4257_v62, %v8699_v54  ;;  %v4285_v29 = vsel %vm572_vm4, %v8691_v51, %v4257_v62  ;;  %5502 = vmatmul.mubr.msk.bf16.vlgmr.msra.gmra.mxu0 %vm2180_vm10, %v5501_v35  ;;  %v4298_v63 = vmul.f32 %v4288_v37, %v9685_v19  ;;  %v4301_v47 = vmul.f32 %v4276_v46, %v9687_v22  ;;  %v9772_v37 = vld [vmem:[#allocation51_spill] sm:$0xff] }
 0x575   :  { %v4303_v14 = vmul.f32 %v4285_v29, %v9679_v32  ;;  %v4304_v8 = vmul.f32 %v4281_v59, %v9681_v25  ;;  %5503 = vmatmul.mubr.msk.bf16.vlgmr.msra.gmra.mxu1 %vm2180_vm10, %v5501_v35  ;;  %4173 = vmatpush1.bf16.msra.mxu0 %v3920_v4  ;;  %v9758_v25 = vpack.c.bf16 %v8327_v21, %v8321_v3  ;;  %v9760_v21 = vld [vmem:[#allocation47_spill] sm:$0xff]  ;;  %v9761_v3 = vld [vmem:[#allocation62_spill] sm:$0xff]  ;;  %v9770_v35 = vld [vmem:[#allocation73_spill] sm:$0xff] }
 0x576   :  { %v3937_v11 = vpop.permute.xlu1 %3936  ;;  %4213 = vmatprep.subr.bf16.mxu1 %v3923_v30  ;;  %4174 = vmatprep.subr.bf16.mxu0 %v9757_v26  ;;  %v9762_v23 = vpack.c.bf16 %v9760_v21, %v9761_v3  ;;  %v9768_v6 = vpack.c.bf16 %v9766_v45, %v9767_v28  ;;  %v9773_v59 = vld [vmem:[#allocation71_spill] sm:$0xff]  ;;  %v5500_v21 = vld [vmem:[%s9258_s9 + $0x2] sm:$0x3] }
 0x577   :  { %v4314_v39 = vpack.c.bf16 %v4304_v8, %v4300_v56  ;;  %4214 = vmatpush1.bf16.msra.mxu1 %v3922_v9  ;;  %v4273_v41 = vpop.permute.xlu0 %4272  ;;  %v4313_v49 = vpack.c.bf16 %v4303_v14, %v4299_v10  ;;  %4192 = vmatprep.mubr.bf16.mxu0 %v9759_v52  ;;  %v3966_v42 = vsel %vm204_vm5, %v8697_v17, %v3937_v11  ;;  %v9775_v14 = vld [vmem:[#allocation65_spill] sm:$0xff]  ;;  %v9776_v8 = vld [vmem:[#allocation67_spill] sm:$0xff] }
 0x578   :  { %4215 = vmatprep.subr.bf16.mxu1 %v9758_v25  ;;  %v4277_v32 = vsel %vm572_vm4, %v8699_v54, %v4273_v41  ;;  %v4289_v53 = vsel %vm572_vm4, %v4273_v41, %v8691_v51  ;;  %v3915_v54 = vld [vmem:[%s9258_s9] sm:$0x3]  ;;  %4233 = vmatprep.mubr.bf16.mxu1 %v9759_v52  ;;  %v3962_v51 = vsel %vm204_vm5, %v3937_v11, %v8708_v40  ;;  %v9782_v25 = vld [vmem:[#allocation54_spill] sm:$0xff]  ;;  %v9800_v45 = vld [vmem:[#allocation63_spill] sm:$0xff] }
 0x579   :  { %v4302_v60 = vmul.f32 %v4289_v53, %v9685_v19  ;;  %v4305_v33 = vmul.f32 %v4277_v32, %v9687_v22  ;;  %4175 = vmatpush1.bf16.msra.mxu0 %v9762_v23  ;;  %v9763_v19 = vld [vmem:[#allocation50_spill] sm:$0xff]  ;;  %v3981_v27 = vmul.f32 %v3966_v42, %v9691_v31  ;;  %v3982_v12 = vmul.f32 %v3962_v51, %v9693_v48  ;;  %v9783_v53 = vld [vmem:[#allocation17_spill] sm:$0xff]  ;;  %v9784_v42 = vld [vmem:[#allocation12_spill] sm:$0xff] }
 0x57a   :  { %v3953_v61 = vpop.permute.xlu1 %3952  ;;  %4331 = vmatprep.subr.bf16.mxu0 %v4313_v49  ;;  %v9765_v22 = vpack.c.bf16 %v9763_v19, %v9764_v34  ;;  %v9771_v10 = vpack.c.bf16 %v9769_v7, %v9770_v35  ;;  %v9774_v29 = vpack.c.bf16 %v9772_v37, %v9773_v59  ;;  %v9777_v11 = vpack.c.bf16 %v9775_v14, %v9776_v8  ;;  %v9786_v3 = vld [vmem:[#allocation61_spill] sm:$0xff]  ;;  %v9787_v23 = vld [vmem:[#allocation56_spill] sm:$0xff]  ;;  %v9791_v51 = vld [vmem:[#allocation55_spill] sm:$0xff] }
 0x57b   :  { %v4312_v50 = vpack.c.bf16 %v4302_v60, %v4298_v63  ;;  %v3939_v43 = vpop.permute.xlu0 %3938  ;;  %v4315_v2 = vpack.c.bf16 %v4305_v33, %v4301_v47  ;;  %v3958_v36 = vsel %vm204_vm5, %v8708_v40, %v3953_v61  ;;  %v3970_v20 = vsel %vm204_vm5, %v3953_v61, %v8697_v17  ;;  %v9778_v63 = vld [vmem:[#allocation75_spill] sm:$0xff]  ;;  %v9793_v34 = vld [vmem:[#allocation48_spill] sm:$0xff]  ;;  %v9803_v7 = vld [vmem:[#allocation66_spill] sm:$0xff] }
 0x57c   :  { %4216 = vmatpush1.bf16.msra.mxu1 %v9765_v22  ;;  %v3963_v24 = vsel %vm204_vm5, %v3939_v43, %v8716_v18  ;;  %v3967_v9 = vsel %vm204_vm5, %v8710_v38, %v3939_v43  ;;  %5504 = vmatmul.mubr.msk.bf16.vlgmr.msra.gmra.mxu0 %vm2180_vm10, %v3915_v54  ;;  %v3980_v4 = vmul.f32 %v3970_v20, %v9697_v16  ;;  %v9794_v22 = vld [vmem:[#allocation49_spill] sm:$0xff]  ;;  %v9799_v20 = vld [vmem:[#allocation70_spill] sm:$0xff]  ;;  %v9804_v35 = vld [vmem:[#allocation64_spill] sm:$0xff] }
 0x57d   :  { %v3985_v5 = vmul.f32 %v3967_v9, %v9691_v31  ;;  %v3986_v1 = vmul.f32 %v3963_v24, %v9693_v48  ;;  %4332 = vmatpush1.bf16.msra.mxu0 %v4312_v50  ;;  %4372 = vmatprep.subr.bf16.mxu1 %v4315_v2  ;;  %v3983_v62 = vmul.f32 %v3958_v36, %v9699_v57  ;;  %v9792_v50 = vld [vmem:[#allocation69_spill] sm:$0xff]  ;;  %v9796_v24 = vld [vmem:[#allocation90_spill] sm:$0xff] }
 0x57e   :  { %v8923_v55 = vpop.permute.xlu1 %5082  ;;  %4333 = vmatprep.subr.bf16.mxu0 %v9768_v6  ;;  %4351 = vmatprep.mubr.bf16.mxu0 %v9759_v52  ;;  %v9781_v47 = vpack.c.bf16 %v8455_v13, %v8449_v58  ;;  %v4493_v32 = vpack.c.bf16 %v9782_v25, %v8242_v0  ;;  %v9785_v60 = vpack.c.bf16 %v9783_v53, %v9784_v42  ;;  %v9788_v13 = vld [vmem:[#allocation57_spill] sm:$0xff]  ;;  %v9789_v58 = vld [vmem:[#allocation74_spill] sm:$0xff] }
 0x57f   :  { %5505 = vmatmul.mubr.msk.bf16.vlgmr.msra.gmra.mxu1 %vm2180_vm10, %v3915_v54  ;;  %v3996_v31 = vpack.c.bf16 %v3986_v1, %v3982_v12  ;;  %v3955_v48 = vpop.permute.xlu0 %3954  ;;  %v3995_v15 = vpack.c.bf16 %v3985_v5, %v3981_v27  ;;  %v4495_v61 = vpack.c.bf16 %v9787_v23, %v9786_v3  ;;  %v9790_v54 = vpack.c.bf16 %v9788_v13, %v9789_v58  ;;  %v9795_v2 = vld [vmem:[#allocation89_spill] sm:$0xff]  ;;  %v9798_v5 = vld [vmem:[#allocation72_spill] sm:$0xff]  ;;  %v5511_v8 = vld [vmem:[%s9258_s9 + $0x8] sm:$0x3] }
 0x580   :  { %4373 = vmatpush1.bf16.msra.mxu1 %v4314_v39  ;;  %v3959_v40 = vsel %vm204_vm5, %v8716_v18, %v3955_v48  ;;  %v3971_v17 = vsel %vm204_vm5, %v3955_v48, %v8710_v38  ;;  %4392 = vmatprep.mubr.bf16.mxu1 %v9759_v52  ;;  %v5506_v18 = vld [vmem:[%s9258_s9 + $0x6] sm:$0x3]  ;;  %v9779_v39 = vld [vmem:[#allocation46_spill] sm:$0xff]  ;;  %v4492_v19 = vpack.c.bf16 %v9792_v50, %v9791_v51  ;;  %v9802_v48 = vld [vmem:[#allocation68_spill] sm:$0xff] }
 0x581   :  { %4374 = vmatprep.subr.bf16.mxu1 %v9771_v10  ;;  %v3984_v30 = vmul.f32 %v3971_v17, %v9697_v16  ;;  %v3987_v56 = vmul.f32 %v3959_v40, %v9699_v57  ;;  %4334 = vmatpush1.bf16.msra.mxu0 %v9774_v29  ;;  %v9780_v41 = vpack.c.bf16 %v9778_v63, %v9779_v39  ;;  %v9797_v12 = vld [vmem:[#allocation45_spill] sm:$0xff]  ;;  %v9805_v40 = vld [vmem:[#allocation31_spill] sm:$0xff]  ;;  %v9809_v39 = vld [vmem:[#allocation32_spill] sm:$0xff] }
 0x582   :  { %v4598_v46 = vpop.permute.xlu1 %4597  ;;  %4416 = vmatprep.subr.bf16.mxu0 %v3995_v15  ;;  %v4489_v43 = vpack.c.bf16 %v9794_v22, %v9793_v34  ;;  %v4494_v1 = vpack.c.bf16 %v9798_v5, %v9797_v12  ;;  %v4491_v28 = vpack.c.bf16 %v9800_v45, %v9799_v20  ;;  %v4490_v10 = vpack.c.bf16 %v9804_v35, %v9803_v7  ;;  %v9808_v37 = vld [vmem:[#allocation93_spill] sm:$0xff]  ;;  %v9811_v53 = vld [vmem:[#allocation94_spill] sm:$0xff]  ;;  %v9812_v23 = vld [vmem:[#allocation92_spill] sm:$0xff] }
 0x583   :  { %v3994_v38 = vpack.c.bf16 %v3984_v30, %v3980_v4  ;;  %v8959_v26 = vpop.permute.xlu0 %5084  ;;  %v3997_v16 = vpack.c.bf16 %v3987_v56, %v3983_v62  ;;  %v4623_v27 = vsel %vm1048_vm6, %v4598_v46, %v9795_v2  ;;  %v4627_v9 = vsel %vm1048_vm6, %v9796_v24, %v4598_v46  ;;  %v9806_v4 = vld [vmem:[#allocation30_spill] sm:$0xff]  ;;  %v9807_v30 = vld [vmem:[#allocation91_spill] sm:$0xff] }
 0x584   :  { %4375 = vmatpush1.bf16.msra.mxu1 %v9777_v11  ;;  %5507 = vmatmul.mubr.msk.bf16.vlgmr.msra.gmra.mxu0 %vm2180_vm10, %v5506_v18  ;;  %v4641_v17 = vmul.f32 %v4627_v9, %v9805_v40  ;;  %v4642_v62 = vmul.f32 %v4623_v27, %v9806_v4  ;;  %v9814_v51 = vld [vmem:[#allocation18_spill] sm:$0xff]  ;;  %v9816_v34 = vld [vmem:[#allocation35_spill] sm:$0xff]  ;;  %v9818_v27 = vld [vmem:[#allocation97_spill] sm:$0xff] }
 0x585   :  { %4417 = vmatpush1.bf16.msra.mxu0 %v3994_v38  ;;  %4457 = vmatprep.subr.bf16.mxu1 %v3997_v16  ;;  %v9819_v9 = vld [vmem:[#allocation34_spill] sm:$0xff] }
 0x586   :  { %v4614_v57 = vpop.permute.xlu1 %4613  ;;  %4418 = vmatprep.subr.bf16.mxu0 %v9780_v41  ;;  %4436 = vmatprep.mubr.bf16.mxu0 %v9759_v52 }
 0x587   :  { %5508 = vmatmul.mubr.msk.bf16.vlgmr.msra.gmra.mxu1 %vm2180_vm10, %v5506_v18  ;;  %v8966_v49 = vpop.permute.xlu0 %5092  ;;  %v4619_v29 = vsel %vm1048_vm6, %v9795_v2, %v4614_v57  ;;  %v4631_v46 = vsel %vm1048_vm6, %v4614_v57, %v9796_v24  ;;  %v9817_v2 = vld [vmem:[#allocation95_spill] sm:$0xff] }
 0x588   :  { %4458 = vmatpush1.bf16.msra.mxu1 %v3996_v31  ;;  %4477 = vmatprep.mubr.bf16.mxu1 %v9759_v52  ;;  %v9801_v31 = vld [vmem:[#allocation52_spill] sm:$0xff]  ;;  %v4643_v41 = vmul.f32 %v4619_v29, %v9809_v39 }
 0x589   :  { %4459 = vmatprep.subr.bf16.mxu1 %v9781_v47  ;;  %4419 = vmatpush1.bf16.msra.mxu0 %v9785_v60  ;;  %v4488_v15 = vpack.c.bf16 %v9802_v48, %v9801_v31  ;;  %v9810_v47 = vld [vmem:[#allocation29_spill] sm:$0xff]  ;;  %v5514_v48 = vld [vmem:[%s9258_s9 + $0xa] sm:$0x3] }
 0x58a   :  { %v4761_v33 = vpop.permute.xlu1 %4760  ;;  %4511 = vmatprep.subr.bf16.mxu0 %v4493_v32  ;;  %v4644_v25 = vmul.f32 %v4631_v46, %v9810_v47  ;;  %v9829_v46 = vld [vmem:[#allocation98_spill] sm:$0xff] }
 0x58b   :  { %v8986_v0 = vpop.permute.xlu0 %5076  ;;  %v4790_v42 = vsel %vm1247_vm7, %v9811_v53, %v4761_v33 }
 0x58c   :  { %4460 = vmatpush1.bf16.msra.mxu1 %v9790_v54  ;;  %5509 = vmatmul.mubr.msk.bf16.vlgmr.msra.gmra.mxu0 %vm2180_vm10, %v5500_v21  ;;  %v9813_v54 = vld [vmem:[#allocation21_spill] sm:$0xff]  ;;  %v4804_v22 = vmul.f32 %v4790_v42, %v9816_v34 }
 0x58d   :  { %4552 = vmatprep.subr.bf16.mxu1 %v4495_v61  ;;  %4512 = vmatpush1.bf16.msra.mxu0 %v4492_v19  ;;  %v4786_v61 = vsel %vm1247_vm7, %v4761_v33, %v9812_v23  ;;  %v9815_v50 = vpack.c.bf16 %v9813_v54, %v9814_v51 }
 0x58e   :  { %v4777_v36 = vpop.permute.xlu1 %4776  ;;  %4531 = vmatprep.mubr.bf16.mxu0 %v9759_v52  ;;  %4513 = vmatprep.subr.bf16.mxu0 %v4489_v43  ;;  %v4805_v12 = vmul.f32 %v4786_v61, %v9819_v9 }
 0x58f   :  { %5510 = vmatmul.mubr.msk.bf16.vlgmr.msra.gmra.mxu1 %vm2180_vm10, %v5500_v21  ;;  %v4600_v6 = vpop.permute.xlu0 %4599  ;;  %v4782_v43 = vsel %vm1247_vm7, %v9812_v23, %v4777_v36  ;;  %v4794_v5 = vsel %vm1247_vm7, %v4777_v36, %v9811_v53  ;;  %v9825_v36 = vld [vmem:[#allocation22_spill] sm:$0xff]  ;;  %v9836_v53 = vld [vmem:[#allocation39_spill] sm:$0xff] }
 0x590   :  { %4553 = vmatpush1.bf16.msra.mxu1 %v4494_v1  ;;  %4572 = vmatprep.mubr.bf16.mxu1 %v9759_v52  ;;  %v4624_v56 = vsel %vm1048_vm6, %v4600_v6, %v9807_v30  ;;  %v4628_v59 = vsel %vm1048_vm6, %v9808_v37, %v4600_v6  ;;  %v9821_v6 = vld [vmem:[#allocation19_spill] sm:$0xff] }
 0x591   :  { %4554 = vmatprep.subr.bf16.mxu1 %v4491_v28  ;;  %v4645_v18 = vmul.f32 %v4628_v59, %v9805_v40  ;;  %v4646_v38 = vmul.f32 %v4624_v56, %v9806_v4  ;;  %4514 = vmatpush1.bf16.msra.mxu0 %v4488_v15  ;;  %v9820_v28 = vld [vmem:[#allocation20_spill] sm:$0xff]  ;;  %v9838_v23 = vld [vmem:[#allocation99_spill] sm:$0xff] }
 0x592   :  { %v4924_v14 = vpop.permute.xlu1 %4923  ;;  %v9822_v31 = vpack.c.bf16 %v9820_v28, %v9821_v6  ;;  %v9823_v15 = vld [vmem:[#allocation36_spill] sm:$0xff] }
 0x593   :  { %v4655_v11 = vpack.c.bf16 %v4645_v18, %v4641_v17  ;;  %v4616_v16 = vpop.permute.xlu0 %4615  ;;  %v4656_v63 = vpack.c.bf16 %v4646_v38, %v4642_v62  ;;  %v4806_v7 = vmul.f32 %v4782_v43, %v9823_v15  ;;  %v9827_v62 = vld [vmem:[#allocation33_spill] sm:$0xff]  ;;  %v9828_v56 = vld [vmem:[#allocation96_spill] sm:$0xff]  ;;  %v4953_v18 = vsel %vm1446_vm8, %v9829_v46, %v4924_v14  ;;  %v9840_v43 = vld [vmem:[#allocation26_spill] sm:$0xff] }
 0x594   :  { %4555 = vmatpush1.bf16.msra.mxu1 %v4490_v10  ;;  %v4620_v57 = vsel %vm1048_vm6, %v9807_v30, %v4616_v16  ;;  %v4632_v32 = vsel %vm1048_vm6, %v4616_v16, %v9808_v37  ;;  %5512 = vmatmul.mubr.msk.bf16.vlgmr.msra.gmra.mxu0 %vm2180_vm10, %v5511_v8  ;;  %v9824_v10 = vld [vmem:[#allocation25_spill] sm:$0xff]  ;;  %v4807_v30 = vmul.f32 %v4794_v5, %v9827_v62  ;;  %v9830_v16 = vld [vmem:[#allocation24_spill] sm:$0xff] }
 0x595   :  { %v4647_v60 = vmul.f32 %v4620_v57, %v9809_v39  ;;  %v4648_v21 = vmul.f32 %v4632_v32, %v9810_v47  ;;  %4674 = vmatprep.subr.bf16.mxu0 %v4656_v63  ;;  %4694 = vmatprep.mubr.bf16.mxu0 %v9759_v52  ;;  %v9826_v40 = vpack.c.bf16 %v9824_v10, %v9825_v36  ;;  %v9831_v63 = vld [vmem:[#allocation23_spill] sm:$0xff]  ;;  %v9849_v10 = vld [vmem:[#allocation37_spill] sm:$0xff] }
 0x596   :  { %v4940_v3 = vpop.permute.xlu1 %4939  ;;  %4675 = vmatpush1.bf16.msra.mxu0 %v4655_v11  ;;  %v4949_v37 = vsel %vm1446_vm8, %v4924_v14, %v9828_v56  ;;  %v9832_v39 = vpack.c.bf16 %v9830_v16, %v9831_v63  ;;  %v9834_v57 = vld [vmem:[#allocation27_spill] sm:$0xff]  ;;  %v4967_v42 = vmul.f32 %v4953_v18, %v9836_v53  ;;  %v9855_v63 = vld [vmem:[#allocation84_spill] sm:$0xff] }
 0x597   :  { %5513 = vmatmul.mubr.msk.bf16.vlgmr.msra.gmra.mxu1 %vm2180_vm10, %v5511_v8  ;;  %v4657_v13 = vpack.c.bf16 %v4647_v60, %v4643_v41  ;;  %v4763_v58 = vpop.permute.xlu0 %4762  ;;  %4676 = vmatprep.subr.bf16.mxu0 %v9815_v50  ;;  %v4658_v19 = vpack.c.bf16 %v4648_v21, %v4644_v25  ;;  %v9833_v25 = vld [vmem:[#allocation76_spill] sm:$0xff]  ;;  %v9837_v60 = vld [vmem:[#allocation38_spill] sm:$0xff]  ;;  %v4945_v54 = vsel %vm1446_vm8, %v9828_v56, %v4940_v3  ;;  %v9851_v56 = vld [vmem:[#allocation43_spill] sm:$0xff] }
 0x598   :  { %v4787_v33 = vsel %vm1247_vm7, %v4763_v58, %v9817_v2  ;;  %v4791_v24 = vsel %vm1247_vm7, %v9818_v27, %v4763_v58  ;;  %4735 = vmatprep.mubr.bf16.mxu1 %v9759_v52  ;;  %v9835_v32 = vpack.c.bf16 %v9833_v25, %v9834_v57  ;;  %v4968_v21 = vmul.f32 %v4949_v37, %v9837_v60 }
 0x599   :  { %v4808_v1 = vmul.f32 %v4791_v24, %v9816_v34  ;;  %v4809_v20 = vmul.f32 %v4787_v33, %v9819_v9  ;;  %4715 = vmatprep.subr.bf16.mxu1 %v4658_v19  ;;  %v5111_v34 = vsel %vm1645_vm9, %v8959_v26, %v8966_v49  ;;  %v9843_v24 = vld [vmem:[#allocation100_spill] sm:$0xff] }
 0x59a   :  { %v5087_v45 = vpop.permute.xlu1 %5086  ;;  %4677 = vmatpush1.bf16.msra.mxu0 %v9822_v31  ;;  %4716 = vmatpush1.bf16.msra.mxu1 %v4657_v13  ;;  %v9839_v13 = vld [vmem:[#allocation101_spill] sm:$0xff] }
 0x59b   :  { %v4818_v35 = vpack.c.bf16 %v4808_v1, %v4804_v22  ;;  %4717 = vmatprep.subr.bf16.mxu1 %v9826_v40  ;;  %v4779_v17 = vpop.permute.xlu0 %4778  ;;  %v4819_v4 = vpack.c.bf16 %v4809_v20, %v4805_v12  ;;  %v4957_v22 = vsel %vm1446_vm8, %v4940_v3, %v9829_v46  ;;  %v5112_v9 = vsel %vm1645_vm9, %v5087_v45, %v9843_v24  ;;  %v9844_v12 = vld [vmem:[#allocation102_spill] sm:$0xff]  ;;  %v9845_v20 = vld [vmem:[#allocation80_spill] sm:$0xff]  ;;  %v9853_v46 = vld [vmem:[#allocation77_spill] sm:$0xff] }
 0x59c   :  { %v4783_v59 = vsel %vm1247_vm7, %v9817_v2, %v4779_v17  ;;  %v4795_v29 = vsel %vm1247_vm7, %v4779_v17, %v9818_v27  ;;  %v9841_v2 = vld [vmem:[#allocation28_spill] sm:$0xff]  ;;  %v5517_v27 = vld [vmem:[%s9258_s9 + $0xc] sm:$0x3]  ;;  %v5116_v5 = vsel %vm1645_vm9, %v9844_v12, %v5087_v45  ;;  %v4970_v36 = vmul.f32 %v4957_v22, %v9849_v10 }
 0x59d   :  { %v4810_v38 = vmul.f32 %v4783_v59, %v9823_v15  ;;  %v4811_v8 = vmul.f32 %v4795_v29, %v9827_v62  ;;  %5515 = vmatmul.mubr.msk.bf16.vlgmr.msra.gmra.mxu0 %vm2180_vm10, %v5514_v48  ;;  %4837 = vmatprep.subr.bf16.mxu0 %v4819_v4  ;;  %v9842_v33 = vpack.c.bf16 %v9840_v43, %v9841_v2  ;;  %v9846_v3 = vld [vmem:[#allocation78_spill] sm:$0xff]  ;;  %v9852_v29 = vld [vmem:[#allocation79_spill] sm:$0xff]  ;;  %v9864_v22 = vld [vmem:[#allocation88_spill] sm:$0xff] }
 0x59e   :  { %v9094_v11 = vpop.permute.xlu1 %5090  ;;  %4718 = vmatpush1.bf16.msra.mxu1 %v9832_v39  ;;  %4838 = vmatpush1.bf16.msra.mxu0 %v4818_v35  ;;  %v9847_v28 = vpack.c.bf16 %v9845_v20, %v9846_v3  ;;  %v9850_v62 = vld [vmem:[#allocation42_spill] sm:$0xff]  ;;  %v5130_v37 = vmul.f32 %v5116_v5, %v9851_v56  ;;  %v9854_v18 = vpack.c.bf16 %v9852_v29, %v9853_v46 }
 0x59f   :  { %v4820_v41 = vpack.c.bf16 %v4810_v38, %v4806_v7  ;;  %v4926_v47 = vpop.permute.xlu0 %4925  ;;  %4839 = vmatprep.subr.bf16.mxu0 %v9835_v32  ;;  %v4821_v14 = vpack.c.bf16 %v4811_v8, %v4807_v30  ;;  %4857 = vmatprep.mubr.bf16.mxu0 %v9759_v52  ;;  %v5110_v7 = vsel %vm1645_vm9, %v8923_v55, %v9094_v11  ;;  %v9856_v39 = vld [vmem:[#allocation82_spill] sm:$0xff]  ;;  %v9858_v32 = vld [vmem:[#allocation103_spill] sm:$0xff] }
 0x5a0   :  { %v4950_v61 = vsel %vm1446_vm8, %v4926_v47, %v9838_v23  ;;  %v4954_v58 = vsel %vm1446_vm8, %v9839_v13, %v4926_v47  ;;  %v5127_v30 = vmul.f32 %v5111_v34, %v9850_v62  ;;  %v5131_v59 = vmul.f32 %v5112_v9, %v9850_v62  ;;  %v9865_v43 = vld [vmem:[#allocation86_spill] sm:$0xff] }
 0x5a1   :  { %v4971_v51 = vmul.f32 %v4954_v58, %v9836_v53  ;;  %v4972_v50 = vmul.f32 %v4950_v61, %v9837_v60  ;;  %5516 = vmatmul.mubr.msk.bf16.vlgmr.msra.gmra.mxu1 %vm2180_vm10, %v5514_v48  ;;  %4878 = vmatprep.subr.bf16.mxu1 %v4821_v14  ;;  %v9848_v48 = vld [vmem:[#allocation40_spill] sm:$0xff]  ;;  %v5123_v38 = vmul.f32 %v5110_v7, %v9850_v62  ;;  %v9861_v58 = vld [vmem:[#allocation81_spill] sm:$0xff] }
 0x5a2   :  { %v5103_v19 = vpop.permute.xlu1 %5102  ;;  %4840 = vmatpush1.bf16.msra.mxu0 %v9842_v33  ;;  %4879 = vmatpush1.bf16.msra.mxu1 %v4820_v41  ;;  %v4969_v15 = vmul.f32 %v4945_v54, %v9848_v48  ;;  %v9857_v41 = vpack.c.bf16 %v9855_v63, %v9856_v39  ;;  %v9859_v53 = vld [vmem:[#allocation104_spill] sm:$0xff]  ;;  %v5115_v61 = vsel %vm1645_vm9, %v8986_v0, %v8959_v26 }
 0x5a3   :  { %v4981_v1 = vpack.c.bf16 %v4971_v51, %v4967_v42  ;;  %4880 = vmatprep.subr.bf16.mxu1 %v9847_v28  ;;  %v4942_v6 = vpop.permute.xlu0 %4941  ;;  %v4982_v31 = vpack.c.bf16 %v4972_v50, %v4968_v21  ;;  %4898 = vmatprep.mubr.bf16.mxu1 %v9759_v52  ;;  %v5108_v25 = vsel %vm1645_vm9, %v9843_v24, %v5103_v19  ;;  %v9863_v50 = vld [vmem:[#allocation44_spill] sm:$0xff]  ;;  %v9867_v24 = vld [vmem:[#allocation41_spill] sm:$0xff] }
 0x5a4   :  { %v4946_v35 = vsel %vm1446_vm8, %v9838_v23, %v4942_v6  ;;  %v4958_v45 = vsel %vm1446_vm8, %v4942_v6, %v9839_v13  ;;  %v5120_v57 = vsel %vm1645_vm9, %v5103_v19, %v9844_v12  ;;  %v9860_v13 = vld [vmem:[#allocation83_spill] sm:$0xff]  ;;  %v5132_v19 = vmul.f32 %v5108_v25, %v9863_v50 }
 0x5a5   :  { %v4973_v40 = vmul.f32 %v4946_v35, %v9848_v48  ;;  %v4974_v17 = vmul.f32 %v4958_v45, %v9849_v10  ;;  %5518 = vmatmul.mubr.msk.bf16.vlgmr.msra.gmra.mxu0 %vm2180_vm10, %v5517_v27  ;;  %5000 = vmatprep.subr.bf16.mxu0 %v4982_v31  ;;  %v9862_v54 = vpack.c.bf16 %v9860_v13, %v9861_v58  ;;  %v9868_v48 = vld [vmem:[#allocation87_spill] sm:$0xff] }
 0x5a6   :  { %v5075_v4 = vpop.permute.xlu1 %5074  ;;  %4881 = vmatpush1.bf16.msra.mxu1 %v9854_v18  ;;  %5001 = vmatpush1.bf16.msra.mxu0 %v4981_v1  ;;  %v9866_v2 = vpack.c.bf16 %v9864_v22, %v9865_v43  ;;  %v5141_v26 = vpack.c.bf16 %v5127_v30, %v5123_v38  ;;  %v5133_v9 = vmul.f32 %v5120_v57, %v9867_v24 }
 0x5a7   :  { %v4983_v8 = vpack.c.bf16 %v4973_v40, %v4969_v15  ;;  %v5089_v16 = vpop.permute.xlu0 %5088  ;;  %5002 = vmatprep.subr.bf16.mxu0 %v9857_v41  ;;  %v4984_v47 = vpack.c.bf16 %v4974_v17, %v4970_v36  ;;  %5020 = vmatprep.mubr.bf16.mxu0 %v9759_v52  ;;  %v5114_v60 = vsel %vm1645_vm9, %v5075_v4, %v8923_v55  ;;  %v5520_v55 = vld [vmem:[%s9258_s9 + $0xe] sm:$0x3]  ;;  %v9869_v15 = vld [vmem:[#allocation85_spill] sm:$0xff] }
 0x5a8   :  { %v5113_v14 = vsel %vm1645_vm9, %v5089_v16, %v9858_v32  ;;  %v5117_v42 = vsel %vm1645_vm9, %v9859_v53, %v5089_v16  ;;  %v5122_v12 = vmul.f32 %v5114_v60, %v9851_v56  ;;  %v5126_v6 = vmul.f32 %v5115_v61, %v9851_v56 }
 0x5a9   :  { %v5134_v21 = vmul.f32 %v5117_v42, %v9851_v56  ;;  %v5135_v23 = vmul.f32 %v5113_v14, %v9850_v62  ;;  %5519 = vmatmul.mubr.msk.bf16.vlgmr.msra.gmra.mxu1 %vm2180_vm10, %v5517_v27  ;;  %5041 = vmatprep.subr.bf16.mxu1 %v4984_v47  ;;  %v9870_v7 = vpack.c.bf16 %v9868_v48, %v9869_v15  ;;  %v5523_v56 = vld [vmem:[%s9258_s9 + $0x10] sm:$0x3] }
 0x5aa   :  { %5003 = vmatpush1.bf16.msra.mxu0 %v9862_v54  ;;  %5042 = vmatpush1.bf16.msra.mxu1 %v4983_v8  ;;  %v5099_v51 = vpop.permute.xlu1 %5098  ;;  %v5140_v10 = vpack.c.bf16 %v5126_v6, %v5122_v12 }
 0x5ab   :  { %v5144_v34 = vpack.c.bf16 %v5134_v21, %v5130_v37  ;;  %5043 = vmatprep.subr.bf16.mxu1 %v9866_v2  ;;  %v5105_v33 = vpop.permute.xlu0 %5104  ;;  %v5145_v27 = vpack.c.bf16 %v5135_v23, %v5131_v59  ;;  %5061 = vmatprep.mubr.bf16.mxu1 %v9759_v52  ;;  %v5106_v20 = vsel %vm1645_vm9, %v9094_v11, %v5099_v51 }
 0x5ac   :  { %v5109_v5 = vsel %vm1645_vm9, %v9858_v32, %v5105_v33  ;;  %v5121_v1 = vsel %vm1645_vm9, %v5105_v33, %v9859_v53  ;;  %v5118_v31 = vsel %vm1645_vm9, %v5099_v51, %v5075_v4  ;;  %v5124_v36 = vmul.f32 %v5106_v20, %v9863_v50 }
 0x5ad   :  { %v5136_v3 = vmul.f32 %v5109_v5, %v9863_v50  ;;  %v5137_v28 = vmul.f32 %v5121_v1, %v9867_v24  ;;  %5521 = vmatmul.mubr.msk.bf16.vlgmr.msra.gmra.mxu0 %vm2180_vm10, %v5520_v55  ;;  %5163 = vmatprep.subr.bf16.mxu0 %v5145_v27  ;;  %v5125_v4 = vmul.f32 %v5118_v31, %v9867_v24 }
 0x5ae   :  { %5044 = vmatpush1.bf16.msra.mxu1 %v9870_v7  ;;  %5164 = vmatpush1.bf16.msra.mxu0 %v5144_v34 }
 0x5af   :  { %v5146_v35 = vpack.c.bf16 %v5136_v3, %v5132_v19  ;;  %v5101_v45 = vpop.permute.xlu0 %5100  ;;  %5165 = vmatprep.subr.bf16.mxu0 %v5141_v26  ;;  %v5147_v11 = vpack.c.bf16 %v5137_v28, %v5133_v9  ;;  %5183 = vmatprep.mubr.bf16.mxu0 %v9759_v52 }
 0x5b0   :  { %v5107_v40 = vsel %vm1645_vm9, %v8966_v49, %v5101_v45  ;;  %v5119_v17 = vsel %vm1645_vm9, %v5101_v45, %v8986_v0 }
 0x5b1   :  { %v5128_v62 = vmul.f32 %v5107_v40, %v9863_v50  ;;  %v5129_v30 = vmul.f32 %v5119_v17, %v9867_v24  ;;  %5522 = vmatmul.mubr.msk.bf16.vlgmr.msra.gmra.mxu1 %vm2180_vm10, %v5520_v55  ;;  %5204 = vmatprep.subr.bf16.mxu1 %v5147_v11 }
 0x5b2   :  { %5166 = vmatpush1.bf16.msra.mxu0 %v5140_v10  ;;  %5205 = vmatpush1.bf16.msra.mxu1 %v5146_v35 }
 0x5b3   :  { %v5142_v49 = vpack.c.bf16 %v5128_v62, %v5124_v36  ;;  %v5143_v37 = vpack.c.bf16 %v5129_v30, %v5125_v4  ;;  %5224 = vmatprep.mubr.bf16.mxu1 %v9759_v52 }
 0x5b5   :  { %5524 = vmatmul.mubr.msk.bf16.vlgmr.msra.gmra.mxu0 %vm2180_vm10, %v5523_v56  ;;  %5206 = vmatprep.subr.bf16.mxu1 %v5143_v37 }
 0x5b6   :  { %5207 = vmatpush1.bf16.msra.mxu1 %v5142_v49 }
 0x5b9   :  { %5525 = vmatmul.mubr.msk.bf16.vlgmr.msra.gmra.mxu1 %vm2180_vm10, %v5523_v56 }
 0x634   :  { %v4109_v44 = vpop.f32.mrf.mxu0 }
 0x635   :  { %v9237_v0 = vpop.f32.mrf.mxu1 }
 0x636   :  { %v4111_v59 = vpop.f32.mrf.mxu0 }
 0x637   :  { %v9239_v29 = vpop.f32.mrf.mxu1 }
 0x638   :  { %v4113_v46 = vpop.f32.mrf.mxu0 }
 0x639   :  { %v4154_v18 = vpop.f32.mrf.mxu1 }
 0x63a   :  { %v4114_v38 = vpop.f32.mrf.mxu0 }
 0x63b   :  { %v4155_v8 = vpop.f32.mrf.mxu1 }
 0x63c   :  { %v4194_v16 = vpop.f32.mrf.mxu0 }
 0x63d   :  { %v4195_v62 = vadd.f32 %v4194_v16, %v4109_v44 }
 0x63e   :  { %v4196_v39 = vpop.f32.mrf.mxu0 }
 0x63f   :  { %v4235_v63 = vpop.f32.mrf.mxu1  ;;  %v4197_v46 = vadd.f32 %v4196_v39, %v4111_v59 }
 0x640   :  { %v4198_v41 = vpop.f32.mrf.mxu0  ;;  %v4236_v8 = vadd.f32 %v4235_v63, %v9237_v0 }
 0x641   :  { %v9241_v52 = vpop.f32.mrf.mxu1 }
 0x642   :  { %v4199_v25 = vpop.f32.mrf.mxu0  ;;  %v4238_v44 = vadd.f32 %v9241_v52, %v9239_v29 }
 0x643   :  { %v4239_v47 = vpop.f32.mrf.mxu1 }
 0x644   :  { %v4353_v32 = vpop.f32.mrf.mxu0 }
 0x645   :  { %v4240_v57 = vpop.f32.mrf.mxu1 }
 0x646   :  { %v4355_v53 = vpop.f32.mrf.mxu0 }
 0x647   :  { %v4394_v14 = vpop.f32.mrf.mxu1 }
 0x648   :  { %v4357_v60 = vpop.f32.mrf.mxu0 }
 0x649   :  { %v4396_v42 = vpop.f32.mrf.mxu1 }
 0x64a   :  { %v4358_v23 = vpop.f32.mrf.mxu0 }
 0x64b   :  { %v4398_v21 = vpop.f32.mrf.mxu1 }
 0x64c   :  { %v4438_v13 = vpop.f32.mrf.mxu0 }
 0x64d   :  { %v4399_v61 = vpop.f32.mrf.mxu1  ;;  %v4439_v40 = vadd.f32 %v4438_v13, %v4353_v32  ;;  %v5241_v13 = vpop.permute.xlu1 %5240 }
 0x64e   :  { %v4440_v54 = vpop.f32.mrf.mxu0 }
 0x64f   :  { %v4479_v58 = vpop.f32.mrf.mxu1  ;;  %v4441_v30 = vadd.f32 %v4440_v54, %v4355_v53 }
 0x650   :  { %v4442_v55 = vpop.f32.mrf.mxu0  ;;  %v4480_v41 = vadd.f32 %v4479_v58, %v4394_v14 }
 0x651   :  { %v4481_v51 = vpop.f32.mrf.mxu1 }
 0x652   :  { %v4443_v19 = vpop.f32.mrf.mxu0  ;;  %v4482_v60 = vadd.f32 %v4481_v51, %v4396_v42 }
 0x653   :  { %v4483_v50 = vpop.f32.mrf.mxu1 }
 0x654   :  { %v4533_v22 = vpop.f32.mrf.mxu0 }
 0x655   :  { %v4484_v34 = vpop.f32.mrf.mxu1  ;;  %v4581_v18 = vadd.f32 %v4533_v22, %v4195_v62 }
 0x656   :  { %v4535_v2 = vpop.f32.mrf.mxu0 }
 0x657   :  { %v4574_v43 = vpop.f32.mrf.mxu1  ;;  %v4582_v21 = vadd.f32 %v4535_v2, %v4197_v46 }
 0x658   :  { %v4537_v27 = vpop.f32.mrf.mxu0  ;;  %v4583_v16 = vadd.f32 %v4574_v43, %v4236_v8 }
 0x659   :  { %v4576_v33 = vpop.f32.mrf.mxu1 }
 0x65a   :  { %v4538_v26 = vpop.f32.mrf.mxu0  ;;  %v4584_v0 = vadd.f32 %v4576_v33, %v4238_v44 }
 0x65b   :  { %v4578_v24 = vpop.f32.mrf.mxu1 }
 0x65d   :  { %v4579_v9 = vpop.f32.mrf.mxu1  ;;  %v4696_v12 = vpop.f32.mrf.mxu0 }
 0x65e   :  { %v4744_v56 = vadd.f32 %v4696_v12, %v4439_v40 }
 0x65f   :  { %v4698_v5 = vpop.f32.mrf.mxu0 }
 0x660   :  { %v4745_v38 = vadd.f32 %v4698_v5, %v4441_v30 }
 0x661   :  { %v4700_v1 = vpop.f32.mrf.mxu0  ;;  %v4737_v20 = vpop.f32.mrf.mxu1 }
 0x662   :  { %v4746_v59 = vadd.f32 %v4737_v20, %v4480_v41  ;;  %v5583_v20 = vld [vmem:[#allocation2] sm:$0xff] }
 0x663   :  { %v4701_v3 = vpop.f32.mrf.mxu0  ;;  %v4739_v28 = vpop.f32.mrf.mxu1 }
 0x664   :  { %v4747_v39 = vadd.f32 %v4739_v28, %v4482_v60 }
 0x665   :  { %v4741_v6 = vpop.f32.mrf.mxu1  ;;  %v4859_v31 = vpop.f32.mrf.mxu0 }
 0x666   :  { %v4907_v23 = vadd.f32 %v4859_v31, %v4581_v18 }
 0x667   :  { %v4742_v48 = vpop.f32.mrf.mxu1  ;;  %v4861_v15 = vpop.f32.mrf.mxu0 }
 0x668   :  { %v4908_v54 = vadd.f32 %v4861_v15, %v4582_v21 }
 0x669   :  { %v4863_v7 = vpop.f32.mrf.mxu0  ;;  %v4900_v35 = vpop.f32.mrf.mxu1 }
 0x66a   :  { %v4909_v63 = vadd.f32 %v4900_v35, %v4583_v16  ;;  %v5584_v35 = vld [vmem:[#allocation2 + $0x8] sm:$0xff] }
 0x66b   :  { %v4864_v45 = vpop.f32.mrf.mxu0  ;;  %v4902_v11 = vpop.f32.mrf.mxu1 }
 0x66c   :  { %v4910_v29 = vadd.f32 %v4902_v11, %v4584_v0 }
 0x66d   :  { %v4904_v10 = vpop.f32.mrf.mxu1  ;;  %v5022_v36 = vpop.f32.mrf.mxu0 }
 0x66e   :  { %v5070_v47 = vadd.f32 %v5022_v36, %v4744_v56 }
 0x66f   :  { %v4905_v17 = vpop.f32.mrf.mxu1  ;;  %v5024_v4 = vpop.f32.mrf.mxu0 }
 0x670   :  { %v5071_v32 = vadd.f32 %v5024_v4, %v4745_v38  ;;  %v5243_v14 = vadd.f32 %v5241_v13, %v5070_v47 }
 0x671   :  { %v5026_v49 = vpop.f32.mrf.mxu0  ;;  %v5063_v37 = vpop.f32.mrf.mxu1 }
 0x672   :  { %v5244_v42 = vadd.f32 %v5241_v13, %v5071_v32  ;;  %v5072_v51 = vadd.f32 %v5063_v37, %v4746_v59 }
 0x673   :  { %v5027_v25 = vpop.f32.mrf.mxu0  ;;  %v5065_v57 = vpop.f32.mrf.mxu1 }
 0x674   :  { %v5073_v19 = vadd.f32 %v5065_v57, %v4747_v39  ;;  %v5245_v9 = vadd.f32 %v5241_v13, %v5072_v51 }
 0x675   :  { %v5067_v53 = vpop.f32.mrf.mxu1  ;;  %v5185_v61 = vpop.f32.mrf.mxu0 }
 0x676   :  { %v5233_v55 = vadd.f32 %v5185_v61, %v4907_v23  ;;  %v5246_v12 = vadd.f32 %v5241_v13, %v5073_v19 }
 0x677   :  { %v5068_v58 = vpop.f32.mrf.mxu1  ;;  %v5187_v50 = vpop.f32.mrf.mxu0 }
 0x678   :  { %v5234_v34 = vadd.f32 %v5187_v50, %v4908_v54  ;;  %v5247_v52 = vadd.f32 %v5243_v14, %v5233_v55 }
 0x679   :  { %v5226_v22 = vpop.f32.mrf.mxu1  ;;  %v5189_v2 = vpop.f32.mrf.mxu0 }
 0x67a   :  { %v5248_v43 = vadd.f32 %v5244_v42, %v5234_v34  ;;  %v5235_v27 = vadd.f32 %v5226_v22, %v4909_v63 }
 0x67b   :  { %v5228_v26 = vpop.f32.mrf.mxu1  ;;  %v5190_v24 = vpop.f32.mrf.mxu0 }
 0x67c   :  { %v5255_v5 = vcombine.low %v5247_v52, %v5248_v43  ;;  %v5236_v33 = vadd.f32 %v5228_v26, %v4910_v29  ;;  %v5249_v28 = vadd.f32 %v5245_v9, %v5235_v27 }
 0x67d   :  { %v5230_v1 = vpop.f32.mrf.mxu1 }
 0x67e   :  { %v5259_v3 = vsub.f32 %v5583_v20, %v5255_v5  ;;  %v5250_v6 = vadd.f32 %v5246_v12, %v5236_v33 }
 0x67f   :  { %v5231_v31 = vpop.f32.mrf.mxu1 }
 0x680   :  { %v5261_v48 = vmul.f32 %v5259_v3, %v5259_v3  ;;  %v5256_v15 = vcombine.low %v5249_v28, %v5250_v6 }
 0x682   :  { %v5265_v7 = vcombine.high %v5261_v48, %v5261_v48  ;;  %v5260_v45 = vsub.f32 %v5584_v35, %v5256_v15  ;;  %v5270_v10 = vsel %vm5269_vm0, %v5261_v48, 0.0 }
 0x684   :  { %v5262_v11 = vmul.f32 %v5260_v45, %v5260_v45  ;;  %v5271_v36 = vsel %vm5269_vm0, %v5265_v7, 0.0 }
 0x685   :  { %v5272_v40 = vadd.f32 %v5271_v36, %v5270_v10 }
 0x686   :  { %v5266_v17 = vcombine.high %v5262_v11, %v5262_v11  ;;  %v5273_v4 = vsel %vm5269_vm0, %v5262_v11, 0.0 }
 0x687   :  { %v5274_v62 = vadd.f32 %v5273_v4, %v5272_v40 }
 0x688   :  { %v5275_v30 = vsel %vm5269_vm0, %v5266_v17, 0.0 }
 0x689   :  { %v5276_v56 = vadd.f32 %v5275_v30, %v5274_v62 }
 0x68b   :  { %5277 = vadd.xlane.f32.xlu0 %v5276_v56 }
 0x714   :  { %v5278_v49 = vpop.xlane.xlu0 %5277 }
 0x715   :  { %v5279_v37 = vrot.slane %v5278_v49, 4 }
 0x717   :  { %v5280_v46 = vadd.f32 %v5279_v37, %v5278_v49 }
 0x719   :  { %v5281_v18 = vrot.slane %v5280_v46, 2 }
 0x71b   :  { %v5282_v38 = vadd.f32 %v5281_v18, %v5280_v46 }
 0x71d   :  { %v5283_v8 = vrot.slane %v5282_v38, 1 }
 0x71f   :  { %v5284_v41 = vadd.f32 %v5283_v8, %v5282_v38 }
 0x721   :  { %5526 = vpush %v5284_v41 }
 0x752   :  { %s5527_s9 = spop %5526 }
 0x753   :  { %5287 = sst [smem:[#allocation8]] %s5527_s9 }
 0x754   :  { %5295 = dma.smem_to_hbm %s5671_s29, 16, %s9260_s11, [#allocation4]  }
 0x755   :  { %5657 = dma.done.wait [#allocation4], 16  }
 0x756   :  { %5658 = vsyncadd [#allocation4], 4294967280 }
 0x757   :  { %5299 = sfence }
 0x758   :  { %5300 = vsyncpa [#allocation3], 1 }
 0x759   :  { %5301 = vsyncpa [#allocation6], 1 }
 0x75a   :  { %5302 = vsyncpa [#allocation4], 1 }

</bundles_post_ra>
